<compile_context>
chip_gen: v7x
topology: tpu7x:2x2x1
jax: 0.10.0
libtpu: 0.0.40
codegen_flags: <defaults>
</compile_context>

<pallas_src>
import functools
import math

import jax
import jax.numpy as jnp
import numpy as np
from jax.experimental import pallas as pl
from jax.experimental.pallas import tpu as pltpu


def _softplus(t):
    # numerically stable softplus, elementwise (VPU + EUP)
    return jnp.maximum(t, 0.0) + jnp.log(1.0 + jnp.exp(-jnp.abs(t)))


# ----------------------------------------------------------------------------
# Fused kernel: whole CORE forward for one batch tile.
# refs = [x, first_w, first_b, (lvl_w_i, lvl_b_i) * n_levels, reg_w, reg_b, out]
#   lvl_w_i : (n, h, 2h+2) bf16   columns = [feat child0 | feat child1 | clf l0 l1]
#   lvl_b_i : (n, 1, 2h+2) f32
#   reg_w   : (L, h, 1)    bf16
#   reg_b   : (1, L)       f32
#   out     : (bt, out_cols) f32  packed [prob lvl0 | prob lvl1 | ... | delta | 0pad]
# ----------------------------------------------------------------------------
def _core_fused_kernel(*refs, n_levels, hidden, out_cols):
    x_ref, fw_ref, fb_ref = refs[0], refs[1], refs[2]
    lvl_refs = refs[3:3 + 2 * n_levels]
    regw_ref = refs[3 + 2 * n_levels]
    regb_ref = refs[4 + 2 * n_levels]
    out_ref = refs[5 + 2 * n_levels]
    h = hidden

    # first_layer: Linear + ReLU (bf16 operands, f32 accumulation)
    x0 = jnp.dot(x_ref[...].astype(jnp.bfloat16), fw_ref[...],
                 preferred_element_type=jnp.float32)
    x0 = jnp.maximum(x0 + fb_ref[...], 0.0)
    bt = x0.shape[0]

    xs = [x0.astype(jnp.bfloat16)]                 # per-node activations (bt, h) bf16
    prevs = [jnp.zeros((bt, 1), jnp.float32)]      # per-node parent log-prob (bt, 1)
    prob_pieces = []                               # per-level (bt, 2n) interleaved probs

    for i in range(n_levels):                      # static unroll over tree depth
        n = 2 ** i
        w_ref = lvl_refs[2 * i]
        b_ref = lvl_refs[2 * i + 1]
        new_xs, new_prevs, lvl_probs = [], [], []
        for j in range(n):                         # static unroll over nodes
            # one fused matmul per node: features for both children + 2 clf logits
            y = (jnp.dot(xs[j], w_ref[j], preferred_element_type=jnp.float32)
                 + b_ref[j])                                        # (bt, 2h+2) f32
            feat = jnp.maximum(y[:, :2 * h], 0.0).astype(jnp.bfloat16)
            logits = y[:, 2 * h:2 * h + 2]                           # (bt, 2)
            d = logits[:, 1:2] - logits[:, 0:1]                      # l1 - l0
            lp0 = prevs[j] - _softplus(d)       # log_softmax class0 + parent log-prob
            lp1 = prevs[j] - _softplus(-d)      # log_softmax class1 + parent log-prob
            lvl_probs.append(jnp.concatenate([lp0, lp1], axis=1))    # (bt, 2)
            new_xs += [feat[:, :h], feat[:, h:2 * h]]                # children 2j, 2j+1
            new_prevs += [lp0, lp1]
        prob_pieces.append(jnp.concatenate(lvl_probs, axis=1))       # (bt, 2n)
        xs, prevs = new_xs, new_prevs

    # reg_layer: one (bt, h) @ (h, 1) matmul per leaf, no activation
    deltas = [jnp.dot(xs[j], regw_ref[j], preferred_element_type=jnp.float32)
              for j in range(2 ** n_levels)]
    delta = jnp.concatenate(deltas, axis=1) + regb_ref[...]          # (bt, L)

    # single lane-dense store of everything
    slab = jnp.concatenate(prob_pieces + [delta], axis=1)
    pad = out_cols - slab.shape[1]
    if pad > 0:
        slab = jnp.concatenate([slab, jnp.zeros((bt, pad), jnp.float32)], axis=1)
    out_ref[...] = slab


# ----------------------------------------------------------------------------
# One-time weight packing (call ONCE, outside the per-step jitted forward)
# ----------------------------------------------------------------------------
def pack_core_params(params, compute_dtype=jnp.bfloat16):
    """Fuse [feat | clf] columns per node and cast matmul weights to bf16."""
    packed = {
        "first_w": params["first_w"].astype(compute_dtype),              # (in_c, h)
        "first_b": params["first_b"].reshape(1, -1).astype(jnp.float32),  # (1, h)
        "lvl_w": [], "lvl_b": [],
    }
    n_levels = len(params["feat_w"])
    for i in range(n_levels):
        w = jnp.concatenate([params["feat_w"][i], params["clf_w"][i]], axis=2)
        b = jnp.concatenate([params["feat_b"][i], params["clf_b"][i]], axis=1)
        packed["lvl_w"].append(w.astype(compute_dtype))                  # (n, h, 2h+2)
        packed["lvl_b"].append(b[:, None, :].astype(jnp.float32))        # (n, 1, 2h+2)
    packed["reg_w"] = params["reg_w"].astype(compute_dtype)              # (L, h, 1)
    packed["reg_b"] = params["reg_b"].reshape(1, -1).astype(jnp.float32)  # (1, L)
    return packed


# ----------------------------------------------------------------------------
# Wrapper: fused pallas_call over a batch-tiled parallel grid
# ----------------------------------------------------------------------------
def core_forward(packed, input_feature, depth, batch_tile=256):
    bs, in_c = input_feature.shape
    hidden = packed["first_w"].shape[1]
    n_levels = depth - 1
    num_leaf = 2 ** n_levels

    prob_widths = [2 ** (i + 1) for i in range(n_levels)]
    total_cols = sum(prob_widths) + num_leaf
    out_cols = max(128, ((total_cols + 127) // 128) * 128)   # lane-dense output slab

    bt = min(bs, batch_tile)
    grid = (pl.cdiv(bs, bt),)                                # >=2 steps when bs > bt

    inputs = [input_feature, packed["first_w"], packed["first_b"]]
    for i in range(n_levels):
        inputs += [packed["lvl_w"][i], packed["lvl_b"][i]]
    inputs += [packed["reg_w"], packed["reg_b"]]

    def _const_map(ndim):                                    # VMEM-resident weights
        return lambda b: (0,) * ndim

    in_specs = [pl.BlockSpec((bt, in_c), lambda b: (b, 0))]
    in_specs += [pl.BlockSpec(a.shape, _const_map(a.ndim)) for a in inputs[1:]]
    out_specs = pl.BlockSpec((bt, out_cols), lambda b: (b, 0))
    out_shape = jax.ShapeDtypeStruct((bs, out_cols), jnp.float32)

    # per-TILE VMEM accounting: double-buffered in/out tiles + resident weights
    # + generous working-set estimate for the unrolled per-node activations.
    weight_bytes = sum(math.prod(a.shape) * a.dtype.itemsize for a in inputs[1:])
    tile_bytes = 2 * bt * in_c * input_feature.dtype.itemsize + 2 * bt * out_cols * 4
    act_bytes = 4 * num_leaf * bt * hidden * 4
    vmem_limit = int(min(56 << 20,
                         max(32 << 20,
                             2 * weight_bytes + tile_bytes + act_bytes + (4 << 20))))

    out = pl.pallas_call(
        functools.partial(_core_fused_kernel, n_levels=n_levels,
                          hidden=hidden, out_cols=out_cols),
        grid=grid,
        out_shape=out_shape,
        in_specs=in_specs,
        out_specs=out_specs,
        compiler_params=pltpu.CompilerParams(
            dimension_semantics=("parallel",),
            vmem_limit_bytes=vmem_limit),
    )(*inputs)

    # host-side unpack of the tiny packed slab
    out_prob, off = [], 0
    for i in range(n_levels):
        n = 2 ** i
        out_prob.append(out[:, off:off + 2 * n].reshape(bs, n, 2))
        off += 2 * n
    delta = out[:, off:off + num_leaf]
    return out_prob, delta


# ----------------------------------------------------------------------------
# Deterministic param init (per-node layout of the grouped convs)
# ----------------------------------------------------------------------------
def init_core_params(key, in_channel, hidden, depth):
    k = [key]

    def nk():
        k[0], sub = jax.random.split(k[0])
        return sub

    scale = 0.05
    params = {
        "first_w": scale * jax.random.normal(nk(), (in_channel, hidden), jnp.float32),
        "first_b": scale * jax.random.normal(nk(), (1, hidden), jnp.float32),
        "feat_w": [], "feat_b": [], "clf_w": [], "clf_b": [],
    }
    for d in range(depth - 1):
        n = 2 ** d
        params["feat_w"].append(scale * jax.random.normal(nk(), (n, hidden, 2 * hidden), jnp.float32))
        params["feat_b"].append(scale * jax.random.normal(nk(), (n, 2 * hidden), jnp.float32))
        params["clf_w"].append(scale * jax.random.normal(nk(), (n, hidden, 2), jnp.float32))
        params["clf_b"].append(scale * jax.random.normal(nk(), (n, 2), jnp.float32))
    num_leaf = 2 ** (depth - 1)
    params["reg_w"] = scale * jax.random.normal(nk(), (num_leaf, hidden, 1), jnp.float32)
    params["reg_b"] = scale * jax.random.normal(nk(), (num_leaf, 1), jnp.float32)
    return params


# ----------------------------------------------------------------------------
# Pure-JAX f32 reference (mirrors the PyTorch module) for the correctness check
# ----------------------------------------------------------------------------
def _reference_forward(params, input_feature, depth):
    hp = jax.lax.Precision.HIGHEST
    x = jnp.maximum(
        jnp.dot(input_feature, params["first_w"], precision=hp) + params["first_b"], 0.0)
    bs, h = x.shape
    x = x.reshape(bs, 1, h)
    out_prob = []
    for i in range(depth - 1):
        n = 2 ** i
        logits = (jnp.einsum('bnh,nhc->bnc', x, params["clf_w"][i], precision=hp)
                  + params["clf_b"][i][None])
        logp = jax.nn.log_softmax(logits, axis=-1)
        if out_prob:
            logp = logp + out_prob[-1].reshape(bs, n, 1)
        out_prob.append(logp)
        y = (jnp.einsum('bnh,nho->bno', x, params["feat_w"][i], precision=hp)
             + params["feat_b"][i][None])
        x = jnp.maximum(y, 0.0).reshape(bs, 2 * n, h)
    delta = (jnp.einsum('bnh,nho->bno', x, params["reg_w"], precision=hp)
             + params["reg_b"][None]).reshape(bs, -1)
    return out_prob, delta


if __name__ == "__main__":
    # small shapes consistent with the module (defaults 2049/256 shrunk to 32/32)
    in_channel, hidden, depth, bs = 32, 32, 5, 2
    key = jax.random.PRNGKey(0)
    kp, kx = jax.random.split(key)

    params = init_core_params(kp, in_channel, hidden, depth)
    input_feature = jax.random.normal(kx, (bs, in_channel), jnp.float32)

    packed = pack_core_params(params)            # one-time pack / bf16 cast
    fwd = jax.jit(core_forward, static_argnums=2)
    out_prob, delta = fwd(packed, input_feature, depth)
    for p in out_prob:
        jax.block_until_ready(p)
    jax.block_until_ready(delta)

    # shape checks: match the PyTorch module: [(2,1,2),(2,2,2),(2,4,2),(2,8,2)], (2,16)
    assert [tuple(p.shape) for p in out_prob] == [(bs, 2 ** i, 2) for i in range(depth - 1)]
    assert delta.shape == (bs, 2 ** (depth - 1))

    # numerical check vs f32 reference (tolerance loosened for bf16 matmul operands,
    # f32 accumulation; at these shapes observed error is well below 1e-2)
    ref_prob, ref_delta = _reference_forward(params, input_feature, depth)
    for a, b in zip(out_prob, ref_prob):
        np.testing.assert_allclose(np.asarray(a), np.asarray(b), rtol=2e-2, atol=2e-2)
    np.testing.assert_allclose(np.asarray(delta), np.asarray(ref_delta), rtol=2e-2, atol=2e-2)

    print("KERNEL_OK")
</pallas_src>

<mosaic_0001>
module attributes {stable_mosaic.version = 11 : i64} {
  func.func @_core_fused_kernel(%arg0: i32, %arg1: memref<2x32xf32, #tpu.memory_space<vmem>>, %arg2: memref<32x32xbf16, #tpu.memory_space<vmem>>, %arg3: memref<1x32xf32, #tpu.memory_space<vmem>>, %arg4: memref<1x32x66xbf16, #tpu.memory_space<vmem>>, %arg5: memref<1x1x66xf32, #tpu.memory_space<vmem>>, %arg6: memref<2x32x66xbf16, #tpu.memory_space<vmem>>, %arg7: memref<2x1x66xf32, #tpu.memory_space<vmem>>, %arg8: memref<4x32x66xbf16, #tpu.memory_space<vmem>>, %arg9: memref<4x1x66xf32, #tpu.memory_space<vmem>>, %arg10: memref<8x32x66xbf16, #tpu.memory_space<vmem>>, %arg11: memref<8x1x66xf32, #tpu.memory_space<vmem>>, %arg12: memref<16x32x1xbf16, #tpu.memory_space<vmem>>, %arg13: memref<1x16xf32, #tpu.memory_space<vmem>>, %arg14: memref<2x128xf32, #tpu.memory_space<vmem>>) attributes {dimension_semantics = [#tpu.dimension_semantics<parallel>], iteration_bounds = array<i64: 1>, scalar_prefetch = 0 : i64, scratch_operands = 0 : i64, tpu.core_type = #tpu.core_type<tc>, window_params = [{transform_indices = @transform_0, window_bounds = array<i64: 2, 32>}, {pipeline_mode = #tpu.pipeline_mode<synchronous>, transform_indices = @transform_1, window_bounds = array<i64: 32, 32>}, {pipeline_mode = #tpu.pipeline_mode<synchronous>, transform_indices = @transform_2, window_bounds = array<i64: 1, 32>}, {pipeline_mode = #tpu.pipeline_mode<synchronous>, transform_indices = @transform_3, window_bounds = array<i64: 1, 32, 66>}, {pipeline_mode = #tpu.pipeline_mode<synchronous>, transform_indices = @transform_4, window_bounds = array<i64: 1, 1, 66>}, {pipeline_mode = #tpu.pipeline_mode<synchronous>, transform_indices = @transform_5, window_bounds = array<i64: 2, 32, 66>}, {pipeline_mode = #tpu.pipeline_mode<synchronous>, transform_indices = @transform_6, window_bounds = array<i64: 2, 1, 66>}, {pipeline_mode = #tpu.pipeline_mode<synchronous>, transform_indices = @transform_7, window_bounds = array<i64: 4, 32, 66>}, {pipeline_mode = #tpu.pipeline_mode<synchronous>, transform_indices = @transform_8, window_bounds = array<i64: 4, 1, 66>}, {pipeline_mode = #tpu.pipeline_mode<synchronous>, transform_indices = @transform_9, window_bounds = array<i64: 8, 32, 66>}, {pipeline_mode = #tpu.pipeline_mode<synchronous>, transform_indices = @transform_10, window_bounds = array<i64: 8, 1, 66>}, {pipeline_mode = #tpu.pipeline_mode<synchronous>, transform_indices = @transform_11, window_bounds = array<i64: 16, 32, 1>}, {pipeline_mode = #tpu.pipeline_mode<synchronous>, transform_indices = @transform_12, window_bounds = array<i64: 1, 16>}, {transform_indices = @transform_13, window_bounds = array<i64: 2, 128>}]} {
    %c0 = arith.constant 0 : index
    %c0_0 = arith.constant 0 : index
    %0 = vector.load %arg1[%c0, %c0_0] : memref<2x32xf32, #tpu.memory_space<vmem>>, vector<2x32xf32>
    %1 = arith.truncf %0 : vector<2x32xf32> to vector<2x32xbf16>
    %c0_1 = arith.constant 0 : index
    %c0_2 = arith.constant 0 : index
    %2 = vector.load %arg2[%c0_1, %c0_2] : memref<32x32xbf16, #tpu.memory_space<vmem>>, vector<32x32xbf16>
    %cst = arith.constant dense<0.000000e+00> : vector<2x32xf32>
    %3 = tpu.matmul %1, %2, %cst {dimension_numbers = #tpu.dot_dimension_numbers<[1], [0], [0], [1], [0, 0, 1, 1], [], []>} : vector<2x32xbf16>, vector<32x32xbf16>, vector<2x32xf32> -> vector<2x32xf32>
    %c0_3 = arith.constant 0 : index
    %c0_4 = arith.constant 0 : index
    %4 = vector.load %arg3[%c0_3, %c0_4] : memref<1x32xf32, #tpu.memory_space<vmem>>, vector<1x32xf32>
    %5 = vector.broadcast %4 : vector<1x32xf32> to vector<2x32xf32>
    %6 = arith.addf %3, %5 : vector<2x32xf32>
    %cst_5 = arith.constant 0.000000e+00 : f32
    %7 = vector.broadcast %cst_5 : f32 to vector<2x32xf32>
    %8 = arith.maximumf %6, %7 : vector<2x32xf32>
    %9 = arith.truncf %8 : vector<2x32xf32> to vector<2x32xbf16>
    %cst_6 = arith.constant 0.000000e+00 : f32
    %10 = vector.broadcast %cst_6 : f32 to vector<2x1xf32>
    %c0_7 = arith.constant 0 : index
    %c0_8 = arith.constant 0 : index
    %c0_9 = arith.constant 0 : index
    %11 = vector.load %arg4[%c0_7, %c0_8, %c0_9] : memref<1x32x66xbf16, #tpu.memory_space<vmem>>, vector<1x32x66xbf16>
    %12 = vector.shape_cast %11 : vector<1x32x66xbf16> to vector<32x66xbf16>
    %cst_10 = arith.constant dense<0.000000e+00> : vector<2x66xf32>
    %13 = tpu.matmul %9, %12, %cst_10 {dimension_numbers = #tpu.dot_dimension_numbers<[1], [0], [0], [1], [0, 0, 1, 1], [], []>} : vector<2x32xbf16>, vector<32x66xbf16>, vector<2x66xf32> -> vector<2x66xf32>
    %c0_11 = arith.constant 0 : index
    %c0_12 = arith.constant 0 : index
    %c0_13 = arith.constant 0 : index
    %14 = vector.load %arg5[%c0_11, %c0_12, %c0_13] : memref<1x1x66xf32, #tpu.memory_space<vmem>>, vector<1x1x66xf32>
    %15 = vector.shape_cast %14 : vector<1x1x66xf32> to vector<1x66xf32>
    %16 = vector.broadcast %15 : vector<1x66xf32> to vector<2x66xf32>
    %17 = arith.addf %13, %16 : vector<2x66xf32>
    %18 = vector.extract_strided_slice %17 {offsets = [0, 0], sizes = [2, 64], strides = [1, 1]} : vector<2x66xf32> to vector<2x64xf32>
    %cst_14 = arith.constant 0.000000e+00 : f32
    %19 = vector.broadcast %cst_14 : f32 to vector<2x64xf32>
    %20 = arith.maximumf %18, %19 : vector<2x64xf32>
    %21 = arith.truncf %20 : vector<2x64xf32> to vector<2x64xbf16>
    %22 = vector.extract_strided_slice %17 {offsets = [0, 64], sizes = [2, 2], strides = [1, 1]} : vector<2x66xf32> to vector<2x2xf32>
    %23 = vector.extract_strided_slice %22 {offsets = [0, 1], sizes = [2, 1], strides = [1, 1]} : vector<2x2xf32> to vector<2x1xf32>
    %24 = vector.extract_strided_slice %22 {offsets = [0, 0], sizes = [2, 1], strides = [1, 1]} : vector<2x2xf32> to vector<2x1xf32>
    %25 = arith.subf %23, %24 : vector<2x1xf32>
    %cst_15 = arith.constant 0.000000e+00 : f32
    %26 = vector.broadcast %cst_15 : f32 to vector<2x1xf32>
    %27 = arith.maximumf %25, %26 : vector<2x1xf32>
    %28 = math.absf %25 : vector<2x1xf32>
    %cst_16 = arith.constant 0.000000e+00 : f32
    %29 = vector.broadcast %cst_16 : f32 to vector<2x1xf32>
    %30 = arith.subf %29, %28 : vector<2x1xf32>
    %31 = math.exp %30 : vector<2x1xf32>
    %cst_17 = arith.constant 1.000000e+00 : f32
    %32 = vector.broadcast %cst_17 : f32 to vector<2x1xf32>
    %33 = arith.addf %32, %31 : vector<2x1xf32>
    %34 = math.log %33 : vector<2x1xf32>
    %35 = arith.addf %27, %34 : vector<2x1xf32>
    %36 = arith.subf %10, %35 : vector<2x1xf32>
    %cst_18 = arith.constant 0.000000e+00 : f32
    %37 = vector.broadcast %cst_18 : f32 to vector<2x1xf32>
    %38 = arith.subf %37, %25 : vector<2x1xf32>
    %cst_19 = arith.constant 0.000000e+00 : f32
    %39 = vector.broadcast %cst_19 : f32 to vector<2x1xf32>
    %40 = arith.maximumf %38, %39 : vector<2x1xf32>
    %41 = math.absf %38 : vector<2x1xf32>
    %cst_20 = arith.constant 0.000000e+00 : f32
    %42 = vector.broadcast %cst_20 : f32 to vector<2x1xf32>
    %43 = arith.subf %42, %41 : vector<2x1xf32>
    %44 = math.exp %43 : vector<2x1xf32>
    %cst_21 = arith.constant 1.000000e+00 : f32
    %45 = vector.broadcast %cst_21 : f32 to vector<2x1xf32>
    %46 = arith.addf %45, %44 : vector<2x1xf32>
    %47 = math.log %46 : vector<2x1xf32>
    %48 = arith.addf %40, %47 : vector<2x1xf32>
    %49 = arith.subf %10, %48 : vector<2x1xf32>
    %50 = tpu.concatenate %36, %49 in 1 : vector<2x1xf32>, vector<2x1xf32> -> vector<2x2xf32>
    %51 = vector.extract_strided_slice %21 {offsets = [0, 0], sizes = [2, 32], strides = [1, 1]} : vector<2x64xbf16> to vector<2x32xbf16>
    %52 = vector.extract_strided_slice %21 {offsets = [0, 32], sizes = [2, 32], strides = [1, 1]} : vector<2x64xbf16> to vector<2x32xbf16>
    %c0_22 = arith.constant 0 : index
    %c0_23 = arith.constant 0 : index
    %c0_24 = arith.constant 0 : index
    %53 = vector.load %arg6[%c0_22, %c0_23, %c0_24] : memref<2x32x66xbf16, #tpu.memory_space<vmem>>, vector<1x32x66xbf16>
    %54 = vector.shape_cast %53 : vector<1x32x66xbf16> to vector<32x66xbf16>
    %cst_25 = arith.constant dense<0.000000e+00> : vector<2x66xf32>
    %55 = tpu.matmul %51, %54, %cst_25 {dimension_numbers = #tpu.dot_dimension_numbers<[1], [0], [0], [1], [0, 0, 1, 1], [], []>} : vector<2x32xbf16>, vector<32x66xbf16>, vector<2x66xf32> -> vector<2x66xf32>
    %c0_26 = arith.constant 0 : index
    %c0_27 = arith.constant 0 : index
    %c0_28 = arith.constant 0 : index
    %56 = vector.load %arg7[%c0_26, %c0_27, %c0_28] : memref<2x1x66xf32, #tpu.memory_space<vmem>>, vector<1x1x66xf32>
    %57 = vector.shape_cast %56 : vector<1x1x66xf32> to vector<1x66xf32>
    %58 = vector.broadcast %57 : vector<1x66xf32> to vector<2x66xf32>
    %59 = arith.addf %55, %58 : vector<2x66xf32>
    %60 = vector.extract_strided_slice %59 {offsets = [0, 0], sizes = [2, 64], strides = [1, 1]} : vector<2x66xf32> to vector<2x64xf32>
    %cst_29 = arith.constant 0.000000e+00 : f32
    %61 = vector.broadcast %cst_29 : f32 to vector<2x64xf32>
    %62 = arith.maximumf %60, %61 : vector<2x64xf32>
    %63 = arith.truncf %62 : vector<2x64xf32> to vector<2x64xbf16>
    %64 = vector.extract_strided_slice %59 {offsets = [0, 64], sizes = [2, 2], strides = [1, 1]} : vector<2x66xf32> to vector<2x2xf32>
    %65 = vector.extract_strided_slice %64 {offsets = [0, 1], sizes = [2, 1], strides = [1, 1]} : vector<2x2xf32> to vector<2x1xf32>
    %66 = vector.extract_strided_slice %64 {offsets = [0, 0], sizes = [2, 1], strides = [1, 1]} : vector<2x2xf32> to vector<2x1xf32>
    %67 = arith.subf %65, %66 : vector<2x1xf32>
    %cst_30 = arith.constant 0.000000e+00 : f32
    %68 = vector.broadcast %cst_30 : f32 to vector<2x1xf32>
    %69 = arith.maximumf %67, %68 : vector<2x1xf32>
    %70 = math.absf %67 : vector<2x1xf32>
    %cst_31 = arith.constant 0.000000e+00 : f32
    %71 = vector.broadcast %cst_31 : f32 to vector<2x1xf32>
    %72 = arith.subf %71, %70 : vector<2x1xf32>
    %73 = math.exp %72 : vector<2x1xf32>
    %cst_32 = arith.constant 1.000000e+00 : f32
    %74 = vector.broadcast %cst_32 : f32 to vector<2x1xf32>
    %75 = arith.addf %74, %73 : vector<2x1xf32>
    %76 = math.log %75 : vector<2x1xf32>
    %77 = arith.addf %69, %76 : vector<2x1xf32>
    %78 = arith.subf %36, %77 : vector<2x1xf32>
    %cst_33 = arith.constant 0.000000e+00 : f32
    %79 = vector.broadcast %cst_33 : f32 to vector<2x1xf32>
    %80 = arith.subf %79, %67 : vector<2x1xf32>
    %cst_34 = arith.constant 0.000000e+00 : f32
    %81 = vector.broadcast %cst_34 : f32 to vector<2x1xf32>
    %82 = arith.maximumf %80, %81 : vector<2x1xf32>
    %83 = math.absf %80 : vector<2x1xf32>
    %cst_35 = arith.constant 0.000000e+00 : f32
    %84 = vector.broadcast %cst_35 : f32 to vector<2x1xf32>
    %85 = arith.subf %84, %83 : vector<2x1xf32>
    %86 = math.exp %85 : vector<2x1xf32>
    %cst_36 = arith.constant 1.000000e+00 : f32
    %87 = vector.broadcast %cst_36 : f32 to vector<2x1xf32>
    %88 = arith.addf %87, %86 : vector<2x1xf32>
    %89 = math.log %88 : vector<2x1xf32>
    %90 = arith.addf %82, %89 : vector<2x1xf32>
    %91 = arith.subf %36, %90 : vector<2x1xf32>
    %92 = tpu.concatenate %78, %91 in 1 : vector<2x1xf32>, vector<2x1xf32> -> vector<2x2xf32>
    %93 = vector.extract_strided_slice %63 {offsets = [0, 0], sizes = [2, 32], strides = [1, 1]} : vector<2x64xbf16> to vector<2x32xbf16>
    %94 = vector.extract_strided_slice %63 {offsets = [0, 32], sizes = [2, 32], strides = [1, 1]} : vector<2x64xbf16> to vector<2x32xbf16>
    %c1 = arith.constant 1 : index
    %c0_37 = arith.constant 0 : index
    %c0_38 = arith.constant 0 : index
    %95 = vector.load %arg6[%c1, %c0_37, %c0_38] : memref<2x32x66xbf16, #tpu.memory_space<vmem>>, vector<1x32x66xbf16>
    %96 = vector.shape_cast %95 : vector<1x32x66xbf16> to vector<32x66xbf16>
    %cst_39 = arith.constant dense<0.000000e+00> : vector<2x66xf32>
    %97 = tpu.matmul %52, %96, %cst_39 {dimension_numbers = #tpu.dot_dimension_numbers<[1], [0], [0], [1], [0, 0, 1, 1], [], []>} : vector<2x32xbf16>, vector<32x66xbf16>, vector<2x66xf32> -> vector<2x66xf32>
    %c1_40 = arith.constant 1 : index
    %c0_41 = arith.constant 0 : index
    %c0_42 = arith.constant 0 : index
    %98 = vector.load %arg7[%c1_40, %c0_41, %c0_42] : memref<2x1x66xf32, #tpu.memory_space<vmem>>, vector<1x1x66xf32>
    %99 = vector.shape_cast %98 : vector<1x1x66xf32> to vector<1x66xf32>
    %100 = vector.broadcast %99 : vector<1x66xf32> to vector<2x66xf32>
    %101 = arith.addf %97, %100 : vector<2x66xf32>
    %102 = vector.extract_strided_slice %101 {offsets = [0, 0], sizes = [2, 64], strides = [1, 1]} : vector<2x66xf32> to vector<2x64xf32>
    %cst_43 = arith.constant 0.000000e+00 : f32
    %103 = vector.broadcast %cst_43 : f32 to vector<2x64xf32>
    %104 = arith.maximumf %102, %103 : vector<2x64xf32>
    %105 = arith.truncf %104 : vector<2x64xf32> to vector<2x64xbf16>
    %106 = vector.extract_strided_slice %101 {offsets = [0, 64], sizes = [2, 2], strides = [1, 1]} : vector<2x66xf32> to vector<2x2xf32>
    %107 = vector.extract_strided_slice %106 {offsets = [0, 1], sizes = [2, 1], strides = [1, 1]} : vector<2x2xf32> to vector<2x1xf32>
    %108 = vector.extract_strided_slice %106 {offsets = [0, 0], sizes = [2, 1], strides = [1, 1]} : vector<2x2xf32> to vector<2x1xf32>
    %109 = arith.subf %107, %108 : vector<2x1xf32>
    %cst_44 = arith.constant 0.000000e+00 : f32
    %110 = vector.broadcast %cst_44 : f32 to vector<2x1xf32>
    %111 = arith.maximumf %109, %110 : vector<2x1xf32>
    %112 = math.absf %109 : vector<2x1xf32>
    %cst_45 = arith.constant 0.000000e+00 : f32
    %113 = vector.broadcast %cst_45 : f32 to vector<2x1xf32>
    %114 = arith.subf %113, %112 : vector<2x1xf32>
    %115 = math.exp %114 : vector<2x1xf32>
    %cst_46 = arith.constant 1.000000e+00 : f32
    %116 = vector.broadcast %cst_46 : f32 to vector<2x1xf32>
    %117 = arith.addf %116, %115 : vector<2x1xf32>
    %118 = math.log %117 : vector<2x1xf32>
    %119 = arith.addf %111, %118 : vector<2x1xf32>
    %120 = arith.subf %49, %119 : vector<2x1xf32>
    %cst_47 = arith.constant 0.000000e+00 : f32
    %121 = vector.broadcast %cst_47 : f32 to vector<2x1xf32>
    %122 = arith.subf %121, %109 : vector<2x1xf32>
    %cst_48 = arith.constant 0.000000e+00 : f32
    %123 = vector.broadcast %cst_48 : f32 to vector<2x1xf32>
    %124 = arith.maximumf %122, %123 : vector<2x1xf32>
    %125 = math.absf %122 : vector<2x1xf32>
    %cst_49 = arith.constant 0.000000e+00 : f32
    %126 = vector.broadcast %cst_49 : f32 to vector<2x1xf32>
    %127 = arith.subf %126, %125 : vector<2x1xf32>
    %128 = math.exp %127 : vector<2x1xf32>
    %cst_50 = arith.constant 1.000000e+00 : f32
    %129 = vector.broadcast %cst_50 : f32 to vector<2x1xf32>
    %130 = arith.addf %129, %128 : vector<2x1xf32>
    %131 = math.log %130 : vector<2x1xf32>
    %132 = arith.addf %124, %131 : vector<2x1xf32>
    %133 = arith.subf %49, %132 : vector<2x1xf32>
    %134 = tpu.concatenate %120, %133 in 1 : vector<2x1xf32>, vector<2x1xf32> -> vector<2x2xf32>
    %135 = vector.extract_strided_slice %105 {offsets = [0, 0], sizes = [2, 32], strides = [1, 1]} : vector<2x64xbf16> to vector<2x32xbf16>
    %136 = vector.extract_strided_slice %105 {offsets = [0, 32], sizes = [2, 32], strides = [1, 1]} : vector<2x64xbf16> to vector<2x32xbf16>
    %137 = tpu.concatenate %92, %134 in 1 : vector<2x2xf32>, vector<2x2xf32> -> vector<2x4xf32>
    %c0_51 = arith.constant 0 : index
    %c0_52 = arith.constant 0 : index
    %c0_53 = arith.constant 0 : index
    %138 = vector.load %arg8[%c0_51, %c0_52, %c0_53] : memref<4x32x66xbf16, #tpu.memory_space<vmem>>, vector<1x32x66xbf16>
    %139 = vector.shape_cast %138 : vector<1x32x66xbf16> to vector<32x66xbf16>
    %cst_54 = arith.constant dense<0.000000e+00> : vector<2x66xf32>
    %140 = tpu.matmul %93, %139, %cst_54 {dimension_numbers = #tpu.dot_dimension_numbers<[1], [0], [0], [1], [0, 0, 1, 1], [], []>} : vector<2x32xbf16>, vector<32x66xbf16>, vector<2x66xf32> -> vector<2x66xf32>
    %c0_55 = arith.constant 0 : index
    %c0_56 = arith.constant 0 : index
    %c0_57 = arith.constant 0 : index
    %141 = vector.load %arg9[%c0_55, %c0_56, %c0_57] : memref<4x1x66xf32, #tpu.memory_space<vmem>>, vector<1x1x66xf32>
    %142 = vector.shape_cast %141 : vector<1x1x66xf32> to vector<1x66xf32>
    %143 = vector.broadcast %142 : vector<1x66xf32> to vector<2x66xf32>
    %144 = arith.addf %140, %143 : vector<2x66xf32>
    %145 = vector.extract_strided_slice %144 {offsets = [0, 0], sizes = [2, 64], strides = [1, 1]} : vector<2x66xf32> to vector<2x64xf32>
    %cst_58 = arith.constant 0.000000e+00 : f32
    %146 = vector.broadcast %cst_58 : f32 to vector<2x64xf32>
    %147 = arith.maximumf %145, %146 : vector<2x64xf32>
    %148 = arith.truncf %147 : vector<2x64xf32> to vector<2x64xbf16>
    %149 = vector.extract_strided_slice %144 {offsets = [0, 64], sizes = [2, 2], strides = [1, 1]} : vector<2x66xf32> to vector<2x2xf32>
    %150 = vector.extract_strided_slice %149 {offsets = [0, 1], sizes = [2, 1], strides = [1, 1]} : vector<2x2xf32> to vector<2x1xf32>
    %151 = vector.extract_strided_slice %149 {offsets = [0, 0], sizes = [2, 1], strides = [1, 1]} : vector<2x2xf32> to vector<2x1xf32>
    %152 = arith.subf %150, %151 : vector<2x1xf32>
    %cst_59 = arith.constant 0.000000e+00 : f32
    %153 = vector.broadcast %cst_59 : f32 to vector<2x1xf32>
    %154 = arith.maximumf %152, %153 : vector<2x1xf32>
    %155 = math.absf %152 : vector<2x1xf32>
    %cst_60 = arith.constant 0.000000e+00 : f32
    %156 = vector.broadcast %cst_60 : f32 to vector<2x1xf32>
    %157 = arith.subf %156, %155 : vector<2x1xf32>
    %158 = math.exp %157 : vector<2x1xf32>
    %cst_61 = arith.constant 1.000000e+00 : f32
    %159 = vector.broadcast %cst_61 : f32 to vector<2x1xf32>
    %160 = arith.addf %159, %158 : vector<2x1xf32>
    %161 = math.log %160 : vector<2x1xf32>
    %162 = arith.addf %154, %161 : vector<2x1xf32>
    %163 = arith.subf %78, %162 : vector<2x1xf32>
    %cst_62 = arith.constant 0.000000e+00 : f32
    %164 = vector.broadcast %cst_62 : f32 to vector<2x1xf32>
    %165 = arith.subf %164, %152 : vector<2x1xf32>
    %cst_63 = arith.constant 0.000000e+00 : f32
    %166 = vector.broadcast %cst_63 : f32 to vector<2x1xf32>
    %167 = arith.maximumf %165, %166 : vector<2x1xf32>
    %168 = math.absf %165 : vector<2x1xf32>
    %cst_64 = arith.constant 0.000000e+00 : f32
    %169 = vector.broadcast %cst_64 : f32 to vector<2x1xf32>
    %170 = arith.subf %169, %168 : vector<2x1xf32>
    %171 = math.exp %170 : vector<2x1xf32>
    %cst_65 = arith.constant 1.000000e+00 : f32
    %172 = vector.broadcast %cst_65 : f32 to vector<2x1xf32>
    %173 = arith.addf %172, %171 : vector<2x1xf32>
    %174 = math.log %173 : vector<2x1xf32>
    %175 = arith.addf %167, %174 : vector<2x1xf32>
    %176 = arith.subf %78, %175 : vector<2x1xf32>
    %177 = tpu.concatenate %163, %176 in 1 : vector<2x1xf32>, vector<2x1xf32> -> vector<2x2xf32>
    %178 = vector.extract_strided_slice %148 {offsets = [0, 0], sizes = [2, 32], strides = [1, 1]} : vector<2x64xbf16> to vector<2x32xbf16>
    %179 = vector.extract_strided_slice %148 {offsets = [0, 32], sizes = [2, 32], strides = [1, 1]} : vector<2x64xbf16> to vector<2x32xbf16>
    %c1_66 = arith.constant 1 : index
    %c0_67 = arith.constant 0 : index
    %c0_68 = arith.constant 0 : index
    %180 = vector.load %arg8[%c1_66, %c0_67, %c0_68] : memref<4x32x66xbf16, #tpu.memory_space<vmem>>, vector<1x32x66xbf16>
    %181 = vector.shape_cast %180 : vector<1x32x66xbf16> to vector<32x66xbf16>
    %cst_69 = arith.constant dense<0.000000e+00> : vector<2x66xf32>
    %182 = tpu.matmul %94, %181, %cst_69 {dimension_numbers = #tpu.dot_dimension_numbers<[1], [0], [0], [1], [0, 0, 1, 1], [], []>} : vector<2x32xbf16>, vector<32x66xbf16>, vector<2x66xf32> -> vector<2x66xf32>
    %c1_70 = arith.constant 1 : index
    %c0_71 = arith.constant 0 : index
    %c0_72 = arith.constant 0 : index
    %183 = vector.load %arg9[%c1_70, %c0_71, %c0_72] : memref<4x1x66xf32, #tpu.memory_space<vmem>>, vector<1x1x66xf32>
    %184 = vector.shape_cast %183 : vector<1x1x66xf32> to vector<1x66xf32>
    %185 = vector.broadcast %184 : vector<1x66xf32> to vector<2x66xf32>
    %186 = arith.addf %182, %185 : vector<2x66xf32>
    %187 = vector.extract_strided_slice %186 {offsets = [0, 0], sizes = [2, 64], strides = [1, 1]} : vector<2x66xf32> to vector<2x64xf32>
    %cst_73 = arith.constant 0.000000e+00 : f32
    %188 = vector.broadcast %cst_73 : f32 to vector<2x64xf32>
    %189 = arith.maximumf %187, %188 : vector<2x64xf32>
    %190 = arith.truncf %189 : vector<2x64xf32> to vector<2x64xbf16>
    %191 = vector.extract_strided_slice %186 {offsets = [0, 64], sizes = [2, 2], strides = [1, 1]} : vector<2x66xf32> to vector<2x2xf32>
    %192 = vector.extract_strided_slice %191 {offsets = [0, 1], sizes = [2, 1], strides = [1, 1]} : vector<2x2xf32> to vector<2x1xf32>
    %193 = vector.extract_strided_slice %191 {offsets = [0, 0], sizes = [2, 1], strides = [1, 1]} : vector<2x2xf32> to vector<2x1xf32>
    %194 = arith.subf %192, %193 : vector<2x1xf32>
    %cst_74 = arith.constant 0.000000e+00 : f32
    %195 = vector.broadcast %cst_74 : f32 to vector<2x1xf32>
    %196 = arith.maximumf %194, %195 : vector<2x1xf32>
    %197 = math.absf %194 : vector<2x1xf32>
    %cst_75 = arith.constant 0.000000e+00 : f32
    %198 = vector.broadcast %cst_75 : f32 to vector<2x1xf32>
    %199 = arith.subf %198, %197 : vector<2x1xf32>
    %200 = math.exp %199 : vector<2x1xf32>
    %cst_76 = arith.constant 1.000000e+00 : f32
    %201 = vector.broadcast %cst_76 : f32 to vector<2x1xf32>
    %202 = arith.addf %201, %200 : vector<2x1xf32>
    %203 = math.log %202 : vector<2x1xf32>
    %204 = arith.addf %196, %203 : vector<2x1xf32>
    %205 = arith.subf %91, %204 : vector<2x1xf32>
    %cst_77 = arith.constant 0.000000e+00 : f32
    %206 = vector.broadcast %cst_77 : f32 to vector<2x1xf32>
    %207 = arith.subf %206, %194 : vector<2x1xf32>
    %cst_78 = arith.constant 0.000000e+00 : f32
    %208 = vector.broadcast %cst_78 : f32 to vector<2x1xf32>
    %209 = arith.maximumf %207, %208 : vector<2x1xf32>
    %210 = math.absf %207 : vector<2x1xf32>
    %cst_79 = arith.constant 0.000000e+00 : f32
    %211 = vector.broadcast %cst_79 : f32 to vector<2x1xf32>
    %212 = arith.subf %211, %210 : vector<2x1xf32>
    %213 = math.exp %212 : vector<2x1xf32>
    %cst_80 = arith.constant 1.000000e+00 : f32
    %214 = vector.broadcast %cst_80 : f32 to vector<2x1xf32>
    %215 = arith.addf %214, %213 : vector<2x1xf32>
    %216 = math.log %215 : vector<2x1xf32>
    %217 = arith.addf %209, %216 : vector<2x1xf32>
    %218 = arith.subf %91, %217 : vector<2x1xf32>
    %219 = tpu.concatenate %205, %218 in 1 : vector<2x1xf32>, vector<2x1xf32> -> vector<2x2xf32>
    %220 = vector.extract_strided_slice %190 {offsets = [0, 0], sizes = [2, 32], strides = [1, 1]} : vector<2x64xbf16> to vector<2x32xbf16>
    %221 = vector.extract_strided_slice %190 {offsets = [0, 32], sizes = [2, 32], strides = [1, 1]} : vector<2x64xbf16> to vector<2x32xbf16>
    %c2 = arith.constant 2 : index
    %c0_81 = arith.constant 0 : index
    %c0_82 = arith.constant 0 : index
    %222 = vector.load %arg8[%c2, %c0_81, %c0_82] : memref<4x32x66xbf16, #tpu.memory_space<vmem>>, vector<1x32x66xbf16>
    %223 = vector.shape_cast %222 : vector<1x32x66xbf16> to vector<32x66xbf16>
    %cst_83 = arith.constant dense<0.000000e+00> : vector<2x66xf32>
    %224 = tpu.matmul %135, %223, %cst_83 {dimension_numbers = #tpu.dot_dimension_numbers<[1], [0], [0], [1], [0, 0, 1, 1], [], []>} : vector<2x32xbf16>, vector<32x66xbf16>, vector<2x66xf32> -> vector<2x66xf32>
    %c2_84 = arith.constant 2 : index
    %c0_85 = arith.constant 0 : index
    %c0_86 = arith.constant 0 : index
    %225 = vector.load %arg9[%c2_84, %c0_85, %c0_86] : memref<4x1x66xf32, #tpu.memory_space<vmem>>, vector<1x1x66xf32>
    %226 = vector.shape_cast %225 : vector<1x1x66xf32> to vector<1x66xf32>
    %227 = vector.broadcast %226 : vector<1x66xf32> to vector<2x66xf32>
    %228 = arith.addf %224, %227 : vector<2x66xf32>
    %229 = vector.extract_strided_slice %228 {offsets = [0, 0], sizes = [2, 64], strides = [1, 1]} : vector<2x66xf32> to vector<2x64xf32>
    %cst_87 = arith.constant 0.000000e+00 : f32
    %230 = vector.broadcast %cst_87 : f32 to vector<2x64xf32>
    %231 = arith.maximumf %229, %230 : vector<2x64xf32>
    %232 = arith.truncf %231 : vector<2x64xf32> to vector<2x64xbf16>
    %233 = vector.extract_strided_slice %228 {offsets = [0, 64], sizes = [2, 2], strides = [1, 1]} : vector<2x66xf32> to vector<2x2xf32>
    %234 = vector.extract_strided_slice %233 {offsets = [0, 1], sizes = [2, 1], strides = [1, 1]} : vector<2x2xf32> to vector<2x1xf32>
    %235 = vector.extract_strided_slice %233 {offsets = [0, 0], sizes = [2, 1], strides = [1, 1]} : vector<2x2xf32> to vector<2x1xf32>
    %236 = arith.subf %234, %235 : vector<2x1xf32>
    %cst_88 = arith.constant 0.000000e+00 : f32
    %237 = vector.broadcast %cst_88 : f32 to vector<2x1xf32>
    %238 = arith.maximumf %236, %237 : vector<2x1xf32>
    %239 = math.absf %236 : vector<2x1xf32>
    %cst_89 = arith.constant 0.000000e+00 : f32
    %240 = vector.broadcast %cst_89 : f32 to vector<2x1xf32>
    %241 = arith.subf %240, %239 : vector<2x1xf32>
    %242 = math.exp %241 : vector<2x1xf32>
    %cst_90 = arith.constant 1.000000e+00 : f32
    %243 = vector.broadcast %cst_90 : f32 to vector<2x1xf32>
    %244 = arith.addf %243, %242 : vector<2x1xf32>
    %245 = math.log %244 : vector<2x1xf32>
    %246 = arith.addf %238, %245 : vector<2x1xf32>
    %247 = arith.subf %120, %246 : vector<2x1xf32>
    %cst_91 = arith.constant 0.000000e+00 : f32
    %248 = vector.broadcast %cst_91 : f32 to vector<2x1xf32>
    %249 = arith.subf %248, %236 : vector<2x1xf32>
    %cst_92 = arith.constant 0.000000e+00 : f32
    %250 = vector.broadcast %cst_92 : f32 to vector<2x1xf32>
    %251 = arith.maximumf %249, %250 : vector<2x1xf32>
    %252 = math.absf %249 : vector<2x1xf32>
    %cst_93 = arith.constant 0.000000e+00 : f32
    %253 = vector.broadcast %cst_93 : f32 to vector<2x1xf32>
    %254 = arith.subf %253, %252 : vector<2x1xf32>
    %255 = math.exp %254 : vector<2x1xf32>
    %cst_94 = arith.constant 1.000000e+00 : f32
    %256 = vector.broadcast %cst_94 : f32 to vector<2x1xf32>
    %257 = arith.addf %256, %255 : vector<2x1xf32>
    %258 = math.log %257 : vector<2x1xf32>
    %259 = arith.addf %251, %258 : vector<2x1xf32>
    %260 = arith.subf %120, %259 : vector<2x1xf32>
    %261 = tpu.concatenate %247, %260 in 1 : vector<2x1xf32>, vector<2x1xf32> -> vector<2x2xf32>
    %262 = vector.extract_strided_slice %232 {offsets = [0, 0], sizes = [2, 32], strides = [1, 1]} : vector<2x64xbf16> to vector<2x32xbf16>
    %263 = vector.extract_strided_slice %232 {offsets = [0, 32], sizes = [2, 32], strides = [1, 1]} : vector<2x64xbf16> to vector<2x32xbf16>
    %c3 = arith.constant 3 : index
    %c0_95 = arith.constant 0 : index
    %c0_96 = arith.constant 0 : index
    %264 = vector.load %arg8[%c3, %c0_95, %c0_96] : memref<4x32x66xbf16, #tpu.memory_space<vmem>>, vector<1x32x66xbf16>
    %265 = vector.shape_cast %264 : vector<1x32x66xbf16> to vector<32x66xbf16>
    %cst_97 = arith.constant dense<0.000000e+00> : vector<2x66xf32>
    %266 = tpu.matmul %136, %265, %cst_97 {dimension_numbers = #tpu.dot_dimension_numbers<[1], [0], [0], [1], [0, 0, 1, 1], [], []>} : vector<2x32xbf16>, vector<32x66xbf16>, vector<2x66xf32> -> vector<2x66xf32>
    %c3_98 = arith.constant 3 : index
    %c0_99 = arith.constant 0 : index
    %c0_100 = arith.constant 0 : index
    %267 = vector.load %arg9[%c3_98, %c0_99, %c0_100] : memref<4x1x66xf32, #tpu.memory_space<vmem>>, vector<1x1x66xf32>
    %268 = vector.shape_cast %267 : vector<1x1x66xf32> to vector<1x66xf32>
    %269 = vector.broadcast %268 : vector<1x66xf32> to vector<2x66xf32>
    %270 = arith.addf %266, %269 : vector<2x66xf32>
    %271 = vector.extract_strided_slice %270 {offsets = [0, 0], sizes = [2, 64], strides = [1, 1]} : vector<2x66xf32> to vector<2x64xf32>
    %cst_101 = arith.constant 0.000000e+00 : f32
    %272 = vector.broadcast %cst_101 : f32 to vector<2x64xf32>
    %273 = arith.maximumf %271, %272 : vector<2x64xf32>
    %274 = arith.truncf %273 : vector<2x64xf32> to vector<2x64xbf16>
    %275 = vector.extract_strided_slice %270 {offsets = [0, 64], sizes = [2, 2], strides = [1, 1]} : vector<2x66xf32> to vector<2x2xf32>
    %276 = vector.extract_strided_slice %275 {offsets = [0, 1], sizes = [2, 1], strides = [1, 1]} : vector<2x2xf32> to vector<2x1xf32>
    %277 = vector.extract_strided_slice %275 {offsets = [0, 0], sizes = [2, 1], strides = [1, 1]} : vector<2x2xf32> to vector<2x1xf32>
    %278 = arith.subf %276, %277 : vector<2x1xf32>
    %cst_102 = arith.constant 0.000000e+00 : f32
    %279 = vector.broadcast %cst_102 : f32 to vector<2x1xf32>
    %280 = arith.maximumf %278, %279 : vector<2x1xf32>
    %281 = math.absf %278 : vector<2x1xf32>
    %cst_103 = arith.constant 0.000000e+00 : f32
    %282 = vector.broadcast %cst_103 : f32 to vector<2x1xf32>
    %283 = arith.subf %282, %281 : vector<2x1xf32>
    %284 = math.exp %283 : vector<2x1xf32>
    %cst_104 = arith.constant 1.000000e+00 : f32
    %285 = vector.broadcast %cst_104 : f32 to vector<2x1xf32>
    %286 = arith.addf %285, %284 : vector<2x1xf32>
    %287 = math.log %286 : vector<2x1xf32>
    %288 = arith.addf %280, %287 : vector<2x1xf32>
    %289 = arith.subf %133, %288 : vector<2x1xf32>
    %cst_105 = arith.constant 0.000000e+00 : f32
    %290 = vector.broadcast %cst_105 : f32 to vector<2x1xf32>
    %291 = arith.subf %290, %278 : vector<2x1xf32>
    %cst_106 = arith.constant 0.000000e+00 : f32
    %292 = vector.broadcast %cst_106 : f32 to vector<2x1xf32>
    %293 = arith.maximumf %291, %292 : vector<2x1xf32>
    %294 = math.absf %291 : vector<2x1xf32>
    %cst_107 = arith.constant 0.000000e+00 : f32
    %295 = vector.broadcast %cst_107 : f32 to vector<2x1xf32>
    %296 = arith.subf %295, %294 : vector<2x1xf32>
    %297 = math.exp %296 : vector<2x1xf32>
    %cst_108 = arith.constant 1.000000e+00 : f32
    %298 = vector.broadcast %cst_108 : f32 to vector<2x1xf32>
    %299 = arith.addf %298, %297 : vector<2x1xf32>
    %300 = math.log %299 : vector<2x1xf32>
    %301 = arith.addf %293, %300 : vector<2x1xf32>
    %302 = arith.subf %133, %301 : vector<2x1xf32>
    %303 = tpu.concatenate %289, %302 in 1 : vector<2x1xf32>, vector<2x1xf32> -> vector<2x2xf32>
    %304 = vector.extract_strided_slice %274 {offsets = [0, 0], sizes = [2, 32], strides = [1, 1]} : vector<2x64xbf16> to vector<2x32xbf16>
    %305 = vector.extract_strided_slice %274 {offsets = [0, 32], sizes = [2, 32], strides = [1, 1]} : vector<2x64xbf16> to vector<2x32xbf16>
    %306 = tpu.concatenate %177, %219, %261, %303 in 1 : vector<2x2xf32>, vector<2x2xf32>, vector<2x2xf32>, vector<2x2xf32> -> vector<2x8xf32>
    %c0_109 = arith.constant 0 : index
    %c0_110 = arith.constant 0 : index
    %c0_111 = arith.constant 0 : index
    %307 = vector.load %arg10[%c0_109, %c0_110, %c0_111] : memref<8x32x66xbf16, #tpu.memory_space<vmem>>, vector<1x32x66xbf16>
    %308 = vector.shape_cast %307 : vector<1x32x66xbf16> to vector<32x66xbf16>
    %cst_112 = arith.constant dense<0.000000e+00> : vector<2x66xf32>
    %309 = tpu.matmul %178, %308, %cst_112 {dimension_numbers = #tpu.dot_dimension_numbers<[1], [0], [0], [1], [0, 0, 1, 1], [], []>} : vector<2x32xbf16>, vector<32x66xbf16>, vector<2x66xf32> -> vector<2x66xf32>
    %c0_113 = arith.constant 0 : index
    %c0_114 = arith.constant 0 : index
    %c0_115 = arith.constant 0 : index
    %310 = vector.load %arg11[%c0_113, %c0_114, %c0_115] : memref<8x1x66xf32, #tpu.memory_space<vmem>>, vector<1x1x66xf32>
    %311 = vector.shape_cast %310 : vector<1x1x66xf32> to vector<1x66xf32>
    %312 = vector.broadcast %311 : vector<1x66xf32> to vector<2x66xf32>
    %313 = arith.addf %309, %312 : vector<2x66xf32>
    %314 = vector.extract_strided_slice %313 {offsets = [0, 0], sizes = [2, 64], strides = [1, 1]} : vector<2x66xf32> to vector<2x64xf32>
    %cst_116 = arith.constant 0.000000e+00 : f32
    %315 = vector.broadcast %cst_116 : f32 to vector<2x64xf32>
    %316 = arith.maximumf %314, %315 : vector<2x64xf32>
    %317 = arith.truncf %316 : vector<2x64xf32> to vector<2x64xbf16>
    %318 = vector.extract_strided_slice %313 {offsets = [0, 64], sizes = [2, 2], strides = [1, 1]} : vector<2x66xf32> to vector<2x2xf32>
    %319 = vector.extract_strided_slice %318 {offsets = [0, 1], sizes = [2, 1], strides = [1, 1]} : vector<2x2xf32> to vector<2x1xf32>
    %320 = vector.extract_strided_slice %318 {offsets = [0, 0], sizes = [2, 1], strides = [1, 1]} : vector<2x2xf32> to vector<2x1xf32>
    %321 = arith.subf %319, %320 : vector<2x1xf32>
    %cst_117 = arith.constant 0.000000e+00 : f32
    %322 = vector.broadcast %cst_117 : f32 to vector<2x1xf32>
    %323 = arith.maximumf %321, %322 : vector<2x1xf32>
    %324 = math.absf %321 : vector<2x1xf32>
    %cst_118 = arith.constant 0.000000e+00 : f32
    %325 = vector.broadcast %cst_118 : f32 to vector<2x1xf32>
    %326 = arith.subf %325, %324 : vector<2x1xf32>
    %327 = math.exp %326 : vector<2x1xf32>
    %cst_119 = arith.constant 1.000000e+00 : f32
    %328 = vector.broadcast %cst_119 : f32 to vector<2x1xf32>
    %329 = arith.addf %328, %327 : vector<2x1xf32>
    %330 = math.log %329 : vector<2x1xf32>
    %331 = arith.addf %323, %330 : vector<2x1xf32>
    %332 = arith.subf %163, %331 : vector<2x1xf32>
    %cst_120 = arith.constant 0.000000e+00 : f32
    %333 = vector.broadcast %cst_120 : f32 to vector<2x1xf32>
    %334 = arith.subf %333, %321 : vector<2x1xf32>
    %cst_121 = arith.constant 0.000000e+00 : f32
    %335 = vector.broadcast %cst_121 : f32 to vector<2x1xf32>
    %336 = arith.maximumf %334, %335 : vector<2x1xf32>
    %337 = math.absf %334 : vector<2x1xf32>
    %cst_122 = arith.constant 0.000000e+00 : f32
    %338 = vector.broadcast %cst_122 : f32 to vector<2x1xf32>
    %339 = arith.subf %338, %337 : vector<2x1xf32>
    %340 = math.exp %339 : vector<2x1xf32>
    %cst_123 = arith.constant 1.000000e+00 : f32
    %341 = vector.broadcast %cst_123 : f32 to vector<2x1xf32>
    %342 = arith.addf %341, %340 : vector<2x1xf32>
    %343 = math.log %342 : vector<2x1xf32>
    %344 = arith.addf %336, %343 : vector<2x1xf32>
    %345 = arith.subf %163, %344 : vector<2x1xf32>
    %346 = tpu.concatenate %332, %345 in 1 : vector<2x1xf32>, vector<2x1xf32> -> vector<2x2xf32>
    %347 = vector.extract_strided_slice %317 {offsets = [0, 0], sizes = [2, 32], strides = [1, 1]} : vector<2x64xbf16> to vector<2x32xbf16>
    %348 = vector.extract_strided_slice %317 {offsets = [0, 32], sizes = [2, 32], strides = [1, 1]} : vector<2x64xbf16> to vector<2x32xbf16>
    %c1_124 = arith.constant 1 : index
    %c0_125 = arith.constant 0 : index
    %c0_126 = arith.constant 0 : index
    %349 = vector.load %arg10[%c1_124, %c0_125, %c0_126] : memref<8x32x66xbf16, #tpu.memory_space<vmem>>, vector<1x32x66xbf16>
    %350 = vector.shape_cast %349 : vector<1x32x66xbf16> to vector<32x66xbf16>
    %cst_127 = arith.constant dense<0.000000e+00> : vector<2x66xf32>
    %351 = tpu.matmul %179, %350, %cst_127 {dimension_numbers = #tpu.dot_dimension_numbers<[1], [0], [0], [1], [0, 0, 1, 1], [], []>} : vector<2x32xbf16>, vector<32x66xbf16>, vector<2x66xf32> -> vector<2x66xf32>
    %c1_128 = arith.constant 1 : index
    %c0_129 = arith.constant 0 : index
    %c0_130 = arith.constant 0 : index
    %352 = vector.load %arg11[%c1_128, %c0_129, %c0_130] : memref<8x1x66xf32, #tpu.memory_space<vmem>>, vector<1x1x66xf32>
    %353 = vector.shape_cast %352 : vector<1x1x66xf32> to vector<1x66xf32>
    %354 = vector.broadcast %353 : vector<1x66xf32> to vector<2x66xf32>
    %355 = arith.addf %351, %354 : vector<2x66xf32>
    %356 = vector.extract_strided_slice %355 {offsets = [0, 0], sizes = [2, 64], strides = [1, 1]} : vector<2x66xf32> to vector<2x64xf32>
    %cst_131 = arith.constant 0.000000e+00 : f32
    %357 = vector.broadcast %cst_131 : f32 to vector<2x64xf32>
    %358 = arith.maximumf %356, %357 : vector<2x64xf32>
    %359 = arith.truncf %358 : vector<2x64xf32> to vector<2x64xbf16>
    %360 = vector.extract_strided_slice %355 {offsets = [0, 64], sizes = [2, 2], strides = [1, 1]} : vector<2x66xf32> to vector<2x2xf32>
    %361 = vector.extract_strided_slice %360 {offsets = [0, 1], sizes = [2, 1], strides = [1, 1]} : vector<2x2xf32> to vector<2x1xf32>
    %362 = vector.extract_strided_slice %360 {offsets = [0, 0], sizes = [2, 1], strides = [1, 1]} : vector<2x2xf32> to vector<2x1xf32>
    %363 = arith.subf %361, %362 : vector<2x1xf32>
    %cst_132 = arith.constant 0.000000e+00 : f32
    %364 = vector.broadcast %cst_132 : f32 to vector<2x1xf32>
    %365 = arith.maximumf %363, %364 : vector<2x1xf32>
    %366 = math.absf %363 : vector<2x1xf32>
    %cst_133 = arith.constant 0.000000e+00 : f32
    %367 = vector.broadcast %cst_133 : f32 to vector<2x1xf32>
    %368 = arith.subf %367, %366 : vector<2x1xf32>
    %369 = math.exp %368 : vector<2x1xf32>
    %cst_134 = arith.constant 1.000000e+00 : f32
    %370 = vector.broadcast %cst_134 : f32 to vector<2x1xf32>
    %371 = arith.addf %370, %369 : vector<2x1xf32>
    %372 = math.log %371 : vector<2x1xf32>
    %373 = arith.addf %365, %372 : vector<2x1xf32>
    %374 = arith.subf %176, %373 : vector<2x1xf32>
    %cst_135 = arith.constant 0.000000e+00 : f32
    %375 = vector.broadcast %cst_135 : f32 to vector<2x1xf32>
    %376 = arith.subf %375, %363 : vector<2x1xf32>
    %cst_136 = arith.constant 0.000000e+00 : f32
    %377 = vector.broadcast %cst_136 : f32 to vector<2x1xf32>
    %378 = arith.maximumf %376, %377 : vector<2x1xf32>
    %379 = math.absf %376 : vector<2x1xf32>
    %cst_137 = arith.constant 0.000000e+00 : f32
    %380 = vector.broadcast %cst_137 : f32 to vector<2x1xf32>
    %381 = arith.subf %380, %379 : vector<2x1xf32>
    %382 = math.exp %381 : vector<2x1xf32>
    %cst_138 = arith.constant 1.000000e+00 : f32
    %383 = vector.broadcast %cst_138 : f32 to vector<2x1xf32>
    %384 = arith.addf %383, %382 : vector<2x1xf32>
    %385 = math.log %384 : vector<2x1xf32>
    %386 = arith.addf %378, %385 : vector<2x1xf32>
    %387 = arith.subf %176, %386 : vector<2x1xf32>
    %388 = tpu.concatenate %374, %387 in 1 : vector<2x1xf32>, vector<2x1xf32> -> vector<2x2xf32>
    %389 = vector.extract_strided_slice %359 {offsets = [0, 0], sizes = [2, 32], strides = [1, 1]} : vector<2x64xbf16> to vector<2x32xbf16>
    %390 = vector.extract_strided_slice %359 {offsets = [0, 32], sizes = [2, 32], strides = [1, 1]} : vector<2x64xbf16> to vector<2x32xbf16>
    %c2_139 = arith.constant 2 : index
    %c0_140 = arith.constant 0 : index
    %c0_141 = arith.constant 0 : index
    %391 = vector.load %arg10[%c2_139, %c0_140, %c0_141] : memref<8x32x66xbf16, #tpu.memory_space<vmem>>, vector<1x32x66xbf16>
    %392 = vector.shape_cast %391 : vector<1x32x66xbf16> to vector<32x66xbf16>
    %cst_142 = arith.constant dense<0.000000e+00> : vector<2x66xf32>
    %393 = tpu.matmul %220, %392, %cst_142 {dimension_numbers = #tpu.dot_dimension_numbers<[1], [0], [0], [1], [0, 0, 1, 1], [], []>} : vector<2x32xbf16>, vector<32x66xbf16>, vector<2x66xf32> -> vector<2x66xf32>
    %c2_143 = arith.constant 2 : index
    %c0_144 = arith.constant 0 : index
    %c0_145 = arith.constant 0 : index
    %394 = vector.load %arg11[%c2_143, %c0_144, %c0_145] : memref<8x1x66xf32, #tpu.memory_space<vmem>>, vector<1x1x66xf32>
    %395 = vector.shape_cast %394 : vector<1x1x66xf32> to vector<1x66xf32>
    %396 = vector.broadcast %395 : vector<1x66xf32> to vector<2x66xf32>
    %397 = arith.addf %393, %396 : vector<2x66xf32>
    %398 = vector.extract_strided_slice %397 {offsets = [0, 0], sizes = [2, 64], strides = [1, 1]} : vector<2x66xf32> to vector<2x64xf32>
    %cst_146 = arith.constant 0.000000e+00 : f32
    %399 = vector.broadcast %cst_146 : f32 to vector<2x64xf32>
    %400 = arith.maximumf %398, %399 : vector<2x64xf32>
    %401 = arith.truncf %400 : vector<2x64xf32> to vector<2x64xbf16>
    %402 = vector.extract_strided_slice %397 {offsets = [0, 64], sizes = [2, 2], strides = [1, 1]} : vector<2x66xf32> to vector<2x2xf32>
    %403 = vector.extract_strided_slice %402 {offsets = [0, 1], sizes = [2, 1], strides = [1, 1]} : vector<2x2xf32> to vector<2x1xf32>
    %404 = vector.extract_strided_slice %402 {offsets = [0, 0], sizes = [2, 1], strides = [1, 1]} : vector<2x2xf32> to vector<2x1xf32>
    %405 = arith.subf %403, %404 : vector<2x1xf32>
    %cst_147 = arith.constant 0.000000e+00 : f32
    %406 = vector.broadcast %cst_147 : f32 to vector<2x1xf32>
    %407 = arith.maximumf %405, %406 : vector<2x1xf32>
    %408 = math.absf %405 : vector<2x1xf32>
    %cst_148 = arith.constant 0.000000e+00 : f32
    %409 = vector.broadcast %cst_148 : f32 to vector<2x1xf32>
    %410 = arith.subf %409, %408 : vector<2x1xf32>
    %411 = math.exp %410 : vector<2x1xf32>
    %cst_149 = arith.constant 1.000000e+00 : f32
    %412 = vector.broadcast %cst_149 : f32 to vector<2x1xf32>
    %413 = arith.addf %412, %411 : vector<2x1xf32>
    %414 = math.log %413 : vector<2x1xf32>
    %415 = arith.addf %407, %414 : vector<2x1xf32>
    %416 = arith.subf %205, %415 : vector<2x1xf32>
    %cst_150 = arith.constant 0.000000e+00 : f32
    %417 = vector.broadcast %cst_150 : f32 to vector<2x1xf32>
    %418 = arith.subf %417, %405 : vector<2x1xf32>
    %cst_151 = arith.constant 0.000000e+00 : f32
    %419 = vector.broadcast %cst_151 : f32 to vector<2x1xf32>
    %420 = arith.maximumf %418, %419 : vector<2x1xf32>
    %421 = math.absf %418 : vector<2x1xf32>
    %cst_152 = arith.constant 0.000000e+00 : f32
    %422 = vector.broadcast %cst_152 : f32 to vector<2x1xf32>
    %423 = arith.subf %422, %421 : vector<2x1xf32>
    %424 = math.exp %423 : vector<2x1xf32>
    %cst_153 = arith.constant 1.000000e+00 : f32
    %425 = vector.broadcast %cst_153 : f32 to vector<2x1xf32>
    %426 = arith.addf %425, %424 : vector<2x1xf32>
    %427 = math.log %426 : vector<2x1xf32>
    %428 = arith.addf %420, %427 : vector<2x1xf32>
    %429 = arith.subf %205, %428 : vector<2x1xf32>
    %430 = tpu.concatenate %416, %429 in 1 : vector<2x1xf32>, vector<2x1xf32> -> vector<2x2xf32>
    %431 = vector.extract_strided_slice %401 {offsets = [0, 0], sizes = [2, 32], strides = [1, 1]} : vector<2x64xbf16> to vector<2x32xbf16>
    %432 = vector.extract_strided_slice %401 {offsets = [0, 32], sizes = [2, 32], strides = [1, 1]} : vector<2x64xbf16> to vector<2x32xbf16>
    %c3_154 = arith.constant 3 : index
    %c0_155 = arith.constant 0 : index
    %c0_156 = arith.constant 0 : index
    %433 = vector.load %arg10[%c3_154, %c0_155, %c0_156] : memref<8x32x66xbf16, #tpu.memory_space<vmem>>, vector<1x32x66xbf16>
    %434 = vector.shape_cast %433 : vector<1x32x66xbf16> to vector<32x66xbf16>
    %cst_157 = arith.constant dense<0.000000e+00> : vector<2x66xf32>
    %435 = tpu.matmul %221, %434, %cst_157 {dimension_numbers = #tpu.dot_dimension_numbers<[1], [0], [0], [1], [0, 0, 1, 1], [], []>} : vector<2x32xbf16>, vector<32x66xbf16>, vector<2x66xf32> -> vector<2x66xf32>
    %c3_158 = arith.constant 3 : index
    %c0_159 = arith.constant 0 : index
    %c0_160 = arith.constant 0 : index
    %436 = vector.load %arg11[%c3_158, %c0_159, %c0_160] : memref<8x1x66xf32, #tpu.memory_space<vmem>>, vector<1x1x66xf32>
    %437 = vector.shape_cast %436 : vector<1x1x66xf32> to vector<1x66xf32>
    %438 = vector.broadcast %437 : vector<1x66xf32> to vector<2x66xf32>
    %439 = arith.addf %435, %438 : vector<2x66xf32>
    %440 = vector.extract_strided_slice %439 {offsets = [0, 0], sizes = [2, 64], strides = [1, 1]} : vector<2x66xf32> to vector<2x64xf32>
    %cst_161 = arith.constant 0.000000e+00 : f32
    %441 = vector.broadcast %cst_161 : f32 to vector<2x64xf32>
    %442 = arith.maximumf %440, %441 : vector<2x64xf32>
    %443 = arith.truncf %442 : vector<2x64xf32> to vector<2x64xbf16>
    %444 = vector.extract_strided_slice %439 {offsets = [0, 64], sizes = [2, 2], strides = [1, 1]} : vector<2x66xf32> to vector<2x2xf32>
    %445 = vector.extract_strided_slice %444 {offsets = [0, 1], sizes = [2, 1], strides = [1, 1]} : vector<2x2xf32> to vector<2x1xf32>
    %446 = vector.extract_strided_slice %444 {offsets = [0, 0], sizes = [2, 1], strides = [1, 1]} : vector<2x2xf32> to vector<2x1xf32>
    %447 = arith.subf %445, %446 : vector<2x1xf32>
    %cst_162 = arith.constant 0.000000e+00 : f32
    %448 = vector.broadcast %cst_162 : f32 to vector<2x1xf32>
    %449 = arith.maximumf %447, %448 : vector<2x1xf32>
    %450 = math.absf %447 : vector<2x1xf32>
    %cst_163 = arith.constant 0.000000e+00 : f32
    %451 = vector.broadcast %cst_163 : f32 to vector<2x1xf32>
    %452 = arith.subf %451, %450 : vector<2x1xf32>
    %453 = math.exp %452 : vector<2x1xf32>
    %cst_164 = arith.constant 1.000000e+00 : f32
    %454 = vector.broadcast %cst_164 : f32 to vector<2x1xf32>
    %455 = arith.addf %454, %453 : vector<2x1xf32>
    %456 = math.log %455 : vector<2x1xf32>
    %457 = arith.addf %449, %456 : vector<2x1xf32>
    %458 = arith.subf %218, %457 : vector<2x1xf32>
    %cst_165 = arith.constant 0.000000e+00 : f32
    %459 = vector.broadcast %cst_165 : f32 to vector<2x1xf32>
    %460 = arith.subf %459, %447 : vector<2x1xf32>
    %cst_166 = arith.constant 0.000000e+00 : f32
    %461 = vector.broadcast %cst_166 : f32 to vector<2x1xf32>
    %462 = arith.maximumf %460, %461 : vector<2x1xf32>
    %463 = math.absf %460 : vector<2x1xf32>
    %cst_167 = arith.constant 0.000000e+00 : f32
    %464 = vector.broadcast %cst_167 : f32 to vector<2x1xf32>
    %465 = arith.subf %464, %463 : vector<2x1xf32>
    %466 = math.exp %465 : vector<2x1xf32>
    %cst_168 = arith.constant 1.000000e+00 : f32
    %467 = vector.broadcast %cst_168 : f32 to vector<2x1xf32>
    %468 = arith.addf %467, %466 : vector<2x1xf32>
    %469 = math.log %468 : vector<2x1xf32>
    %470 = arith.addf %462, %469 : vector<2x1xf32>
    %471 = arith.subf %218, %470 : vector<2x1xf32>
    %472 = tpu.concatenate %458, %471 in 1 : vector<2x1xf32>, vector<2x1xf32> -> vector<2x2xf32>
    %473 = vector.extract_strided_slice %443 {offsets = [0, 0], sizes = [2, 32], strides = [1, 1]} : vector<2x64xbf16> to vector<2x32xbf16>
    %474 = vector.extract_strided_slice %443 {offsets = [0, 32], sizes = [2, 32], strides = [1, 1]} : vector<2x64xbf16> to vector<2x32xbf16>
    %c4 = arith.constant 4 : index
    %c0_169 = arith.constant 0 : index
    %c0_170 = arith.constant 0 : index
    %475 = vector.load %arg10[%c4, %c0_169, %c0_170] : memref<8x32x66xbf16, #tpu.memory_space<vmem>>, vector<1x32x66xbf16>
    %476 = vector.shape_cast %475 : vector<1x32x66xbf16> to vector<32x66xbf16>
    %cst_171 = arith.constant dense<0.000000e+00> : vector<2x66xf32>
    %477 = tpu.matmul %262, %476, %cst_171 {dimension_numbers = #tpu.dot_dimension_numbers<[1], [0], [0], [1], [0, 0, 1, 1], [], []>} : vector<2x32xbf16>, vector<32x66xbf16>, vector<2x66xf32> -> vector<2x66xf32>
    %c4_172 = arith.constant 4 : index
    %c0_173 = arith.constant 0 : index
    %c0_174 = arith.constant 0 : index
    %478 = vector.load %arg11[%c4_172, %c0_173, %c0_174] : memref<8x1x66xf32, #tpu.memory_space<vmem>>, vector<1x1x66xf32>
    %479 = vector.shape_cast %478 : vector<1x1x66xf32> to vector<1x66xf32>
    %480 = vector.broadcast %479 : vector<1x66xf32> to vector<2x66xf32>
    %481 = arith.addf %477, %480 : vector<2x66xf32>
    %482 = vector.extract_strided_slice %481 {offsets = [0, 0], sizes = [2, 64], strides = [1, 1]} : vector<2x66xf32> to vector<2x64xf32>
    %cst_175 = arith.constant 0.000000e+00 : f32
    %483 = vector.broadcast %cst_175 : f32 to vector<2x64xf32>
    %484 = arith.maximumf %482, %483 : vector<2x64xf32>
    %485 = arith.truncf %484 : vector<2x64xf32> to vector<2x64xbf16>
    %486 = vector.extract_strided_slice %481 {offsets = [0, 64], sizes = [2, 2], strides = [1, 1]} : vector<2x66xf32> to vector<2x2xf32>
    %487 = vector.extract_strided_slice %486 {offsets = [0, 1], sizes = [2, 1], strides = [1, 1]} : vector<2x2xf32> to vector<2x1xf32>
    %488 = vector.extract_strided_slice %486 {offsets = [0, 0], sizes = [2, 1], strides = [1, 1]} : vector<2x2xf32> to vector<2x1xf32>
    %489 = arith.subf %487, %488 : vector<2x1xf32>
    %cst_176 = arith.constant 0.000000e+00 : f32
    %490 = vector.broadcast %cst_176 : f32 to vector<2x1xf32>
    %491 = arith.maximumf %489, %490 : vector<2x1xf32>
    %492 = math.absf %489 : vector<2x1xf32>
    %cst_177 = arith.constant 0.000000e+00 : f32
    %493 = vector.broadcast %cst_177 : f32 to vector<2x1xf32>
    %494 = arith.subf %493, %492 : vector<2x1xf32>
    %495 = math.exp %494 : vector<2x1xf32>
    %cst_178 = arith.constant 1.000000e+00 : f32
    %496 = vector.broadcast %cst_178 : f32 to vector<2x1xf32>
    %497 = arith.addf %496, %495 : vector<2x1xf32>
    %498 = math.log %497 : vector<2x1xf32>
    %499 = arith.addf %491, %498 : vector<2x1xf32>
    %500 = arith.subf %247, %499 : vector<2x1xf32>
    %cst_179 = arith.constant 0.000000e+00 : f32
    %501 = vector.broadcast %cst_179 : f32 to vector<2x1xf32>
    %502 = arith.subf %501, %489 : vector<2x1xf32>
    %cst_180 = arith.constant 0.000000e+00 : f32
    %503 = vector.broadcast %cst_180 : f32 to vector<2x1xf32>
    %504 = arith.maximumf %502, %503 : vector<2x1xf32>
    %505 = math.absf %502 : vector<2x1xf32>
    %cst_181 = arith.constant 0.000000e+00 : f32
    %506 = vector.broadcast %cst_181 : f32 to vector<2x1xf32>
    %507 = arith.subf %506, %505 : vector<2x1xf32>
    %508 = math.exp %507 : vector<2x1xf32>
    %cst_182 = arith.constant 1.000000e+00 : f32
    %509 = vector.broadcast %cst_182 : f32 to vector<2x1xf32>
    %510 = arith.addf %509, %508 : vector<2x1xf32>
    %511 = math.log %510 : vector<2x1xf32>
    %512 = arith.addf %504, %511 : vector<2x1xf32>
    %513 = arith.subf %247, %512 : vector<2x1xf32>
    %514 = tpu.concatenate %500, %513 in 1 : vector<2x1xf32>, vector<2x1xf32> -> vector<2x2xf32>
    %515 = vector.extract_strided_slice %485 {offsets = [0, 0], sizes = [2, 32], strides = [1, 1]} : vector<2x64xbf16> to vector<2x32xbf16>
    %516 = vector.extract_strided_slice %485 {offsets = [0, 32], sizes = [2, 32], strides = [1, 1]} : vector<2x64xbf16> to vector<2x32xbf16>
    %c5 = arith.constant 5 : index
    %c0_183 = arith.constant 0 : index
    %c0_184 = arith.constant 0 : index
    %517 = vector.load %arg10[%c5, %c0_183, %c0_184] : memref<8x32x66xbf16, #tpu.memory_space<vmem>>, vector<1x32x66xbf16>
    %518 = vector.shape_cast %517 : vector<1x32x66xbf16> to vector<32x66xbf16>
    %cst_185 = arith.constant dense<0.000000e+00> : vector<2x66xf32>
    %519 = tpu.matmul %263, %518, %cst_185 {dimension_numbers = #tpu.dot_dimension_numbers<[1], [0], [0], [1], [0, 0, 1, 1], [], []>} : vector<2x32xbf16>, vector<32x66xbf16>, vector<2x66xf32> -> vector<2x66xf32>
    %c5_186 = arith.constant 5 : index
    %c0_187 = arith.constant 0 : index
    %c0_188 = arith.constant 0 : index
    %520 = vector.load %arg11[%c5_186, %c0_187, %c0_188] : memref<8x1x66xf32, #tpu.memory_space<vmem>>, vector<1x1x66xf32>
    %521 = vector.shape_cast %520 : vector<1x1x66xf32> to vector<1x66xf32>
    %522 = vector.broadcast %521 : vector<1x66xf32> to vector<2x66xf32>
    %523 = arith.addf %519, %522 : vector<2x66xf32>
    %524 = vector.extract_strided_slice %523 {offsets = [0, 0], sizes = [2, 64], strides = [1, 1]} : vector<2x66xf32> to vector<2x64xf32>
    %cst_189 = arith.constant 0.000000e+00 : f32
    %525 = vector.broadcast %cst_189 : f32 to vector<2x64xf32>
    %526 = arith.maximumf %524, %525 : vector<2x64xf32>
    %527 = arith.truncf %526 : vector<2x64xf32> to vector<2x64xbf16>
    %528 = vector.extract_strided_slice %523 {offsets = [0, 64], sizes = [2, 2], strides = [1, 1]} : vector<2x66xf32> to vector<2x2xf32>
    %529 = vector.extract_strided_slice %528 {offsets = [0, 1], sizes = [2, 1], strides = [1, 1]} : vector<2x2xf32> to vector<2x1xf32>
    %530 = vector.extract_strided_slice %528 {offsets = [0, 0], sizes = [2, 1], strides = [1, 1]} : vector<2x2xf32> to vector<2x1xf32>
    %531 = arith.subf %529, %530 : vector<2x1xf32>
    %cst_190 = arith.constant 0.000000e+00 : f32
    %532 = vector.broadcast %cst_190 : f32 to vector<2x1xf32>
    %533 = arith.maximumf %531, %532 : vector<2x1xf32>
    %534 = math.absf %531 : vector<2x1xf32>
    %cst_191 = arith.constant 0.000000e+00 : f32
    %535 = vector.broadcast %cst_191 : f32 to vector<2x1xf32>
    %536 = arith.subf %535, %534 : vector<2x1xf32>
    %537 = math.exp %536 : vector<2x1xf32>
    %cst_192 = arith.constant 1.000000e+00 : f32
    %538 = vector.broadcast %cst_192 : f32 to vector<2x1xf32>
    %539 = arith.addf %538, %537 : vector<2x1xf32>
    %540 = math.log %539 : vector<2x1xf32>
    %541 = arith.addf %533, %540 : vector<2x1xf32>
    %542 = arith.subf %260, %541 : vector<2x1xf32>
    %cst_193 = arith.constant 0.000000e+00 : f32
    %543 = vector.broadcast %cst_193 : f32 to vector<2x1xf32>
    %544 = arith.subf %543, %531 : vector<2x1xf32>
    %cst_194 = arith.constant 0.000000e+00 : f32
    %545 = vector.broadcast %cst_194 : f32 to vector<2x1xf32>
    %546 = arith.maximumf %544, %545 : vector<2x1xf32>
    %547 = math.absf %544 : vector<2x1xf32>
    %cst_195 = arith.constant 0.000000e+00 : f32
    %548 = vector.broadcast %cst_195 : f32 to vector<2x1xf32>
    %549 = arith.subf %548, %547 : vector<2x1xf32>
    %550 = math.exp %549 : vector<2x1xf32>
    %cst_196 = arith.constant 1.000000e+00 : f32
    %551 = vector.broadcast %cst_196 : f32 to vector<2x1xf32>
    %552 = arith.addf %551, %550 : vector<2x1xf32>
    %553 = math.log %552 : vector<2x1xf32>
    %554 = arith.addf %546, %553 : vector<2x1xf32>
    %555 = arith.subf %260, %554 : vector<2x1xf32>
    %556 = tpu.concatenate %542, %555 in 1 : vector<2x1xf32>, vector<2x1xf32> -> vector<2x2xf32>
    %557 = vector.extract_strided_slice %527 {offsets = [0, 0], sizes = [2, 32], strides = [1, 1]} : vector<2x64xbf16> to vector<2x32xbf16>
    %558 = vector.extract_strided_slice %527 {offsets = [0, 32], sizes = [2, 32], strides = [1, 1]} : vector<2x64xbf16> to vector<2x32xbf16>
    %c6 = arith.constant 6 : index
    %c0_197 = arith.constant 0 : index
    %c0_198 = arith.constant 0 : index
    %559 = vector.load %arg10[%c6, %c0_197, %c0_198] : memref<8x32x66xbf16, #tpu.memory_space<vmem>>, vector<1x32x66xbf16>
    %560 = vector.shape_cast %559 : vector<1x32x66xbf16> to vector<32x66xbf16>
    %cst_199 = arith.constant dense<0.000000e+00> : vector<2x66xf32>
    %561 = tpu.matmul %304, %560, %cst_199 {dimension_numbers = #tpu.dot_dimension_numbers<[1], [0], [0], [1], [0, 0, 1, 1], [], []>} : vector<2x32xbf16>, vector<32x66xbf16>, vector<2x66xf32> -> vector<2x66xf32>
    %c6_200 = arith.constant 6 : index
    %c0_201 = arith.constant 0 : index
    %c0_202 = arith.constant 0 : index
    %562 = vector.load %arg11[%c6_200, %c0_201, %c0_202] : memref<8x1x66xf32, #tpu.memory_space<vmem>>, vector<1x1x66xf32>
    %563 = vector.shape_cast %562 : vector<1x1x66xf32> to vector<1x66xf32>
    %564 = vector.broadcast %563 : vector<1x66xf32> to vector<2x66xf32>
    %565 = arith.addf %561, %564 : vector<2x66xf32>
    %566 = vector.extract_strided_slice %565 {offsets = [0, 0], sizes = [2, 64], strides = [1, 1]} : vector<2x66xf32> to vector<2x64xf32>
    %cst_203 = arith.constant 0.000000e+00 : f32
    %567 = vector.broadcast %cst_203 : f32 to vector<2x64xf32>
    %568 = arith.maximumf %566, %567 : vector<2x64xf32>
    %569 = arith.truncf %568 : vector<2x64xf32> to vector<2x64xbf16>
    %570 = vector.extract_strided_slice %565 {offsets = [0, 64], sizes = [2, 2], strides = [1, 1]} : vector<2x66xf32> to vector<2x2xf32>
    %571 = vector.extract_strided_slice %570 {offsets = [0, 1], sizes = [2, 1], strides = [1, 1]} : vector<2x2xf32> to vector<2x1xf32>
    %572 = vector.extract_strided_slice %570 {offsets = [0, 0], sizes = [2, 1], strides = [1, 1]} : vector<2x2xf32> to vector<2x1xf32>
    %573 = arith.subf %571, %572 : vector<2x1xf32>
    %cst_204 = arith.constant 0.000000e+00 : f32
    %574 = vector.broadcast %cst_204 : f32 to vector<2x1xf32>
    %575 = arith.maximumf %573, %574 : vector<2x1xf32>
    %576 = math.absf %573 : vector<2x1xf32>
    %cst_205 = arith.constant 0.000000e+00 : f32
    %577 = vector.broadcast %cst_205 : f32 to vector<2x1xf32>
    %578 = arith.subf %577, %576 : vector<2x1xf32>
    %579 = math.exp %578 : vector<2x1xf32>
    %cst_206 = arith.constant 1.000000e+00 : f32
    %580 = vector.broadcast %cst_206 : f32 to vector<2x1xf32>
    %581 = arith.addf %580, %579 : vector<2x1xf32>
    %582 = math.log %581 : vector<2x1xf32>
    %583 = arith.addf %575, %582 : vector<2x1xf32>
    %584 = arith.subf %289, %583 : vector<2x1xf32>
    %cst_207 = arith.constant 0.000000e+00 : f32
    %585 = vector.broadcast %cst_207 : f32 to vector<2x1xf32>
    %586 = arith.subf %585, %573 : vector<2x1xf32>
    %cst_208 = arith.constant 0.000000e+00 : f32
    %587 = vector.broadcast %cst_208 : f32 to vector<2x1xf32>
    %588 = arith.maximumf %586, %587 : vector<2x1xf32>
    %589 = math.absf %586 : vector<2x1xf32>
    %cst_209 = arith.constant 0.000000e+00 : f32
    %590 = vector.broadcast %cst_209 : f32 to vector<2x1xf32>
    %591 = arith.subf %590, %589 : vector<2x1xf32>
    %592 = math.exp %591 : vector<2x1xf32>
    %cst_210 = arith.constant 1.000000e+00 : f32
    %593 = vector.broadcast %cst_210 : f32 to vector<2x1xf32>
    %594 = arith.addf %593, %592 : vector<2x1xf32>
    %595 = math.log %594 : vector<2x1xf32>
    %596 = arith.addf %588, %595 : vector<2x1xf32>
    %597 = arith.subf %289, %596 : vector<2x1xf32>
    %598 = tpu.concatenate %584, %597 in 1 : vector<2x1xf32>, vector<2x1xf32> -> vector<2x2xf32>
    %599 = vector.extract_strided_slice %569 {offsets = [0, 0], sizes = [2, 32], strides = [1, 1]} : vector<2x64xbf16> to vector<2x32xbf16>
    %600 = vector.extract_strided_slice %569 {offsets = [0, 32], sizes = [2, 32], strides = [1, 1]} : vector<2x64xbf16> to vector<2x32xbf16>
    %c7 = arith.constant 7 : index
    %c0_211 = arith.constant 0 : index
    %c0_212 = arith.constant 0 : index
    %601 = vector.load %arg10[%c7, %c0_211, %c0_212] : memref<8x32x66xbf16, #tpu.memory_space<vmem>>, vector<1x32x66xbf16>
    %602 = vector.shape_cast %601 : vector<1x32x66xbf16> to vector<32x66xbf16>
    %cst_213 = arith.constant dense<0.000000e+00> : vector<2x66xf32>
    %603 = tpu.matmul %305, %602, %cst_213 {dimension_numbers = #tpu.dot_dimension_numbers<[1], [0], [0], [1], [0, 0, 1, 1], [], []>} : vector<2x32xbf16>, vector<32x66xbf16>, vector<2x66xf32> -> vector<2x66xf32>
    %c7_214 = arith.constant 7 : index
    %c0_215 = arith.constant 0 : index
    %c0_216 = arith.constant 0 : index
    %604 = vector.load %arg11[%c7_214, %c0_215, %c0_216] : memref<8x1x66xf32, #tpu.memory_space<vmem>>, vector<1x1x66xf32>
    %605 = vector.shape_cast %604 : vector<1x1x66xf32> to vector<1x66xf32>
    %606 = vector.broadcast %605 : vector<1x66xf32> to vector<2x66xf32>
    %607 = arith.addf %603, %606 : vector<2x66xf32>
    %608 = vector.extract_strided_slice %607 {offsets = [0, 0], sizes = [2, 64], strides = [1, 1]} : vector<2x66xf32> to vector<2x64xf32>
    %cst_217 = arith.constant 0.000000e+00 : f32
    %609 = vector.broadcast %cst_217 : f32 to vector<2x64xf32>
    %610 = arith.maximumf %608, %609 : vector<2x64xf32>
    %611 = arith.truncf %610 : vector<2x64xf32> to vector<2x64xbf16>
    %612 = vector.extract_strided_slice %607 {offsets = [0, 64], sizes = [2, 2], strides = [1, 1]} : vector<2x66xf32> to vector<2x2xf32>
    %613 = vector.extract_strided_slice %612 {offsets = [0, 1], sizes = [2, 1], strides = [1, 1]} : vector<2x2xf32> to vector<2x1xf32>
    %614 = vector.extract_strided_slice %612 {offsets = [0, 0], sizes = [2, 1], strides = [1, 1]} : vector<2x2xf32> to vector<2x1xf32>
    %615 = arith.subf %613, %614 : vector<2x1xf32>
    %cst_218 = arith.constant 0.000000e+00 : f32
    %616 = vector.broadcast %cst_218 : f32 to vector<2x1xf32>
    %617 = arith.maximumf %615, %616 : vector<2x1xf32>
    %618 = math.absf %615 : vector<2x1xf32>
    %cst_219 = arith.constant 0.000000e+00 : f32
    %619 = vector.broadcast %cst_219 : f32 to vector<2x1xf32>
    %620 = arith.subf %619, %618 : vector<2x1xf32>
    %621 = math.exp %620 : vector<2x1xf32>
    %cst_220 = arith.constant 1.000000e+00 : f32
    %622 = vector.broadcast %cst_220 : f32 to vector<2x1xf32>
    %623 = arith.addf %622, %621 : vector<2x1xf32>
    %624 = math.log %623 : vector<2x1xf32>
    %625 = arith.addf %617, %624 : vector<2x1xf32>
    %626 = arith.subf %302, %625 : vector<2x1xf32>
    %cst_221 = arith.constant 0.000000e+00 : f32
    %627 = vector.broadcast %cst_221 : f32 to vector<2x1xf32>
    %628 = arith.subf %627, %615 : vector<2x1xf32>
    %cst_222 = arith.constant 0.000000e+00 : f32
    %629 = vector.broadcast %cst_222 : f32 to vector<2x1xf32>
    %630 = arith.maximumf %628, %629 : vector<2x1xf32>
    %631 = math.absf %628 : vector<2x1xf32>
    %cst_223 = arith.constant 0.000000e+00 : f32
    %632 = vector.broadcast %cst_223 : f32 to vector<2x1xf32>
    %633 = arith.subf %632, %631 : vector<2x1xf32>
    %634 = math.exp %633 : vector<2x1xf32>
    %cst_224 = arith.constant 1.000000e+00 : f32
    %635 = vector.broadcast %cst_224 : f32 to vector<2x1xf32>
    %636 = arith.addf %635, %634 : vector<2x1xf32>
    %637 = math.log %636 : vector<2x1xf32>
    %638 = arith.addf %630, %637 : vector<2x1xf32>
    %639 = arith.subf %302, %638 : vector<2x1xf32>
    %640 = tpu.concatenate %626, %639 in 1 : vector<2x1xf32>, vector<2x1xf32> -> vector<2x2xf32>
    %641 = vector.extract_strided_slice %611 {offsets = [0, 0], sizes = [2, 32], strides = [1, 1]} : vector<2x64xbf16> to vector<2x32xbf16>
    %642 = vector.extract_strided_slice %611 {offsets = [0, 32], sizes = [2, 32], strides = [1, 1]} : vector<2x64xbf16> to vector<2x32xbf16>
    %643 = tpu.concatenate %346, %388, %430, %472, %514, %556, %598, %640 in 1 : vector<2x2xf32>, vector<2x2xf32>, vector<2x2xf32>, vector<2x2xf32>, vector<2x2xf32>, vector<2x2xf32>, vector<2x2xf32>, vector<2x2xf32> -> vector<2x16xf32>
    %c0_225 = arith.constant 0 : index
    %c0_226 = arith.constant 0 : index
    %c0_227 = arith.constant 0 : index
    %644 = vector.load %arg12[%c0_225, %c0_226, %c0_227] : memref<16x32x1xbf16, #tpu.memory_space<vmem>>, vector<1x32x1xbf16>
    %645 = vector.shape_cast %644 : vector<1x32x1xbf16> to vector<32x1xbf16>
    %cst_228 = arith.constant dense<0.000000e+00> : vector<2x1xf32>
    %646 = tpu.matmul %347, %645, %cst_228 {dimension_numbers = #tpu.dot_dimension_numbers<[1], [0], [0], [1], [0, 0, 1, 1], [], []>} : vector<2x32xbf16>, vector<32x1xbf16>, vector<2x1xf32> -> vector<2x1xf32>
    %c1_229 = arith.constant 1 : index
    %c0_230 = arith.constant 0 : index
    %c0_231 = arith.constant 0 : index
    %647 = vector.load %arg12[%c1_229, %c0_230, %c0_231] : memref<16x32x1xbf16, #tpu.memory_space<vmem>>, vector<1x32x1xbf16>
    %648 = vector.shape_cast %647 : vector<1x32x1xbf16> to vector<32x1xbf16>
    %cst_232 = arith.constant dense<0.000000e+00> : vector<2x1xf32>
    %649 = tpu.matmul %348, %648, %cst_232 {dimension_numbers = #tpu.dot_dimension_numbers<[1], [0], [0], [1], [0, 0, 1, 1], [], []>} : vector<2x32xbf16>, vector<32x1xbf16>, vector<2x1xf32> -> vector<2x1xf32>
    %c2_233 = arith.constant 2 : index
    %c0_234 = arith.constant 0 : index
    %c0_235 = arith.constant 0 : index
    %650 = vector.load %arg12[%c2_233, %c0_234, %c0_235] : memref<16x32x1xbf16, #tpu.memory_space<vmem>>, vector<1x32x1xbf16>
    %651 = vector.shape_cast %650 : vector<1x32x1xbf16> to vector<32x1xbf16>
    %cst_236 = arith.constant dense<0.000000e+00> : vector<2x1xf32>
    %652 = tpu.matmul %389, %651, %cst_236 {dimension_numbers = #tpu.dot_dimension_numbers<[1], [0], [0], [1], [0, 0, 1, 1], [], []>} : vector<2x32xbf16>, vector<32x1xbf16>, vector<2x1xf32> -> vector<2x1xf32>
    %c3_237 = arith.constant 3 : index
    %c0_238 = arith.constant 0 : index
    %c0_239 = arith.constant 0 : index
    %653 = vector.load %arg12[%c3_237, %c0_238, %c0_239] : memref<16x32x1xbf16, #tpu.memory_space<vmem>>, vector<1x32x1xbf16>
    %654 = vector.shape_cast %653 : vector<1x32x1xbf16> to vector<32x1xbf16>
    %cst_240 = arith.constant dense<0.000000e+00> : vector<2x1xf32>
    %655 = tpu.matmul %390, %654, %cst_240 {dimension_numbers = #tpu.dot_dimension_numbers<[1], [0], [0], [1], [0, 0, 1, 1], [], []>} : vector<2x32xbf16>, vector<32x1xbf16>, vector<2x1xf32> -> vector<2x1xf32>
    %c4_241 = arith.constant 4 : index
    %c0_242 = arith.constant 0 : index
    %c0_243 = arith.constant 0 : index
    %656 = vector.load %arg12[%c4_241, %c0_242, %c0_243] : memref<16x32x1xbf16, #tpu.memory_space<vmem>>, vector<1x32x1xbf16>
    %657 = vector.shape_cast %656 : vector<1x32x1xbf16> to vector<32x1xbf16>
    %cst_244 = arith.constant dense<0.000000e+00> : vector<2x1xf32>
    %658 = tpu.matmul %431, %657, %cst_244 {dimension_numbers = #tpu.dot_dimension_numbers<[1], [0], [0], [1], [0, 0, 1, 1], [], []>} : vector<2x32xbf16>, vector<32x1xbf16>, vector<2x1xf32> -> vector<2x1xf32>
    %c5_245 = arith.constant 5 : index
    %c0_246 = arith.constant 0 : index
    %c0_247 = arith.constant 0 : index
    %659 = vector.load %arg12[%c5_245, %c0_246, %c0_247] : memref<16x32x1xbf16, #tpu.memory_space<vmem>>, vector<1x32x1xbf16>
    %660 = vector.shape_cast %659 : vector<1x32x1xbf16> to vector<32x1xbf16>
    %cst_248 = arith.constant dense<0.000000e+00> : vector<2x1xf32>
    %661 = tpu.matmul %432, %660, %cst_248 {dimension_numbers = #tpu.dot_dimension_numbers<[1], [0], [0], [1], [0, 0, 1, 1], [], []>} : vector<2x32xbf16>, vector<32x1xbf16>, vector<2x1xf32> -> vector<2x1xf32>
    %c6_249 = arith.constant 6 : index
    %c0_250 = arith.constant 0 : index
    %c0_251 = arith.constant 0 : index
    %662 = vector.load %arg12[%c6_249, %c0_250, %c0_251] : memref<16x32x1xbf16, #tpu.memory_space<vmem>>, vector<1x32x1xbf16>
    %663 = vector.shape_cast %662 : vector<1x32x1xbf16> to vector<32x1xbf16>
    %cst_252 = arith.constant dense<0.000000e+00> : vector<2x1xf32>
    %664 = tpu.matmul %473, %663, %cst_252 {dimension_numbers = #tpu.dot_dimension_numbers<[1], [0], [0], [1], [0, 0, 1, 1], [], []>} : vector<2x32xbf16>, vector<32x1xbf16>, vector<2x1xf32> -> vector<2x1xf32>
    %c7_253 = arith.constant 7 : index
    %c0_254 = arith.constant 0 : index
    %c0_255 = arith.constant 0 : index
    %665 = vector.load %arg12[%c7_253, %c0_254, %c0_255] : memref<16x32x1xbf16, #tpu.memory_space<vmem>>, vector<1x32x1xbf16>
    %666 = vector.shape_cast %665 : vector<1x32x1xbf16> to vector<32x1xbf16>
    %cst_256 = arith.constant dense<0.000000e+00> : vector<2x1xf32>
    %667 = tpu.matmul %474, %666, %cst_256 {dimension_numbers = #tpu.dot_dimension_numbers<[1], [0], [0], [1], [0, 0, 1, 1], [], []>} : vector<2x32xbf16>, vector<32x1xbf16>, vector<2x1xf32> -> vector<2x1xf32>
    %c8 = arith.constant 8 : index
    %c0_257 = arith.constant 0 : index
    %c0_258 = arith.constant 0 : index
    %668 = vector.load %arg12[%c8, %c0_257, %c0_258] : memref<16x32x1xbf16, #tpu.memory_space<vmem>>, vector<1x32x1xbf16>
    %669 = vector.shape_cast %668 : vector<1x32x1xbf16> to vector<32x1xbf16>
    %cst_259 = arith.constant dense<0.000000e+00> : vector<2x1xf32>
    %670 = tpu.matmul %515, %669, %cst_259 {dimension_numbers = #tpu.dot_dimension_numbers<[1], [0], [0], [1], [0, 0, 1, 1], [], []>} : vector<2x32xbf16>, vector<32x1xbf16>, vector<2x1xf32> -> vector<2x1xf32>
    %c9 = arith.constant 9 : index
    %c0_260 = arith.constant 0 : index
    %c0_261 = arith.constant 0 : index
    %671 = vector.load %arg12[%c9, %c0_260, %c0_261] : memref<16x32x1xbf16, #tpu.memory_space<vmem>>, vector<1x32x1xbf16>
    %672 = vector.shape_cast %671 : vector<1x32x1xbf16> to vector<32x1xbf16>
    %cst_262 = arith.constant dense<0.000000e+00> : vector<2x1xf32>
    %673 = tpu.matmul %516, %672, %cst_262 {dimension_numbers = #tpu.dot_dimension_numbers<[1], [0], [0], [1], [0, 0, 1, 1], [], []>} : vector<2x32xbf16>, vector<32x1xbf16>, vector<2x1xf32> -> vector<2x1xf32>
    %c10 = arith.constant 10 : index
    %c0_263 = arith.constant 0 : index
    %c0_264 = arith.constant 0 : index
    %674 = vector.load %arg12[%c10, %c0_263, %c0_264] : memref<16x32x1xbf16, #tpu.memory_space<vmem>>, vector<1x32x1xbf16>
    %675 = vector.shape_cast %674 : vector<1x32x1xbf16> to vector<32x1xbf16>
    %cst_265 = arith.constant dense<0.000000e+00> : vector<2x1xf32>
    %676 = tpu.matmul %557, %675, %cst_265 {dimension_numbers = #tpu.dot_dimension_numbers<[1], [0], [0], [1], [0, 0, 1, 1], [], []>} : vector<2x32xbf16>, vector<32x1xbf16>, vector<2x1xf32> -> vector<2x1xf32>
    %c11 = arith.constant 11 : index
    %c0_266 = arith.constant 0 : index
    %c0_267 = arith.constant 0 : index
    %677 = vector.load %arg12[%c11, %c0_266, %c0_267] : memref<16x32x1xbf16, #tpu.memory_space<vmem>>, vector<1x32x1xbf16>
    %678 = vector.shape_cast %677 : vector<1x32x1xbf16> to vector<32x1xbf16>
    %cst_268 = arith.constant dense<0.000000e+00> : vector<2x1xf32>
    %679 = tpu.matmul %558, %678, %cst_268 {dimension_numbers = #tpu.dot_dimension_numbers<[1], [0], [0], [1], [0, 0, 1, 1], [], []>} : vector<2x32xbf16>, vector<32x1xbf16>, vector<2x1xf32> -> vector<2x1xf32>
    %c12 = arith.constant 12 : index
    %c0_269 = arith.constant 0 : index
    %c0_270 = arith.constant 0 : index
    %680 = vector.load %arg12[%c12, %c0_269, %c0_270] : memref<16x32x1xbf16, #tpu.memory_space<vmem>>, vector<1x32x1xbf16>
    %681 = vector.shape_cast %680 : vector<1x32x1xbf16> to vector<32x1xbf16>
    %cst_271 = arith.constant dense<0.000000e+00> : vector<2x1xf32>
    %682 = tpu.matmul %599, %681, %cst_271 {dimension_numbers = #tpu.dot_dimension_numbers<[1], [0], [0], [1], [0, 0, 1, 1], [], []>} : vector<2x32xbf16>, vector<32x1xbf16>, vector<2x1xf32> -> vector<2x1xf32>
    %c13 = arith.constant 13 : index
    %c0_272 = arith.constant 0 : index
    %c0_273 = arith.constant 0 : index
    %683 = vector.load %arg12[%c13, %c0_272, %c0_273] : memref<16x32x1xbf16, #tpu.memory_space<vmem>>, vector<1x32x1xbf16>
    %684 = vector.shape_cast %683 : vector<1x32x1xbf16> to vector<32x1xbf16>
    %cst_274 = arith.constant dense<0.000000e+00> : vector<2x1xf32>
    %685 = tpu.matmul %600, %684, %cst_274 {dimension_numbers = #tpu.dot_dimension_numbers<[1], [0], [0], [1], [0, 0, 1, 1], [], []>} : vector<2x32xbf16>, vector<32x1xbf16>, vector<2x1xf32> -> vector<2x1xf32>
    %c14 = arith.constant 14 : index
    %c0_275 = arith.constant 0 : index
    %c0_276 = arith.constant 0 : index
    %686 = vector.load %arg12[%c14, %c0_275, %c0_276] : memref<16x32x1xbf16, #tpu.memory_space<vmem>>, vector<1x32x1xbf16>
    %687 = vector.shape_cast %686 : vector<1x32x1xbf16> to vector<32x1xbf16>
    %cst_277 = arith.constant dense<0.000000e+00> : vector<2x1xf32>
    %688 = tpu.matmul %641, %687, %cst_277 {dimension_numbers = #tpu.dot_dimension_numbers<[1], [0], [0], [1], [0, 0, 1, 1], [], []>} : vector<2x32xbf16>, vector<32x1xbf16>, vector<2x1xf32> -> vector<2x1xf32>
    %c15 = arith.constant 15 : index
    %c0_278 = arith.constant 0 : index
    %c0_279 = arith.constant 0 : index
    %689 = vector.load %arg12[%c15, %c0_278, %c0_279] : memref<16x32x1xbf16, #tpu.memory_space<vmem>>, vector<1x32x1xbf16>
    %690 = vector.shape_cast %689 : vector<1x32x1xbf16> to vector<32x1xbf16>
    %cst_280 = arith.constant dense<0.000000e+00> : vector<2x1xf32>
    %691 = tpu.matmul %642, %690, %cst_280 {dimension_numbers = #tpu.dot_dimension_numbers<[1], [0], [0], [1], [0, 0, 1, 1], [], []>} : vector<2x32xbf16>, vector<32x1xbf16>, vector<2x1xf32> -> vector<2x1xf32>
    %692 = tpu.concatenate %646, %649, %652, %655, %658, %661, %664, %667, %670, %673, %676, %679, %682, %685, %688, %691 in 1 : vector<2x1xf32>, vector<2x1xf32>, vector<2x1xf32>, vector<2x1xf32>, vector<2x1xf32>, vector<2x1xf32>, vector<2x1xf32>, vector<2x1xf32>, vector<2x1xf32>, vector<2x1xf32>, vector<2x1xf32>, vector<2x1xf32>, vector<2x1xf32>, vector<2x1xf32>, vector<2x1xf32>, vector<2x1xf32> -> vector<2x16xf32>
    %c0_281 = arith.constant 0 : index
    %c0_282 = arith.constant 0 : index
    %693 = vector.load %arg13[%c0_281, %c0_282] : memref<1x16xf32, #tpu.memory_space<vmem>>, vector<1x16xf32>
    %694 = vector.broadcast %693 : vector<1x16xf32> to vector<2x16xf32>
    %695 = arith.addf %692, %694 : vector<2x16xf32>
    %696 = tpu.concatenate %50, %137, %306, %643, %695 in 1 : vector<2x2xf32>, vector<2x4xf32>, vector<2x8xf32>, vector<2x16xf32>, vector<2x16xf32> -> vector<2x46xf32>
    %cst_283 = arith.constant 0.000000e+00 : f32
    %697 = vector.broadcast %cst_283 : f32 to vector<2x82xf32>
    %698 = tpu.concatenate %696, %697 in 1 : vector<2x46xf32>, vector<2x82xf32> -> vector<2x128xf32>
    %c0_284 = arith.constant 0 : index
    %c0_285 = arith.constant 0 : index
    %699 = vector.load %arg14[%c0_284, %c0_285] : memref<2x128xf32, #tpu.memory_space<vmem>>, vector<2x128xf32>
    tpu.vector_store %arg14[%c0_284, %c0_285], %698 {strides = array<i32>} : memref<2x128xf32, #tpu.memory_space<vmem>>, vector<2x128xf32>,
    return
  }
  func.func @transform_0(%arg0: i32) -> (i32, i32) {
    %c0_i32 = arith.constant 0 : i32
    %c0_i32_0 = arith.constant 0 : i32
    return %arg0, %c0_i32 : i32, i32
  }
  func.func @transform_1(%arg0: i32) -> (i32, i32) {
    %c0_i32 = arith.constant 0 : i32
    %c0_i32_0 = arith.constant 0 : i32
    %c0_i32_1 = arith.constant 0 : i32
    return %c0_i32, %c0_i32_0 : i32, i32
  }
  func.func @transform_2(%arg0: i32) -> (i32, i32) {
    %c0_i32 = arith.constant 0 : i32
    %c0_i32_0 = arith.constant 0 : i32
    %c0_i32_1 = arith.constant 0 : i32
    return %c0_i32, %c0_i32_0 : i32, i32
  }
  func.func @transform_3(%arg0: i32) -> (i32, i32, i32) {
    %c0_i32 = arith.constant 0 : i32
    %c0_i32_0 = arith.constant 0 : i32
    %c0_i32_1 = arith.constant 0 : i32
    %c0_i32_2 = arith.constant 0 : i32
    return %c0_i32, %c0_i32_0, %c0_i32_1 : i32, i32, i32
  }
  func.func @transform_4(%arg0: i32) -> (i32, i32, i32) {
    %c0_i32 = arith.constant 0 : i32
    %c0_i32_0 = arith.constant 0 : i32
    %c0_i32_1 = arith.constant 0 : i32
    %c0_i32_2 = arith.constant 0 : i32
    return %c0_i32, %c0_i32_0, %c0_i32_1 : i32, i32, i32
  }
  func.func @transform_5(%arg0: i32) -> (i32, i32, i32) {
    %c0_i32 = arith.constant 0 : i32
    %c0_i32_0 = arith.constant 0 : i32
    %c0_i32_1 = arith.constant 0 : i32
    %c0_i32_2 = arith.constant 0 : i32
    return %c0_i32, %c0_i32_0, %c0_i32_1 : i32, i32, i32
  }
  func.func @transform_6(%arg0: i32) -> (i32, i32, i32) {
    %c0_i32 = arith.constant 0 : i32
    %c0_i32_0 = arith.constant 0 : i32
    %c0_i32_1 = arith.constant 0 : i32
    %c0_i32_2 = arith.constant 0 : i32
    return %c0_i32, %c0_i32_0, %c0_i32_1 : i32, i32, i32
  }
  func.func @transform_7(%arg0: i32) -> (i32, i32, i32) {
    %c0_i32 = arith.constant 0 : i32
    %c0_i32_0 = arith.constant 0 : i32
    %c0_i32_1 = arith.constant 0 : i32
    %c0_i32_2 = arith.constant 0 : i32
    return %c0_i32, %c0_i32_0, %c0_i32_1 : i32, i32, i32
  }
  func.func @transform_8(%arg0: i32) -> (i32, i32, i32) {
    %c0_i32 = arith.constant 0 : i32
    %c0_i32_0 = arith.constant 0 : i32
    %c0_i32_1 = arith.constant 0 : i32
    %c0_i32_2 = arith.constant 0 : i32
    return %c0_i32, %c0_i32_0, %c0_i32_1 : i32, i32, i32
  }
  func.func @transform_9(%arg0: i32) -> (i32, i32, i32) {
    %c0_i32 = arith.constant 0 : i32
    %c0_i32_0 = arith.constant 0 : i32
    %c0_i32_1 = arith.constant 0 : i32
    %c0_i32_2 = arith.constant 0 : i32
    return %c0_i32, %c0_i32_0, %c0_i32_1 : i32, i32, i32
  }
  func.func @transform_10(%arg0: i32) -> (i32, i32, i32) {
    %c0_i32 = arith.constant 0 : i32
    %c0_i32_0 = arith.constant 0 : i32
    %c0_i32_1 = arith.constant 0 : i32
    %c0_i32_2 = arith.constant 0 : i32
    return %c0_i32, %c0_i32_0, %c0_i32_1 : i32, i32, i32
  }
  func.func @transform_11(%arg0: i32) -> (i32, i32, i32) {
    %c0_i32 = arith.constant 0 : i32
    %c0_i32_0 = arith.constant 0 : i32
    %c0_i32_1 = arith.constant 0 : i32
    %c0_i32_2 = arith.constant 0 : i32
    return %c0_i32, %c0_i32_0, %c0_i32_1 : i32, i32, i32
  }
  func.func @transform_12(%arg0: i32) -> (i32, i32) {
    %c0_i32 = arith.constant 0 : i32
    %c0_i32_0 = arith.constant 0 : i32
    %c0_i32_1 = arith.constant 0 : i32
    return %c0_i32, %c0_i32_0 : i32, i32
  }
  func.func @transform_13(%arg0: i32) -> (i32, i32) {
    %c0_i32 = arith.constant 0 : i32
    %c0_i32_0 = arith.constant 0 : i32
    return %arg0, %c0_i32 : i32, i32
  }
}

</mosaic_0001>

<bundles_post_ra>
// kernel: core_forward.1
= control target key start
LH: loop header
LB: loop body
LE: loop exit
PB: predicated region body
PF: predicated region fallthrough
CT: control target
= control target key end

     0   :  { %18 = vsyncpa [#allocation3], 0  ;;  %s4687_s0 = inlined_call_operand.vmem [shape: f32[2,32], index: 0, kind: input, shape index: {}]   ;;  %s4688_s1 = inlined_call_operand.vmem [shape: bf16[32,32], index: 1, kind: input, shape index: {}]   ;;  %s4689_s2 = inlined_call_operand.hbm [shape: f32[1,32], index: 2, kind: input, shape index: {}]   ;;  %s4690_s3 = inlined_call_operand.vmem [shape: bf16[1,32,66], index: 3, kind: input, shape index: {}]   ;;  %s4691_s4 = inlined_call_operand.vmem [shape: f32[1,1,66], index: 4, kind: input, shape index: {}]   ;;  %s4692_s5 = inlined_call_operand.vmem [shape: bf16[2,32,66], index: 5, kind: input, shape index: {}]   ;;  %s4693_s6 = inlined_call_operand.hbm [shape: f32[2,1,66], index: 6, kind: input, shape index: {}]   ;;  %s4694_s7 = inlined_call_operand.vmem [shape: bf16[4,32,66], index: 7, kind: input, shape index: {}]   ;;  %s4695_s8 = inlined_call_operand.vmem [shape: f32[4,1,66], index: 8, kind: input, shape index: {}]   ;;  %s4696_s9 = inlined_call_operand.vmem [shape: bf16[8,32,66], index: 9, kind: input, shape index: {}]   ;;  %s4697_s10 = inlined_call_operand.vmem [shape: f32[8,1,66], index: 10, kind: input, shape index: {}]   ;;  %s4698_s11 = inlined_call_operand.vmem [shape: bf16[16,32,1], index: 11, kind: input, shape index: {}]   ;;  %s4699_s12 = inlined_call_operand.vmem [shape: f32[1,16], index: 12, kind: input, shape index: {}]   ;;  %s4700_s13 = inlined_call_operand.vmem [shape: f32[2,128], index: 13, kind: output, shape index: {}]  }
   0x1   :  { %19 = vsyncpa [#allocation5], 0  ;;  %s3731_s25 = smov [#allocation2]   ;;  %s3732_s27 = smov [#allocation4]  }
   0x2   :  { %s30_s26 = sshll.u32 %s3731_s25, 4  ;;  %s45_s28 = sshll.u32 %s3732_s27, 4  ;;  %s31_s26 = int_to_ptr.vmem [resolvable:$true] %s30_s26  ;;  %s3825_s28 = int_to_ptr.vmem [resolvable:$true] %s45_s28 }
   0x3   :  { %s3683_s14 = scalar_lea.hbm %s4689_s2, 16 }
   0x4   :  { %p3684_p0 = scmp.ne.s32.totalorder %s4689_s2, %s3683_s14  ;;  %p3687_p1 = scmp.lt.u32.totalorder %s3683_s14, %s4689_s2 }
   0x6   :  { %p3689_p2 = pnand %p3687_p1, %p3684_p0 }
   0x8   :  { %3692 = shalt.err (!%p3689_p2)
}
   0x9   :  { %s3693_s19 = scalar_lea.vmem %s31_s26, 16  ;;  %s3697_s20 = scalar_lea.vmem %s31_s26, 32 }
   0xa   :  { %p3694_p3 = scmp.ne.s32.totalorder %s31_s26, %s3693_s19  ;;  %p3698_p4 = scmp.lt.s32.totalorder %s31_s26, %s31_s26 }
   0xb   :  { %p3699_p5 = scmp.lt.s32.totalorder %s3697_s20, %s3693_s19 }
   0xd   :  { %p3700_p6 = por %p3699_p5, %p3698_p4 }
   0xf   :  { %p3701_p7 = pnand %p3700_p6, %p3694_p3 }
  0x11   :  { %3704 = shalt.err (!%p3701_p7)
}
  0x12   :  { %33 = dma.hbm_to_vmem [thread:$0]  %s4689_s2, 16, %s31_s26, [#allocation3]  }
  0x13   :  { %s3705_s25 = scalar_lea.hbm %s4693_s6, 32 }
  0x14   :  { %p3706_p8 = scmp.ne.s32.totalorder %s4693_s6, %s3705_s25  ;;  %p3709_p9 = scmp.lt.u32.totalorder %s3705_s25, %s4693_s6 }
  0x16   :  { %p3711_p10 = pnand %p3709_p9, %p3706_p8 }
  0x18   :  { %3714 = shalt.err (!%p3711_p10)
}
  0x19   :  { %s3715_s15 = scalar_lea.vmem %s3825_s28, 32  ;;  %p3720_p12 = scmp.lt.s32.totalorder %s3825_s28, %s3825_s28 }
  0x1a   :  { %p3716_p11 = scmp.ne.s32.totalorder %s3825_s28, %s3715_s15  ;;  %p3721_p13 = scmp.lt.s32.totalorder %s3715_s15, %s3715_s15 }
  0x1c   :  { %p3722_p0 = por %p3721_p13, %p3720_p12 }
  0x1e   :  { %p3723_p1 = pnand %p3722_p0, %p3716_p11 }
  0x20   :  { %3726 = shalt.err (!%p3723_p1)
}
  0x21   :  { %s3733_s2 = smov 16   ;;  %s3734_s26 = smov 1  }
  0x22   :  { %51 = dma.hbm_to_vmem [thread:$0]  %s4693_s6, 32, %s3825_s28, [#allocation5], %s3733_s2, %s3733_s2, %s3734_s26  }
  0x23   :  { %3727 = dma.done.wait [#allocation3], 16  }
  0x24   :  { %3728 = vsyncadd [#allocation3], 4294967280 }
  0x25   :  { %3729 = dma.done.wait [#allocation5], 32  }
  0x26   :  { %3730 = vsyncadd [#allocation5], 4294967264  ;;  %v3735_v0 = vmov 0.0   ;;  %vm3736_vm0 = vmmov 0   ;;  %v3499_v1 = vld [vmem:[%s4688_s1] sm:$0xff]   ;;  %v3500_v2 = vld [vmem:[%s4688_s1 + $0x8] sm:$0xff]  }
  0x27   :  { %3219 = vmatprep.subr.bf16.mxu0 %v3735_v0  ;;  %3223 = vmatprep.mubr.msk.bf16.mxu0 %vm3736_vm0, %v3735_v0  ;;  %v71_v3 = vld [vmem:[%s4687_s0] sm:$0x3]  ;;  %vm96_vm1 = vcmask 261120   ;;  %v3502_v6 = vld [vmem:[%s4690_s3 + $0x8] sm:$0xff]   ;;  %v3505_v17 = vld [vmem:[%s4692_s5 + $0x10] sm:$0xff]   ;;  %s3737_s17 = smov 96  }
  0x28   :  { %3227 = vmatprep.subr.bf16.mxu1 %v3735_v0  ;;  %3231 = vmatprep.mubr.msk.bf16.mxu1 %vm3736_vm0, %v3735_v0  ;;  %v72_v4 = vpack.c.bf16 %v71_v3, %v71_v3  ;;  %v3501_v5 = vld [vmem:[%s4690_s3] sm:$0xff]   ;;  %v3504_v16 = vld [vmem:[%s4692_s5 + $0x8] sm:$0xff]   ;;  %v3506_v18 = vld [vmem:[%s4692_s5 + $0x18] sm:$0xff]   ;;  %s3739_s24 = smov 63   ;;  %s3740_s25 = smov 2   ;;  %vm244_vm2 = vcmask 7168  }
  0x29   :  { %3220 = vmatpush3.bf16.msra.mxu0 %v3499_v1  ;;  %3228 = vmatpush3.bf16.msra.mxu1 %v3501_v5  ;;  %v2896_v7 = vld [vmem:[#allocation2] ss:$0 sm:$0xff]  ;;  %v3508_v28 = vld [vmem:[%s4694_s7 + $0x8] sm:$0xff]   ;;  %v3509_v30 = vld [vmem:[%s4694_s7 + $0x10] sm:$0xff]   ;;  %s3742_s3 = smov 4   ;;  %s3743_s27 = smov 5  }
  0x2a   :  { %3221 = vmatprep.subr.bf16.mxu0 %v3735_v0  ;;  %3229 = vmatprep.subr.bf16.mxu1 %v3735_v0  ;;  %v3503_v15 = vld [vmem:[%s4692_s5] sm:$0xff]   ;;  %v3511_v31 = vld [vmem:[%s4694_s7 + $0x18] sm:$0xff]   ;;  %v3512_v41 = vld [vmem:[%s4694_s7 + $0x28] sm:$0xff]   ;;  %s3744_s29 = smov 6   ;;  %s3745_s30 = smov 8   ;;  %vm461_vm3 = vcmask 15360  }
  0x2b   :  { %v2900_v19 = vld [vmem:[%s4691_s4] ss:$0 sm:$0xff]  ;;  %v2904_v32 = vld [vmem:[#allocation4] ss:$0 sm:$0xff]  ;;  %v2912_v42 = vld [vmem:[#allocation4 + $0x1] ss:$0 sm:$0xff] }
  0x2c   :  { %v3507_v27 = vld [vmem:[%s4694_s7] sm:$0xff]   ;;  %v3515_v49 = vld [vmem:[%s4694_s7 + $0x30] sm:$0xff]   ;;  %v3516_v53 = vld [vmem:[%s4694_s7 + $0x38] sm:$0xff]   ;;  %s3746_s14 = smov 10   ;;  %s3748_s15 = smov 14   ;;  %vm900_vm4 = vcmask 31744  }
  0x2d   :  { %3222 = vmatpush3.bf16.msra.mxu0 %v3500_v2  ;;  %3230 = vmatpush3.bf16.msra.mxu1 %v3502_v6  ;;  %v3510_v39 = vld [vmem:[%s4694_s7 + $0x20] sm:$0xff]   ;;  %v3514_v54 = vld [vmem:[%s4696_s9 + $0x8] sm:$0xff]   ;;  %v3517_v2 = vld [vmem:[%s4696_s9 + $0x10] sm:$0xff]   ;;  %s3749_s7 = smov 7   ;;  %s3750_s2 = smov 13   ;;  %vm902_vm5 = vcmask 48128  }
  0x2e   :  { %3235 = vmatprep.subr.bf16.mxu0 %v3735_v0  ;;  %3243 = vmatprep.subr.bf16.mxu1 %v3735_v0  ;;  %v3513_v51 = vld [vmem:[%s4696_s9] sm:$0xff]   ;;  %v3520_v1 = vld [vmem:[%s4696_s9 + $0x28] sm:$0xff]   ;;  %s3751_s16 = smov 9   ;;  %s3752_s5 = smov 11   ;;  %vm2838_vm6 = vcmask 23552   ;;  %vm2841_vm7 = vcmask 39936  }
  0x2f   :  { %v2916_v55 = vld [vmem:[%s4695_s8] ss:$0 sm:$0xff]  ;;  %v2925_v5 = vld [vmem:[%s4695_s8 + $0x1] ss:$0 sm:$0xff]  ;;  %v2934_v6 = vld [vmem:[%s4695_s8 + $0x2] ss:$0 sm:$0xff] }
  0x30   :  { %3224 = vmatmul.mubr.msk.bf16.vlgmr.msra.gmra.mrb[0].mxu0 %vm96_vm1, %v72_v4  ;;  %v3518_v62 = vld [vmem:[%s4696_s9 + $0x20] sm:$0xff]   ;;  %v3519_v4 = vld [vmem:[%s4696_s9 + $0x18] sm:$0xff]   ;;  %vm1785_vm8 = vcmask 64512   ;;  %vm1787_vm9 = vcmask 80896   ;;  %vm2844_vm10 = vcmask 56320   ;;  %vm1789_vm11 = vcmask 97280  }
  0x31   :  { %3239 = vmatprep.mubr.msk.bf16.mxu0 %vm3736_vm0, %v3735_v0  ;;  %3236 = vmatpush3.bf16.msra.mxu0 %v3503_v15  ;;  %vm2847_vm12 = vcmask 72704   ;;  %vm1791_vm13 = vcmask 113664   ;;  %vm2850_vm14 = vcmask 89088   ;;  %vm2853_vm15 = vcmask 105472   ;;  %s3754_s4 = smov 30  }
  0x32   :  { %3237 = vmatprep.subr.bf16.mxu0 %v3735_v0 }
  0x35   :  { %3238 = vmatpush3.bf16.msra.mxu0 %v3504_v16 }
  0x36   :  { %3251 = vmatprep.subr.bf16.mxu0 %v3735_v0 }
 0x103   :  { %v134_v8 = vpop.f32.mrb[0].mxu0 }
 0x104   :  { %v135_v9 = vadd.f32 %v2896_v7, %v134_v8  ;;  %v3225_v10 = vpop.f32.mrb[1].mxu0 }
 0x105   :  { %v137_v11 = vpop.f32.mrb[2].mxu0 }
 0x106   :  { %v140_v12 = vmax.f32 %v135_v9, 0.0  ;;  %v3226_v13 = vpop.f32.mrb[3].mxu0 }
 0x108   :  { %v141_v14 = vpack.c.bf16 %v140_v12, %v140_v12 }
 0x10a   :  { %3232 = vmatmul.mubr.msk.bf16.vlgmr.msra.gmra.mrb[0].mxu1 %vm96_vm1, %v141_v14 }
 0x10b   :  { %3247 = vmatprep.mubr.msk.bf16.mxu1 %vm3736_vm0, %v3735_v0  ;;  %3244 = vmatpush3.bf16.msra.mxu1 %v3505_v17 }
 0x10c   :  { %3245 = vmatprep.subr.bf16.mxu1 %v3735_v0 }
 0x10f   :  { %3246 = vmatpush3.bf16.msra.mxu1 %v3506_v18 }
 0x110   :  { %3259 = vmatprep.subr.bf16.mxu1 %v3735_v0 }
 0x1dd   :  { %v202_v20 = vpop.f32.mrb[0].mxu1 }
 0x1de   :  { %v3907_v21 = vadd.f32 %v2900_v19, %v202_v20  ;;  %v3233_v22 = vpop.f32.mrb[1].mxu1  ;;  %v3521_v20 = vld [vmem:[%s4696_s9 + $0x40] sm:$0xff]  }
 0x1df   :  { %v205_v23 = vpop.f32.mrb[2].mxu1 }
 0x1e0   :  { %v3234_v24 = vpop.f32.mrb[3].mxu1  ;;  %v208_v25 = vmax.f32 %v3907_v21, 0.0 }
 0x1e1   :  { %v3523_v24 = vld [vmem:[%s4696_s9 + $0x30] sm:$0xff]  }
 0x1e2   :  { %v209_v26 = vpack.c.bf16 %v208_v25, %v208_v25  ;;  %v3522_v25 = vld [vmem:[%s4696_s9 + $0x48] sm:$0xff]  }
 0x1e4   :  { %363 = vrot.lane.b32.xlu0 %v209_v26, %s3737_s17  ;;  %3240 = vmatmul.mubr.msk.bf16.vlgmr.msra.gmra.mrb[4].mxu0 %vm96_vm1, %v209_v26  ;;  %v3525_v26 = vld [vmem:[%s4696_s9 + $0x38] sm:$0xff]  }
 0x1e5   :  { %3255 = vmatprep.mubr.msk.bf16.mxu0 %vm3736_vm0, %v3735_v0  ;;  %3252 = vmatpush3.bf16.msra.mxu0 %v3507_v27  ;;  %v3524_v27 = vld [vmem:[%s4696_s9 + $0x60] sm:$0xff]  }
 0x1e6   :  { %3253 = vmatprep.subr.bf16.mxu0 %v3735_v0 }
 0x1e9   :  { %3254 = vmatpush3.bf16.msra.mxu0 %v3508_v28  ;;  %v3526_v28 = vld [vmem:[%s4696_s9 + $0x68] sm:$0xff]  }
 0x1ea   :  { %3267 = vmatprep.subr.bf16.mxu0 %v3735_v0 }
 0x256   :  { %v364_v29 = vpop.permute.xlu0 %363 }
 0x257   :  { %3248 = vmatmul.mubr.msk.bf16.vlgmr.msra.gmra.mrb[4].mxu1 %vm96_vm1, %v364_v29  ;;  %v2947_v29 = vld [vmem:[%s4697_s10] ss:$0 sm:$0xff] }
 0x258   :  { %3263 = vmatprep.mubr.msk.bf16.mxu1 %vm3736_vm0, %v3735_v0  ;;  %3260 = vmatpush3.bf16.msra.mxu1 %v3509_v30 }
 0x259   :  { %3261 = vmatprep.subr.bf16.mxu1 %v3735_v0 }
 0x25c   :  { %3262 = vmatpush3.bf16.msra.mxu1 %v3511_v31 }
 0x25d   :  { %3275 = vmatprep.subr.bf16.mxu1 %v3735_v0 }
 0x2b7   :  { %v306_v33 = vpop.f32.mrb[4].mxu0 }
 0x2b8   :  { %v3933_v34 = vadd.f32 %v2904_v32, %v306_v33  ;;  %v3241_v35 = vpop.f32.mrb[5].mxu0 }
 0x2b9   :  { %v309_v36 = vpop.f32.mrb[6].mxu0 }
 0x2ba   :  { %v3242_v37 = vpop.f32.mrb[7].mxu0  ;;  %v312_v38 = vmax.f32 %v3933_v34, 0.0 }
 0x2bc   :  { %v313_v40 = vpack.c.bf16 %v312_v38, %v312_v38  ;;  %v2943_v38 = vld [vmem:[%s4695_s8 + $0x3] ss:$0 sm:$0xff] }
 0x2be   :  { %580 = vrot.lane.b32.xlu0 %v313_v40, %s3737_s17  ;;  %3256 = vmatmul.mubr.msk.bf16.vlgmr.msra.gmra.mrb[8].mxu0 %vm96_vm1, %v313_v40 }
 0x2bf   :  { %3268 = vmatpush3.bf16.msra.mxu0 %v3510_v39  ;;  %3271 = vmatprep.mubr.msk.bf16.mxu0 %vm3736_vm0, %v3735_v0 }
 0x2c0   :  { %3269 = vmatprep.subr.bf16.mxu0 %v3735_v0 }
 0x2c3   :  { %3270 = vmatpush3.bf16.msra.mxu0 %v3512_v41 }
 0x2c4   :  { %3283 = vmatprep.subr.bf16.mxu0 %v3735_v0 }
 0x32a   :  { %v414_v43 = vpop.f32.mrb[4].mxu1 }
 0x32b   :  { %v3948_v44 = vadd.f32 %v2912_v42, %v414_v43  ;;  %v3249_v45 = vpop.f32.mrb[5].mxu1 }
 0x32c   :  { %v417_v46 = vpop.f32.mrb[6].mxu1 }
 0x32d   :  { %v3250_v47 = vpop.f32.mrb[7].mxu1  ;;  %v420_v48 = vmax.f32 %v3948_v44, 0.0  ;;  %v3527_v46 = vld [vmem:[%s4696_s9 + $0x50] sm:$0xff]  }
 0x32f   :  { %v421_v50 = vpack.c.bf16 %v420_v48, %v420_v48  ;;  %v3528_v48 = vld [vmem:[%s4698_s11] sm:$0xff]  }
 0x330   :  { %v581_v52 = vpop.permute.xlu0 %580 }
 0x331   :  { %793 = vrot.lane.b32.xlu1 %v421_v50, %s3737_s17  ;;  %3264 = vmatmul.mubr.msk.bf16.vlgmr.msra.gmra.mrb[8].mxu1 %vm96_vm1, %v581_v52  ;;  %v3534_v52 = vld [vmem:[%s4696_s9 + $0x70] sm:$0xff]  }
 0x332   :  { %3272 = vmatmul.mubr.msk.bf16.vlgmr.msra.gmra.mrb[12].mxu0 %vm96_vm1, %v421_v50  ;;  %3276 = vmatpush3.bf16.msra.mxu1 %v3515_v49  ;;  %v3529_v50 = vld [vmem:[%s4696_s9 + $0x58] sm:$0xff]  }
 0x333   :  { %3284 = vmatpush3.bf16.msra.mxu0 %v3513_v51  ;;  %3287 = vmatprep.mubr.msk.bf16.mxu0 %vm3736_vm0, %v3735_v0  ;;  %v3530_v51 = vld [vmem:[%s4698_s11 + $0x8] sm:$0xff]  }
 0x334   :  { %3285 = vmatprep.subr.bf16.mxu0 %v3735_v0  ;;  %3277 = vmatprep.subr.bf16.mxu1 %v3735_v0 }
 0x335   :  { %3279 = vmatprep.mubr.msk.bf16.mxu1 %vm3736_vm0, %v3735_v0 }
 0x336   :  { %3278 = vmatpush3.bf16.msra.mxu1 %v3516_v53  ;;  %v3531_v53 = vld [vmem:[%s4698_s11 + $0x20] sm:$0xff]  }
 0x337   :  { %3286 = vmatpush3.bf16.msra.mxu0 %v3514_v54  ;;  %3291 = vmatprep.subr.bf16.mxu1 %v3735_v0 }
 0x338   :  { %3299 = vmatprep.subr.bf16.mxu0 %v3735_v0 }
 0x391   :  { %v523_v56 = vpop.f32.mrb[8].mxu0 }
 0x392   :  { %v3977_v57 = vadd.f32 %v2916_v55, %v523_v56  ;;  %v3257_v58 = vpop.f32.mrb[9].mxu0  ;;  %v3536_v55 = vld [vmem:[%s4696_s9 + $0x78] sm:$0xff]   ;;  %v3532_v56 = vld [vmem:[%s4698_s11 + $0x28] sm:$0xff]   ;;  %s3747_s9 = smov 12  }
 0x393   :  { %v526_v59 = vpop.f32.mrb[10].mxu0  ;;  %v2956_v58 = vld [vmem:[%s4697_s10 + $0x1] ss:$0 sm:$0xff] }
 0x394   :  { %v3258_v60 = vpop.f32.mrb[11].mxu0  ;;  %v529_v61 = vmax.f32 %v3977_v57, 0.0  ;;  %v2965_v59 = vld [vmem:[%s4697_s10 + $0x2] ss:$0 sm:$0xff] }
 0x396   :  { %v530_v63 = vpack.c.bf16 %v529_v61, %v529_v61 }
 0x398   :  { %1021 = vrot.lane.b32.xlu1 %v530_v63, %s3737_s17  ;;  %3288 = vmatmul.mubr.msk.bf16.vlgmr.msra.gmra.mrb[16].mxu0 %vm96_vm1, %v530_v63 }
 0x399   :  { %3300 = vmatpush3.bf16.msra.mxu0 %v3518_v62  ;;  %3303 = vmatprep.mubr.msk.bf16.mxu0 %vm3736_vm0, %v3735_v0 }
 0x39a   :  { %3301 = vmatprep.subr.bf16.mxu0 %v3735_v0 }
 0x39d   :  { %3302 = vmatpush3.bf16.msra.mxu0 %v3520_v1 }
 0x39e   :  { %3315 = vmatprep.subr.bf16.mxu0 %v3735_v0 }
 0x3a3   :  { %v794_v3 = vpop.permute.xlu1 %793 }
 0x3a4   :  { %3280 = vmatmul.mubr.msk.bf16.vlgmr.msra.gmra.mrb[12].mxu1 %vm96_vm1, %v794_v3 }
 0x3a5   :  { %3292 = vmatpush3.bf16.msra.mxu1 %v3517_v2  ;;  %3295 = vmatprep.mubr.msk.bf16.mxu1 %vm3736_vm0, %v3735_v0 }
 0x3a6   :  { %3293 = vmatprep.subr.bf16.mxu1 %v3735_v0 }
 0x3a9   :  { %3294 = vmatpush3.bf16.msra.mxu1 %v3519_v4 }
 0x3aa   :  { %3307 = vmatprep.subr.bf16.mxu1 %v3735_v0 }
 0x404   :  { %v631_v7 = vpop.f32.mrb[8].mxu1 }
 0x405   :  { %v4009_v8 = vadd.f32 %v2925_v5, %v631_v7  ;;  %v736_v9 = vpop.f32.mrb[12].mxu0  ;;  %v3265_v10 = vpop.f32.mrb[9].mxu1 }
 0x406   :  { %v4011_v11 = vadd.f32 %v2934_v6, %v736_v9  ;;  %v3273_v12 = vpop.f32.mrb[13].mxu0  ;;  %v634_v13 = vpop.f32.mrb[10].mxu1  ;;  %v3533_v10 = vld [vmem:[%s4698_s11 + $0x40] sm:$0xff]  }
 0x407   :  { %v739_v14 = vpop.f32.mrb[14].mxu0  ;;  %v3266_v15 = vpop.f32.mrb[11].mxu1  ;;  %v637_v16 = vmax.f32 %v4009_v8, 0.0 }
 0x408   :  { %v3274_v17 = vpop.f32.mrb[15].mxu0  ;;  %v742_v18 = vmax.f32 %v4011_v11, 0.0  ;;  %v2983_v14 = vld [vmem:[%s4697_s10 + $0x4] ss:$0 sm:$0xff]  ;;  %v3535_v15 = vld [vmem:[%s4698_s11 + $0x48] sm:$0xff]  }
 0x409   :  { %v638_v19 = vpack.c.bf16 %v637_v16, %v637_v16 }
 0x40a   :  { %v1022_v22 = vpop.permute.xlu1 %1021  ;;  %v743_v23 = vpack.c.bf16 %v742_v18, %v742_v18 }
 0x40b   :  { %1234 = vrot.lane.b32.xlu0 %v638_v19, %s3737_s17  ;;  %3296 = vmatmul.mubr.msk.bf16.vlgmr.msra.gmra.mrb[16].mxu1 %vm96_vm1, %v1022_v22 }
 0x40c   :  { %3304 = vmatmul.mubr.msk.bf16.vlgmr.msra.gmra.mrb[20].mxu0 %vm96_vm1, %v638_v19  ;;  %1447 = vrot.lane.b32.xlu1 %v743_v23, %s3737_s17 }
 0x40d   :  { %3316 = vmatpush3.bf16.msra.mxu0 %v3521_v20  ;;  %3319 = vmatprep.mubr.msk.bf16.mxu0 %vm3736_vm0, %v3735_v0 }
 0x40e   :  { %3317 = vmatprep.subr.bf16.mxu0 %v3735_v0  ;;  %3308 = vmatpush3.bf16.msra.mxu1 %v3523_v24 }
 0x40f   :  { %3309 = vmatprep.subr.bf16.mxu1 %v3735_v0  ;;  %3311 = vmatprep.mubr.msk.bf16.mxu1 %vm3736_vm0, %v3735_v0 }
 0x411   :  { %3318 = vmatpush3.bf16.msra.mxu0 %v3522_v25  ;;  %v3537_v25 = vld [vmem:[%s4698_s11 + $0x10] sm:$0xff]  }
 0x412   :  { %3331 = vmatprep.subr.bf16.mxu0 %v3735_v0  ;;  %3310 = vmatpush3.bf16.msra.mxu1 %v3525_v26  ;;  %v3542_v26 = vld [vmem:[%s4698_s11 + $0x68] sm:$0xff]  }
 0x413   :  { %3323 = vmatprep.subr.bf16.mxu1 %v3735_v0 }
 0x414   :  { %3320 = vmatmul.mubr.msk.bf16.vlgmr.msra.gmra.mrb[24].mxu0 %vm96_vm1, %v743_v23  ;;  %v3540_v23 = vld [vmem:[%s4698_s11 + $0x60] sm:$0xff]  }
 0x415   :  { %3332 = vmatpush3.bf16.msra.mxu0 %v3524_v27  ;;  %3335 = vmatprep.mubr.msk.bf16.mxu0 %vm3736_vm0, %v3735_v0 }
 0x416   :  { %3333 = vmatprep.subr.bf16.mxu0 %v3735_v0 }
 0x419   :  { %3334 = vmatpush3.bf16.msra.mxu0 %v3526_v28  ;;  %v3538_v28 = vld [vmem:[%s4698_s11 + $0x18] sm:$0xff]  }
 0x41a   :  { %3347 = vmatprep.subr.bf16.mxu0 %v3735_v0 }
 0x46b   :  { %v964_v30 = vpop.f32.mrb[16].mxu0 }
 0x46c   :  { %v4053_v31 = vadd.f32 %v2947_v29, %v964_v30  ;;  %v3289_v32 = vpop.f32.mrb[17].mxu0  ;;  %v3539_v29 = vld [vmem:[%s4698_s11 + $0x30] sm:$0xff]  }
 0x46d   :  { %v967_v33 = vpop.f32.mrb[18].mxu0  ;;  %v3541_v32 = vld [vmem:[%s4698_s11 + $0x38] sm:$0xff]  }
 0x46e   :  { %v3290_v35 = vpop.f32.mrb[19].mxu0  ;;  %v970_v36 = vmax.f32 %v4053_v31, 0.0  ;;  %v2974_v33 = vld [vmem:[%s4697_s10 + $0x3] ss:$0 sm:$0xff] }
 0x46f   :  { %v3001_v35 = vld [vmem:[%s4697_s10 + $0x6] ss:$0 sm:$0xff] }
 0x470   :  { %v971_v37 = vpack.c.bf16 %v970_v36, %v970_v36 }
 0x472   :  { %1858 = vrot.lane.b32.xlu1 %v971_v37, %s3737_s17 }
 0x477   :  { %v844_v39 = vpop.f32.mrb[12].mxu1 }
 0x478   :  { %v4060_v40 = vadd.f32 %v2943_v38, %v844_v39  ;;  %v3281_v41 = vpop.f32.mrb[13].mxu1 }
 0x479   :  { %v847_v42 = vpop.f32.mrb[14].mxu1 }
 0x47a   :  { %v3282_v43 = vpop.f32.mrb[15].mxu1  ;;  %v850_v45 = vmax.f32 %v4060_v40, 0.0 }
 0x47c   :  { %v851_v47 = vpack.c.bf16 %v850_v45, %v850_v45 }
 0x47d   :  { %v1235_v49 = vpop.permute.xlu0 %1234 }
 0x47e   :  { %1660 = vrot.lane.b32.xlu0 %v851_v47, %s3737_s17  ;;  %3312 = vmatmul.mubr.msk.bf16.vlgmr.msra.gmra.mrb[20].mxu1 %vm96_vm1, %v1235_v49  ;;  %v1448_v54 = vpop.permute.xlu1 %1447 }
 0x47f   :  { %3336 = vmatmul.mubr.msk.bf16.vlgmr.msra.gmra.mrb[28].mxu0 %vm96_vm1, %v851_v47  ;;  %3324 = vmatpush3.bf16.msra.mxu1 %v3527_v46 }
 0x480   :  { %3348 = vmatpush3.bf16.msra.mxu0 %v3528_v48  ;;  %3325 = vmatprep.subr.bf16.mxu1 %v3735_v0 }
 0x481   :  { %3349 = vmatprep.subr.bf16.mxu0 %v3735_v0  ;;  %3327 = vmatprep.mubr.msk.bf16.mxu1 %vm3736_vm0, %v3735_v0 }
 0x482   :  { %3351 = vmatprep.mubr.msk.bf16.mxu0 %vm3736_vm0, %v3735_v0 }
 0x483   :  { %3326 = vmatpush3.bf16.msra.mxu1 %v3529_v50 }
 0x484   :  { %3350 = vmatpush3.bf16.msra.mxu0 %v3530_v51  ;;  %3339 = vmatprep.subr.bf16.mxu1 %v3735_v0  ;;  %v3543_v51 = vld [vmem:[%s4698_s11 + $0x50] sm:$0xff]  }
 0x485   :  { %3363 = vmatprep.subr.bf16.mxu0 %v3735_v0 }
 0x486   :  { %3328 = vmatmul.mubr.msk.bf16.vlgmr.msra.gmra.mrb[24].mxu1 %vm96_vm1, %v1448_v54 }
 0x487   :  { %3352 = vmatmul.mubr.msk.bf16.vlgmr.msra.gmra.mrb[32].mxu0 %vm96_vm1, %v971_v37  ;;  %3340 = vmatpush3.bf16.msra.mxu1 %v3534_v52  ;;  %v3544_v52 = vld [vmem:[%s4698_s11 + $0x80] sm:$0xff]  }
 0x488   :  { %3364 = vmatpush3.bf16.msra.mxu0 %v3531_v53  ;;  %3367 = vmatprep.mubr.msk.bf16.mxu0 %vm3736_vm0, %v3735_v0 }
 0x489   :  { %3365 = vmatprep.subr.bf16.mxu0 %v3735_v0  ;;  %3341 = vmatprep.subr.bf16.mxu1 %v3735_v0 }
 0x48a   :  { %3343 = vmatprep.mubr.msk.bf16.mxu1 %vm3736_vm0, %v3735_v0 }
 0x48b   :  { %3342 = vmatpush3.bf16.msra.mxu1 %v3536_v55  ;;  %v2992_v55 = vld [vmem:[%s4697_s10 + $0x5] ss:$0 sm:$0xff] }
 0x48c   :  { %3366 = vmatpush3.bf16.msra.mxu0 %v3532_v56  ;;  %3355 = vmatprep.subr.bf16.mxu1 %v3735_v0 }
 0x48d   :  { %3379 = vmatprep.subr.bf16.mxu0 %v3735_v0 }
 0x4de   :  { %v1072_v60 = vpop.f32.mrb[16].mxu1 }
 0x4df   :  { %v4114_v61 = vadd.f32 %v2956_v58, %v1072_v60  ;;  %v1177_v62 = vpop.f32.mrb[20].mxu0  ;;  %v3297_v63 = vpop.f32.mrb[17].mxu1 }
 0x4e0   :  { %v4116_v1 = vadd.f32 %v2965_v59, %v1177_v62  ;;  %v3305_v2 = vpop.f32.mrb[21].mxu0  ;;  %v1075_v3 = vpop.f32.mrb[18].mxu1  ;;  %v3545_v62 = vld [vmem:[%s4698_s11 + $0x58] sm:$0xff]   ;;  %v3546_v63 = vld [vmem:[%s4698_s11 + $0x88] sm:$0xff]  }
 0x4e1   :  { %v1180_v4 = vpop.f32.mrb[22].mxu0  ;;  %v3298_v5 = vpop.f32.mrb[19].mxu1  ;;  %v1078_v6 = vmax.f32 %v4114_v61, 0.0 }
 0x4e2   :  { %v3306_v7 = vpop.f32.mrb[23].mxu0  ;;  %v1183_v9 = vmax.f32 %v4116_v1, 0.0 }
 0x4e3   :  { %v1079_v12 = vpack.c.bf16 %v1078_v6, %v1078_v6 }
 0x4e4   :  { %v1184_v13 = vpack.c.bf16 %v1183_v9, %v1183_v9  ;;  %v1859_v30 = vpop.permute.xlu1 %1858 }
 0x4e5   :  { %1981 = vrot.lane.b32.xlu0 %v1079_v12, %s3737_s17  ;;  %3368 = vmatmul.mubr.msk.bf16.vlgmr.msra.gmra.mrb[36].mxu0 %vm96_vm1, %v1079_v12 }
 0x4e6   :  { %2104 = vrot.lane.b32.xlu1 %v1184_v13, %s3737_s17  ;;  %3380 = vmatpush3.bf16.msra.mxu0 %v3533_v10  ;;  %v3547_v10 = vld [vmem:[%s4698_s11 + $0xa0] sm:$0xff]  }
 0x4e7   :  { %v1390_v16 = vpop.f32.mrb[24].mxu0  ;;  %3381 = vmatprep.subr.bf16.mxu0 %v3735_v0  ;;  %3383 = vmatprep.mubr.msk.bf16.mxu0 %vm3736_vm0, %v3735_v0 }
 0x4e8   :  { %v4135_v17 = vadd.f32 %v2983_v14, %v1390_v16  ;;  %v3321_v18 = vpop.f32.mrb[25].mxu0  ;;  %v3548_v14 = vld [vmem:[%s4698_s11 + $0xa8] sm:$0xff]   ;;  %v3549_v16 = vld [vmem:[%s4698_s11 + $0xc0] sm:$0xff]  }
 0x4e9   :  { %v1393_v19 = vpop.f32.mrb[26].mxu0  ;;  %v3550_v18 = vld [vmem:[%s4698_s11 + $0xc8] sm:$0xff]  }
 0x4ea   :  { %v3322_v20 = vpop.f32.mrb[27].mxu0  ;;  %3382 = vmatpush3.bf16.msra.mxu0 %v3535_v15  ;;  %v1396_v22 = vmax.f32 %v4135_v17, 0.0  ;;  %v3553_v15 = vld [vmem:[%s4698_s11 + $0x78] sm:$0xff]   ;;  %v3552_v19 = vld [vmem:[%s4698_s11 + $0xe0] sm:$0xff]  }
 0x4eb   :  { %3395 = vmatprep.subr.bf16.mxu0 %v3735_v0  ;;  %v3554_v20 = vld [vmem:[%s4698_s11 + $0xe8] sm:$0xff]  }
 0x4ec   :  { %v4142_v24 = vpack.c.bf16 %v1396_v22, %v1396_v22 }
 0x4ed   :  { %3384 = vmatmul.mubr.msk.bf16.vlgmr.msra.gmra.mrb[40].mxu0 %vm96_vm1, %v1184_v13  ;;  %v3551_v13 = vld [vmem:[%s4698_s11 + $0x70] sm:$0xff]  }
 0x4ee   :  { %2350 = vrot.lane.b32.xlu1 %v4142_v24, %s3737_s17  ;;  %3396 = vmatpush3.bf16.msra.mxu0 %v3540_v23 }
 0x4ef   :  { %3397 = vmatprep.subr.bf16.mxu0 %v3735_v0  ;;  %3399 = vmatprep.mubr.msk.bf16.mxu0 %vm3736_vm0, %v3735_v0 }
 0x4f0   :  { %v1661_v27 = vpop.permute.xlu0 %1660 }
 0x4f1   :  { %3344 = vmatmul.mubr.msk.bf16.vlgmr.msra.gmra.mrb[28].mxu1 %vm96_vm1, %v1661_v27 }
 0x4f2   :  { %3356 = vmatpush3.bf16.msra.mxu1 %v3537_v25  ;;  %3359 = vmatprep.mubr.msk.bf16.mxu1 %vm3736_vm0, %v3735_v0 }
 0x4f3   :  { %3357 = vmatprep.subr.bf16.mxu1 %v3735_v0  ;;  %3398 = vmatpush3.bf16.msra.mxu0 %v3542_v26 }
 0x4f4   :  { %3411 = vmatprep.subr.bf16.mxu0 %v3735_v0 }
 0x4f6   :  { %3358 = vmatpush3.bf16.msra.mxu1 %v3538_v28 }
 0x4f7   :  { %3371 = vmatprep.subr.bf16.mxu1 %v3735_v0 }
 0x4f9   :  { %3360 = vmatmul.mubr.msk.bf16.vlgmr.msra.gmra.mrb[32].mxu1 %vm96_vm1, %v1859_v30 }
 0x4fa   :  { %3372 = vmatpush3.bf16.msra.mxu1 %v3539_v29  ;;  %3375 = vmatprep.mubr.msk.bf16.mxu1 %vm3736_vm0, %v3735_v0  ;;  %v3010_v29 = vld [vmem:[%s4697_s10 + $0x7] ss:$0 sm:$0xff]  ;;  %s3753_s10 = smov 15  }
 0x4fb   :  { %3373 = vmatprep.subr.bf16.mxu1 %v3735_v0 }
 0x4fe   :  { %3374 = vmatpush3.bf16.msra.mxu1 %v3541_v32 }
 0x4ff   :  { %3387 = vmatprep.subr.bf16.mxu1 %v3735_v0 }
 0x551   :  { %v1285_v36 = vpop.f32.mrb[20].mxu1 }
 0x552   :  { %v4182_v37 = vadd.f32 %v2974_v33, %v1285_v36  ;;  %v1603_v38 = vpop.f32.mrb[28].mxu0  ;;  %v3313_v39 = vpop.f32.mrb[21].mxu1 }
 0x553   :  { %v4184_v41 = vadd.f32 %v3001_v35, %v1603_v38  ;;  %v3337_v42 = vpop.f32.mrb[29].mxu0  ;;  %v1288_v43 = vpop.f32.mrb[22].mxu1 }
 0x554   :  { %v1606_v45 = vpop.f32.mrb[30].mxu0  ;;  %v3314_v46 = vpop.f32.mrb[23].mxu1  ;;  %v1291_v47 = vmax.f32 %v4182_v37, 0.0  ;;  %v3555_v42 = vld [vmem:[%s4698_s11 + $0x90] sm:$0xff]  }
 0x555   :  { %v3338_v48 = vpop.f32.mrb[31].mxu0  ;;  %v1609_v49 = vmax.f32 %v4184_v41, 0.0 }
 0x556   :  { %v1292_v50 = vpack.c.bf16 %v1291_v47, %v1291_v47  ;;  %v3556_v47 = vld [vmem:[%s4698_s11 + $0x98] sm:$0xff]  }
 0x557   :  { %v1982_v53 = vpop.permute.xlu0 %1981  ;;  %v1610_v54 = vpack.c.bf16 %v1609_v49, %v1609_v49 }
 0x558   :  { %2227 = vrot.lane.b32.xlu0 %v1292_v50, %s3737_s17  ;;  %3376 = vmatmul.mubr.msk.bf16.vlgmr.msra.gmra.mrb[36].mxu1 %vm96_vm1, %v1982_v53  ;;  %v2105_v12 = vpop.permute.xlu1 %2104  ;;  %v3558_v53 = vld [vmem:[%s4698_s11 + $0xb8] sm:$0xff]  }
 0x559   :  { %3400 = vmatmul.mubr.msk.bf16.vlgmr.msra.gmra.mrb[44].mxu0 %vm96_vm1, %v1292_v50  ;;  %2596 = vrot.lane.b32.xlu1 %v1610_v54, %s3737_s17  ;;  %v1498_v56 = vpop.f32.mrb[24].mxu1 }
 0x55a   :  { %v4201_v58 = vadd.f32 %v2992_v55, %v1498_v56  ;;  %v4203_v59 = vpop.f32.mrb[32].mxu0  ;;  %3388 = vmatpush3.bf16.msra.mxu1 %v3543_v51  ;;  %3412 = vmatpush3.bf16.msra.mxu0 %v3544_v52  ;;  %v3329_v60 = vpop.f32.mrb[25].mxu1  ;;  %v3557_v51 = vld [vmem:[%s4698_s11 + $0xb0] sm:$0xff]   ;;  %v3560_v56 = vld [vmem:[%s4698_s11 + $0xd8] sm:$0xff]  }
 0x55b   :  { %v3353_v2 = vpop.f32.mrb[33].mxu0  ;;  %v1501_v3 = vpop.f32.mrb[26].mxu1  ;;  %3389 = vmatprep.subr.bf16.mxu1 %v3735_v0  ;;  %3413 = vmatprep.subr.bf16.mxu0 %v3735_v0  ;;  %v3561_v60 = vld [vmem:[%s4698_s11 + $0xf0] sm:$0xff]  }
 0x55c   :  { %v1849_v4 = vpop.f32.mrb[34].mxu0  ;;  %v3330_v5 = vpop.f32.mrb[27].mxu1  ;;  %3391 = vmatprep.mubr.msk.bf16.mxu1 %vm3736_vm0, %v3735_v0  ;;  %3415 = vmatprep.mubr.msk.bf16.mxu0 %vm3736_vm0, %v3735_v0  ;;  %v1504_v6 = vmax.f32 %v4201_v58, 0.0 }
 0x55d   :  { %211 = vrot.lane.b32.xlu1 %v3907_v21, %s3734_s26  ;;  %v3354_v7 = vpop.f32.mrb[35].mxu0 }
 0x55e   :  { %3390 = vmatpush3.bf16.msra.mxu1 %v3545_v62  ;;  %3414 = vmatpush3.bf16.msra.mxu0 %v3546_v63  ;;  %v1505_v9 = vpack.c.bf16 %v1504_v6, %v1504_v6  ;;  %v3562_v63 = vld [vmem:[%s4698_s11 + $0xf8] sm:$0xff]  }
 0x55f   :  { %3427 = vmatprep.subr.bf16.mxu0 %v3735_v0  ;;  %3403 = vmatprep.subr.bf16.mxu1 %v3735_v0 }
 0x560   :  { %2473 = vrot.lane.b32.xlu0 %v1505_v9, %s3737_s17  ;;  %v2351_v52 = vpop.permute.xlu1 %2350 }
 0x561   :  { %3392 = vmatmul.mubr.msk.bf16.vlgmr.msra.gmra.mrb[40].mxu1 %vm96_vm1, %v2105_v12  ;;  %3416 = vmatmul.mubr.msk.bf16.vlgmr.msra.gmra.mrb[48].mxu0 %vm96_vm1, %v4142_v24 }
 0x562   :  { %532 = vrot.lane.b32.xlu1 %v3977_v57, %s3734_s26  ;;  %3428 = vmatpush3.bf16.msra.mxu0 %v3547_v10 }
 0x563   :  { %3429 = vmatprep.subr.bf16.mxu0 %v3735_v0  ;;  %3431 = vmatprep.mubr.msk.bf16.mxu0 %vm3736_vm0, %v3735_v0 }
 0x564   :  { %3404 = vmatpush3.bf16.msra.mxu1 %v3551_v13  ;;  %3407 = vmatprep.mubr.msk.bf16.mxu1 %vm3736_vm0, %v3735_v0 }
 0x565   :  { %3405 = vmatprep.subr.bf16.mxu1 %v3735_v0 }
 0x566   :  { %1081 = vrot.lane.b32.xlu1 %v4114_v61, %s3734_s26  ;;  %3430 = vmatpush3.bf16.msra.mxu0 %v3548_v14 }
 0x567   :  { %3443 = vmatprep.subr.bf16.mxu0 %v3735_v0 }
 0x568   :  { %3406 = vmatpush3.bf16.msra.mxu1 %v3553_v15 }
 0x569   :  { %3432 = vmatmul.mubr.msk.bf16.vlgmr.msra.gmra.mrb[52].mxu0 %vm96_vm1, %v1505_v9  ;;  %3419 = vmatprep.subr.bf16.mxu1 %v3735_v0 }
 0x56a   :  { %1186 = vrot.lane.b32.xlu1 %v4116_v1, %s3734_s26  ;;  %3444 = vmatpush3.bf16.msra.mxu0 %v3549_v16 }
 0x56b   :  { %3445 = vmatprep.subr.bf16.mxu0 %v3735_v0  ;;  %3447 = vmatprep.mubr.msk.bf16.mxu0 %vm3736_vm0, %v3735_v0 }
 0x56e   :  { %1294 = vrot.lane.b32.xlu1 %v4182_v37, %s3734_s26  ;;  %3446 = vmatpush3.bf16.msra.mxu0 %v3550_v18 }
 0x56f   :  { %3459 = vmatprep.subr.bf16.mxu0 %v3735_v0 }
 0x571   :  { %3448 = vmatmul.mubr.msk.bf16.vlgmr.msra.gmra.mrb[56].mxu0 %vm96_vm1, %v1610_v54  ;;  %v3559_v54 = vld [vmem:[%s4698_s11 + $0xd0] sm:$0xff]   ;;  %s3738_s11 = smov 64  }
 0x572   :  { %853 = vrot.lane.b32.xlu1 %v4060_v40, %s3734_s26  ;;  %3460 = vmatpush3.bf16.msra.mxu0 %v3552_v19 }
 0x573   :  { %3461 = vmatprep.subr.bf16.mxu0 %v3735_v0  ;;  %3463 = vmatprep.mubr.msk.bf16.mxu0 %vm3736_vm0, %v3735_v0 }
 0x576   :  { %1612 = vrot.lane.b32.xlu1 %v4184_v41, %s3734_s26  ;;  %3462 = vmatpush3.bf16.msra.mxu0 %v3554_v20 }
 0x57a   :  { %973 = vrot.lane.b32.xlu1 %v4053_v31, %s3734_s26 }
 0x5b8   :  { %v4281_v22 = vpop.f32.mrb[36].mxu0 }
 0x5b9   :  { %v3369_v23 = vpop.f32.mrb[37].mxu0 }
 0x5ba   :  { %v1972_v24 = vpop.f32.mrb[38].mxu0 }
 0x5bb   :  { %v3370_v25 = vpop.f32.mrb[39].mxu0 }
 0x5c0   :  { %v4283_v26 = vpop.f32.mrb[40].mxu0 }
 0x5c1   :  { %v3385_v27 = vpop.f32.mrb[41].mxu0 }
 0x5c2   :  { %v2095_v28 = vpop.f32.mrb[42].mxu0 }
 0x5c3   :  { %v3386_v30 = vpop.f32.mrb[43].mxu0 }
 0x5c4   :  { %v1711_v32 = vpop.f32.mrb[28].mxu1 }
 0x5c5   :  { %v4288_v33 = vadd.f32 %v3010_v29, %v1711_v32  ;;  %v3345_v35 = vpop.f32.mrb[29].mxu1 }
 0x5c6   :  { %v1714_v36 = vpop.f32.mrb[30].mxu1 }
 0x5c7   :  { %v3346_v38 = vpop.f32.mrb[31].mxu1  ;;  %v1717_v39 = vmax.f32 %v4288_v33, 0.0 }
 0x5c9   :  { %v1718_v43 = vpack.c.bf16 %v1717_v39, %v1717_v39 }
 0x5ca   :  { %v2228_v45 = vpop.permute.xlu0 %2227 }
 0x5cb   :  { %2719 = vrot.lane.b32.xlu0 %v1718_v43, %s3737_s17  ;;  %3408 = vmatmul.mubr.msk.bf16.vlgmr.msra.gmra.mrb[44].mxu1 %vm96_vm1, %v2228_v45  ;;  %v2597_v62 = vpop.permute.xlu1 %2596 }
 0x5cc   :  { %3464 = vmatmul.mubr.msk.bf16.vlgmr.msra.gmra.mrb[60].mxu0 %vm96_vm1, %v1718_v43  ;;  %v4297_v46 = vpop.f32.mrb[32].mxu1  ;;  %3420 = vmatpush3.bf16.msra.mxu1 %v3555_v42 }
 0x5cd   :  { %v3361_v48 = vpop.f32.mrb[33].mxu1  ;;  %3421 = vmatprep.subr.bf16.mxu1 %v3735_v0  ;;  %3423 = vmatprep.mubr.msk.bf16.mxu1 %vm3736_vm0, %v3735_v0 }
 0x5ce   :  { %v1912_v49 = vpop.f32.mrb[34].mxu1 }
 0x5cf   :  { %315 = vrot.lane.b32.xlu0 %v3933_v34, %s3734_s26  ;;  %v3362_v50 = vpop.f32.mrb[35].mxu1  ;;  %v212_v2 = vpop.permute.xlu1 %211 }
 0x5d0   :  { %3422 = vmatpush3.bf16.msra.mxu1 %v3556_v47  ;;  %v4353_v3 = vsub.f32 %v3907_v21, %v212_v2 }
 0x5d1   :  { %3435 = vmatprep.subr.bf16.mxu1 %v3735_v0 }
 0x5d2   :  { %v2474_v55 = vpop.permute.xlu0 %2473  ;;  %v225_v6 = vsub.f32 0.0, %v4353_v3  ;;  %v216_v7 = vand.u32 2147483647, %v4353_v3 }
 0x5d3   :  { %640 = vrot.lane.b32.xlu0 %v4009_v8, %s3734_s26  ;;  %3424 = vmatmul.mubr.msk.bf16.vlgmr.msra.gmra.mrb[48].mxu1 %vm96_vm1, %v2351_v52 }
 0x5d4   :  { %3436 = vmatpush3.bf16.msra.mxu1 %v3557_v51  ;;  %3439 = vmatprep.mubr.msk.bf16.mxu1 %vm3736_vm0, %v3735_v0  ;;  %v533_v4 = vpop.permute.xlu1 %532  ;;  %v217_v12 = vsub.f32 0.0, %v216_v7 }
 0x5d5   :  { %3437 = vmatprep.subr.bf16.mxu1 %v3735_v0  ;;  %v4356_v5 = vsub.f32 %v3977_v57, %v533_v4 }
 0x5d6   :  { %v218_v19 = vmul.f32 1.442695, %v217_v12 }
 0x5d7   :  { %423 = vrot.lane.b32.xlu0 %v3948_v44, %s3734_s26  ;;  %v546_v10 = vsub.f32 0.0, %v4356_v5 }
 0x5d8   :  { %3438 = vmatpush3.bf16.msra.mxu1 %v3558_v53  ;;  %v1082_v9 = vpop.permute.xlu1 %1081  ;;  %3563 = vpow2.f32 %v218_v19 }
 0x5d9   :  { %3451 = vmatprep.subr.bf16.mxu1 %v3735_v0  ;;  %v548_v13 = vand.u32 2147483647, %v546_v10  ;;  %v4366_v21 = vsub.f32 %v4114_v61, %v1082_v9 }
 0x5db   :  { %745 = vrot.lane.b32.xlu0 %v4011_v11, %s3734_s26  ;;  %3440 = vmatmul.mubr.msk.bf16.vlgmr.msra.gmra.mrb[52].mxu1 %vm96_vm1, %v2474_v55  ;;  %v549_v24 = vsub.f32 0.0, %v548_v13  ;;  %v1086_v25 = vand.u32 2147483647, %v4366_v21  ;;  %v1095_v61 = vsub.f32 0.0, %v4366_v21 }
 0x5dc   :  { %3452 = vmatpush3.bf16.msra.mxu1 %v3559_v54  ;;  %3455 = vmatprep.mubr.msk.bf16.mxu1 %vm3736_vm0, %v3735_v0  ;;  %v1187_v57 = vpop.permute.xlu1 %1186 }
 0x5dd   :  { %3453 = vmatprep.subr.bf16.mxu1 %v3735_v0  ;;  %v4375_v32 = vsub.f32 %v4116_v1, %v1187_v57  ;;  %v550_v35 = vmul.f32 1.442695, %v549_v24  ;;  %v1087_v36 = vsub.f32 0.0, %v1086_v25  ;;  %v1097_v43 = vand.u32 2147483647, %v1095_v61 }
 0x5df   :  { %1399 = vrot.lane.b32.xlu0 %v4135_v17, %s3734_s26  ;;  %v1200_v45 = vsub.f32 0.0, %v4375_v32  ;;  %v1088_v49 = vmul.f32 1.442695, %v1087_v36  ;;  %v1191_v50 = vand.u32 2147483647, %v4375_v32  ;;  %v1098_v55 = vsub.f32 0.0, %v1097_v43 }
 0x5e0   :  { %3454 = vmatpush3.bf16.msra.mxu1 %v3560_v56  ;;  %v1295_v38 = vpop.permute.xlu1 %1294 }
 0x5e1   :  { %3467 = vmatprep.subr.bf16.mxu1 %v3735_v0  ;;  %v4385_v47 = vsub.f32 %v4182_v37, %v1295_v38  ;;  %v1202_v56 = vand.u32 2147483647, %v1200_v45  ;;  %v1192_v37 = vsub.f32 0.0, %v1191_v50 }
 0x5e2   :  { %v3564_v2 = vpop.eup %3563 }
 0x5e3   :  { %1507 = vrot.lane.b32.xlu0 %v4201_v58, %s3734_s26  ;;  %3456 = vmatmul.mubr.msk.bf16.vlgmr.msra.gmra.mrb[56].mxu1 %vm96_vm1, %v2597_v62  ;;  %v1203_v12 = vsub.f32 0.0, %v1202_v56 }
 0x5e4   :  { %3468 = vmatpush3.bf16.msra.mxu1 %v3561_v60  ;;  %3471 = vmatprep.mubr.msk.bf16.mxu1 %vm3736_vm0, %v3735_v0  ;;  %v4703_v60 = vsub.f32 0.0, %v4385_v47  ;;  %v854_v62 = vpop.permute.xlu1 %853  ;;  %vm2856_vm0 = vcmask 121856  }
 0x5e5   :  { %3469 = vmatprep.subr.bf16.mxu1 %v3735_v0  ;;  %v227_v0 = vand.u32 2147483647, %v225_v6  ;;  %v4393_v4 = vsub.f32 %v4060_v40, %v854_v62 }
 0x5e6   :  { %v1310_v13 = vand.u32 2147483647, %v4703_v60 }
 0x5e7   :  { %1720 = vrot.lane.b32.xlu0 %v4288_v33, %s3734_s26  ;;  %v228_v14 = vsub.f32 0.0, %v227_v0  ;;  %v1099_v0 = vmul.f32 1.442695, %v1098_v55 }
 0x5e8   :  { %3470 = vmatpush3.bf16.msra.mxu1 %v3562_v63  ;;  %v1299_v63 = vand.u32 2147483647, %v4385_v47 }
 0x5e9   :  { %v229_v29 = vmul.f32 1.442695, %v228_v14 }
 0x5ea   :  { %v1300_v19 = vsub.f32 0.0, %v1299_v63 }
 0x5eb   :  { %3565 = vpow2.f32 %v229_v29  ;;  %v1311_v29 = vsub.f32 0.0, %v1310_v13 }
 0x5ec   :  { %3567 = vpow2.f32 %v550_v35  ;;  %v1301_v36 = vmul.f32 1.442695, %v1300_v19 }
 0x5ed   :  { %3569 = vpow2.f32 %v1088_v49 }
 0x5ee   :  { %3571 = vpow2.f32 %v1099_v0 }
 0x5f5   :  { %v3566_v9 = vpop.eup %3565 }
 0x5f6   :  { %v3568_v25 = vpop.eup %3567  ;;  %v231_v40 = vadd.f32 1.0, %v3566_v9 }
 0x5f7   :  { %v552_v43 = vadd.f32 1.0, %v3568_v25 }
 0x62b   :  { %v4368_v15 = vpop.f32.mrb[36].mxu1 }
 0x62c   :  { %v4370_v16 = vpop.f32.mrb[44].mxu0  ;;  %v3377_v18 = vpop.f32.mrb[37].mxu1 }
 0x62d   :  { %v3401_v20 = vpop.f32.mrb[45].mxu0  ;;  %v2035_v23 = vpop.f32.mrb[38].mxu1  ;;  %v1193_v18 = vmul.f32 1.442695, %v1192_v37 }
 0x62e   :  { %v2218_v27 = vpop.f32.mrb[46].mxu0  ;;  %v3378_v28 = vpop.f32.mrb[39].mxu1  ;;  %v220_v23 = vadd.f32 1.0, %v3564_v2 }
 0x62f   :  { %v3402_v30 = vpop.f32.mrb[47].mxu0  ;;  %v867_v27 = vsub.f32 0.0, %v4393_v4  ;;  %v1204_v28 = vmul.f32 1.442695, %v1203_v12  ;;  %3573 = vpow2.f32 %v1193_v18 }
 0x630   :  { %v858_v30 = vand.u32 2147483647, %v4393_v4  ;;  %3575 = vlog2.f32 %v220_v23 }
 0x631   :  { %3577 = vlog2.f32 %v231_v40 }
 0x632   :  { %3579 = vpow2.f32 %v1204_v28 }
 0x633   :  { %3581 = vpow2.f32 %v1301_v36 }
 0x634   :  { %v4377_v39 = vpop.f32.mrb[40].mxu1  ;;  %v4379_v42 = vpop.f32.mrb[48].mxu0  ;;  %3583 = vlog2.f32 %v552_v43 }
 0x635   :  { %v3393_v48 = vpop.f32.mrb[41].mxu1  ;;  %v3417_v1 = vpop.f32.mrb[49].mxu0 }
 0x636   :  { %v2158_v51 = vpop.f32.mrb[42].mxu1  ;;  %v2341_v52 = vpop.f32.mrb[50].mxu0  ;;  %v869_v1 = vand.u32 2147483647, %v867_v27 }
 0x637   :  { %v3394_v53 = vpop.f32.mrb[43].mxu1  ;;  %v3418_v54 = vpop.f32.mrb[51].mxu0  ;;  %v1312_v52 = vmul.f32 1.442695, %v1311_v29 }
 0x638   :  { %v3570_v48 = vpop.eup %3569  ;;  %v859_v53 = vsub.f32 0.0, %v858_v30  ;;  %v870_v0 = vsub.f32 0.0, %v869_v1 }
 0x639   :  { %v1090_v2 = vadd.f32 1.0, %v3570_v48  ;;  %3585 = vpow2.f32 %v1312_v52  ;;  %v3572_v25 = vpop.eup %3571 }
 0x63a   :  { %v3574_v28 = vpop.eup %3573  ;;  %v871_v29 = vmul.f32 1.442695, %v870_v0 }
 0x63c   :  { %v4395_v7 = vpop.f32.mrb[52].mxu0 }
 0x63d   :  { %v3433_v14 = vpop.f32.mrb[53].mxu0  ;;  %v2720_v57 = vpop.permute.xlu0 %2719 }
 0x63e   :  { %v2464_v20 = vpop.f32.mrb[54].mxu0  ;;  %3472 = vmatmul.mubr.msk.bf16.vlgmr.msra.gmra.mrb[60].mxu1 %vm96_vm1, %v2720_v57  ;;  %v860_v57 = vmul.f32 1.442695, %v859_v53  ;;  %vm2885_vm1 = vcmask 244736  }
 0x63f   :  { %v3434_v24 = vpop.f32.mrb[55].mxu0 }
 0x641   :  { %v316_v35 = vpop.permute.xlu0 %315 }
 0x642   :  { %v4403_v38 = vsub.f32 %v3933_v34, %v316_v35  ;;  %v1613_v34 = vpop.permute.xlu1 %1612  ;;  %v3576_v35 = vpop.eup %3575 }
 0x643   :  { %v4418_v18 = vsub.f32 %v4184_v41, %v1613_v34  ;;  %v4428_v1 = vpop.eup %3577 }
 0x644   :  { %v320_v49 = vand.u32 2147483647, %v4403_v38  ;;  %v329_v50 = vsub.f32 0.0, %v4403_v38  ;;  %v4409_v51 = vpop.f32.mrb[56].mxu0  ;;  %v3580_v53 = vpop.eup %3579 }
 0x645   :  { %v3449_v54 = vpop.f32.mrb[57].mxu0  ;;  %v641_v55 = vpop.permute.xlu0 %640 }
 0x646   :  { %v321_v56 = vsub.f32 0.0, %v320_v49  ;;  %v331_v62 = vand.u32 2147483647, %v329_v50  ;;  %v4414_v37 = vsub.f32 %v4009_v8, %v641_v55  ;;  %v2587_v63 = vpop.f32.mrb[58].mxu0  ;;  %v1195_v54 = vadd.f32 1.0, %v3574_v28 }
 0x647   :  { %v3450_v9 = vpop.f32.mrb[59].mxu0 }
 0x648   :  { %v322_v12 = vmul.f32 1.442695, %v321_v56  ;;  %v332_v13 = vsub.f32 0.0, %v331_v62  ;;  %v645_v14 = vand.u32 2147483647, %v4414_v37  ;;  %v654_v19 = vsub.f32 0.0, %v4414_v37  ;;  %v4436_v62 = vpop.eup %3581 }
 0x649   :  { %v424_v20 = vpop.permute.xlu0 %423  ;;  %v1101_v56 = vadd.f32 1.0, %v3572_v25  ;;  %v3584_v0 = vpop.eup %3583 }
 0x64a   :  { %3587 = vpow2.f32 %v322_v12  ;;  %v333_v8 = vmul.f32 1.442695, %v332_v13  ;;  %v646_v23 = vsub.f32 0.0, %v645_v14  ;;  %v4422_v24 = vsub.f32 %v3948_v44, %v424_v20  ;;  %v4443_v20 = vpop.eup %3585 }
 0x64b   :  { %3589 = vlog2.f32 %v1090_v2  ;;  %v656_v40 = vand.u32 2147483647, %v654_v19  ;;  %v4701_v44 = vsub.f32 0.0, %v4418_v18  ;;  %v1617_v12 = vand.u32 2147483647, %v4418_v18 }
 0x64c   :  { %3591 = vpow2.f32 %v333_v8  ;;  %v647_v30 = vmul.f32 1.442695, %v646_v23  ;;  %v428_v41 = vand.u32 2147483647, %v4422_v24  ;;  %v437_v43 = vsub.f32 0.0, %v4422_v24 }
 0x64d   :  { %3593 = vpow2.f32 %v860_v57  ;;  %v657_v36 = vsub.f32 0.0, %v656_v40  ;;  %v746_v48 = vpop.permute.xlu0 %745  ;;  %v1628_v8 = vand.u32 2147483647, %v4701_v44  ;;  %v554_v44 = vmul.f32 0.6931472, %v3584_v0 }
 0x64e   :  { %3595 = vpow2.f32 %v647_v30  ;;  %v429_v49 = vsub.f32 0.0, %v428_v41  ;;  %v4432_v52 = vsub.f32 %v4011_v11, %v746_v48  ;;  %v439_v34 = vand.u32 2147483647, %v437_v43 }
 0x64f   :  { %v658_v55 = vmul.f32 1.442695, %v657_v36  ;;  %3597 = vpow2.f32 %v871_v29  ;;  %v1206_v30 = vadd.f32 1.0, %v3580_v53  ;;  %v1618_v36 = vsub.f32 0.0, %v1617_v12 }
 0x650   :  { %v430_v63 = vmul.f32 1.442695, %v429_v49  ;;  %v750_v2 = vand.u32 2147483647, %v4432_v52  ;;  %v759_v9 = vsub.f32 0.0, %v4432_v52  ;;  %v440_v11 = vsub.f32 0.0, %v439_v34 }
 0x651   :  { %3599 = vpow2.f32 %v658_v55  ;;  %v1400_v13 = vpop.permute.xlu0 %1399  ;;  %v1629_v53 = vsub.f32 0.0, %v1628_v8  ;;  %v1085_v8 = vmax.f32 %v4366_v21, 0.0  ;;  %v1190_v21 = vmax.f32 %v4375_v32, 0.0 }
 0x652   :  { %3601 = vpow2.f32 %v430_v63  ;;  %v751_v14 = vsub.f32 0.0, %v750_v2  ;;  %v761_v57 = vand.u32 2147483647, %v759_v9  ;;  %v441_v23 = vmul.f32 1.442695, %v440_v11 }
 0x653   :  { %3603 = vlog2.f32 %v1195_v54  ;;  %v4448_v25 = vsub.f32 %v4135_v17, %v1400_v13 }
 0x654   :  { %v3588_v40 = vpop.eup %3587  ;;  %v752_v28 = vmul.f32 1.442695, %v751_v14  ;;  %v762_v29 = vsub.f32 0.0, %v761_v57  ;;  %3605 = vlog2.f32 %v1101_v56  ;;  %v222_v56 = vmul.f32 0.6931472, %v3576_v35 }
 0x655   :  { %v3590_v41 = vpop.eup %3589  ;;  %v324_v48 = vadd.f32 1.0, %v3588_v40  ;;  %3607 = vpow2.f32 %v441_v23  ;;  %v1404_v49 = vand.u32 2147483647, %v4448_v25  ;;  %v1413_v34 = vsub.f32 0.0, %v4448_v25  ;;  %v1508_v63 = vpop.permute.xlu0 %1507 }
 0x656   :  { %v3592_v55 = vpop.eup %3591  ;;  %3609 = vpow2.f32 %v752_v28  ;;  %v763_v54 = vmul.f32 1.442695, %v762_v29  ;;  %v1619_v14 = vmul.f32 1.442695, %v1618_v36  ;;  %v215_v28 = vmax.f32 %v4353_v3, 0.0 }
 0x657   :  { %v4452_v2 = vpop.eup %3593  ;;  %3611 = vlog2.f32 %v324_v48  ;;  %v335_v17 = vadd.f32 1.0, %v3592_v55  ;;  %v1405_v11 = vsub.f32 0.0, %v1404_v49  ;;  %v1415_v12 = vand.u32 2147483647, %v1413_v34 }
 0x658   :  { %v3596_v13 = vpop.eup %3595  ;;  %3613 = vlog2.f32 %v1206_v30  ;;  %v226_v29 = vmax.f32 %v225_v6, 0.0  ;;  %v547_v35 = vmax.f32 %v546_v10, 0.0  ;;  %v4465_v30 = vsub.f32 %v4201_v58, %v1508_v63 }
 0x659   :  { %3615 = vlog2.f32 %v335_v17  ;;  %v649_v57 = vadd.f32 1.0, %v3596_v13  ;;  %v1406_v23 = vmul.f32 1.442695, %v1405_v11  ;;  %v4456_v40 = vpop.eup %3597  ;;  %v1416_v48 = vsub.f32 0.0, %v1415_v12  ;;  %v1721_v13 = vpop.permute.xlu0 %1720 }
 0x65a   :  { %3617 = vpow2.f32 %v763_v54  ;;  %v223_v55 = vadd.f32 %v222_v56, %v215_v28  ;;  %v1630_v17 = vmul.f32 1.442695, %v1629_v53  ;;  %v233_v6 = vmul.f32 0.6931472, %v4428_v1 }
 0x65b   :  { %v3600_v49 = vpop.eup %3599  ;;  %3619 = vlog2.f32 %v649_v57  ;;  %v1417_v11 = vmul.f32 1.442695, %v1416_v48  ;;  %v1096_v54 = vmax.f32 %v1095_v61, 0.0  ;;  %v1092_v57 = vmul.f32 0.6931472, %v3590_v41 }
 0x65c   :  { %v3602_v36 = vpop.eup %3601  ;;  %3621 = vpow2.f32 %v1406_v23  ;;  %v660_v58 = vadd.f32 1.0, %v3600_v49  ;;  %v1512_v56 = vand.u32 2147483647, %v4465_v30  ;;  %v4702_v53 = vsub.f32 0.0, %v4465_v30 }
 0x65d   :  { %v3604_v3 = vpop.eup %3603  ;;  %3623 = vpow2.f32 %v1619_v14  ;;  %v432_v10 = vadd.f32 1.0, %v3602_v36  ;;  %v4473_v23 = vsub.f32 %v4288_v33, %v1721_v13  ;;  %v4475_v28 = vsub.f32 0.0, %v223_v55 }
 0x65e   :  { %v3606_v12 = vpop.eup %3605  ;;  %3625 = vpow2.f32 %v1417_v11  ;;  %v1201_v61 = vmax.f32 %v1200_v45, 0.0  ;;  %v4480_v41 = vadd.f32 %v233_v6, %v226_v29  ;;  %v555_v36 = vadd.f32 %v554_v44, %v547_v35 }
 0x65f   :  { %v3608_v63 = vpop.eup %3607  ;;  %3627 = vlog2.f32 %v432_v10  ;;  %v1103_v48 = vmul.f32 0.6931472, %v3606_v12  ;;  %v319_v33 = vmax.f32 %v4403_v38, 0.0  ;;  %v1093_v13 = vadd.f32 %v1092_v57, %v1085_v8 }
 0x660   :  { %v3610_v1 = vpop.eup %3609  ;;  %3629 = vpow2.f32 %v1630_v17  ;;  %v1513_v10 = vsub.f32 0.0, %v1512_v56  ;;  %v1523_v32 = vand.u32 2147483647, %v4702_v53  ;;  %v4704_v45 = vsub.f32 0.0, %v4473_v23 }
 0x661   :  { %v3612_v0 = vpop.eup %3611  ;;  %v754_v14 = vadd.f32 1.0, %v3610_v1  ;;  %3631 = vlog2.f32 %v660_v58  ;;  %v330_v6 = vmax.f32 %v329_v50, 0.0  ;;  %v443_v58 = vadd.f32 1.0, %v3608_v63 }
 0x662   :  { %v3614_v49 = vpop.eup %3613  ;;  %v326_v11 = vmul.f32 0.6931472, %v3612_v0  ;;  %v1725_v35 = vand.u32 2147483647, %v4473_v23  ;;  %v1104_v1 = vadd.f32 %v1103_v48, %v1096_v54  ;;  %v1197_v57 = vmul.f32 0.6931472, %v3604_v3 }
 0x663   :  { %v3616_v55 = vpop.eup %3615  ;;  %3633 = vlog2.f32 %v754_v14  ;;  %v1208_v8 = vmul.f32 0.6931472, %v3614_v49  ;;  %v644_v53 = vmax.f32 %v4414_v37, 0.0  ;;  %v1514_v50 = vmul.f32 1.442695, %v1513_v10 }
 0x664   :  { %v3618_v17 = vpop.eup %3617  ;;  %v327_v29 = vadd.f32 %v326_v11, %v319_v33  ;;  %v337_v12 = vmul.f32 0.6931472, %v3616_v55  ;;  %v1524_v11 = vsub.f32 0.0, %v1523_v32  ;;  %v1736_v63 = vand.u32 2147483647, %v4704_v45 }
 0x665   :  { %v3620_v44 = vpop.eup %3619  ;;  %3635 = vlog2.f32 %v443_v58  ;;  %v974_v58 = vpop.permute.xlu1 %973  ;;  %v427_v37 = vmax.f32 %v4422_v24, 0.0 }
 0x666   :  { %v3622_v0 = vpop.eup %3621  ;;  %v4490_v56 = vsub.f32 %v4475_v28, %v327_v29  ;;  %v338_v14 = vadd.f32 %v337_v12, %v330_v6  ;;  %v651_v60 = vmul.f32 0.6931472, %v3620_v44  ;;  %v1726_v29 = vsub.f32 0.0, %v1725_v35 }
 0x667   :  { %v4493_v33 = vpop.eup %3623  ;;  %v1408_v38 = vadd.f32 1.0, %v3622_v0  ;;  %v765_v12 = vadd.f32 1.0, %v3618_v17  ;;  %v1737_v17 = vsub.f32 0.0, %v1736_v63  ;;  %v873_v63 = vadd.f32 1.0, %v4456_v40 }
 0x668   :  { %v3626_v55 = vpop.eup %3625  ;;  %v4498_v54 = vsub.f32 %v4475_v28, %v338_v14  ;;  %v652_v3 = vadd.f32 %v651_v60, %v644_v53  ;;  %v4501_v48 = vsub.f32 %v4490_v56, %v555_v36  ;;  %v1198_v14 = vadd.f32 %v1197_v57, %v1190_v21 }
 0x669   :  { %v3628_v49 = vpop.eup %3627  ;;  %3637 = vlog2.f32 %v1408_v38  ;;  %v1419_v6 = vadd.f32 1.0, %v3626_v55  ;;  %v655_v60 = vmax.f32 %v654_v19, 0.0  ;;  %v1525_v53 = vmul.f32 1.442695, %v1524_v11 }
 0x66a   :  { %v4503_v44 = vpop.eup %3629  ;;  %v1105_v10 = vsub.f32 %v4501_v48, %v1104_v1  ;;  %v1094_v32 = vsub.f32 %v4501_v48, %v1093_v13  ;;  %v653_v0 = vsub.f32 %v4498_v54, %v652_v3  ;;  %v1209_v36 = vadd.f32 %v1208_v8, %v1201_v61 }
 0x66b   :  { %v3632_v45 = vpop.eup %3631  ;;  %3639 = vlog2.f32 %v1419_v6  ;;  %v434_v35 = vmul.f32 0.6931472, %v3628_v49  ;;  %v862_v21 = vadd.f32 1.0, %v4452_v2  ;;  %v1727_v19 = vmul.f32 1.442695, %v1726_v29 }
 0x66c   :  { %3641 = vpow2.f32 %v1514_v50  ;;  %1111 = vrot.lane.b32.xlu1 %v1105_v10, %s3738_s11  ;;  %1107 = vrot.lane.b32.xlu0 %v1094_v32, %s3739_s24  ;;  %v662_v13 = vmul.f32 0.6931472, %v3632_v45  ;;  %v1210_v8 = vsub.f32 %v653_v0, %v1209_v36  ;;  %v1199_v57 = vsub.f32 %v653_v0, %v1198_v14 }
 0x66d   :  { %v3634_v1 = vpop.eup %3633  ;;  %3643 = vlog2.f32 %v765_v12  ;;  %v537_v50 = vand.u32 2147483647, %v4356_v5  ;;  %v4516_v11 = vsub.f32 %v4053_v31, %v974_v58  ;;  %v435_v55 = vadd.f32 %v434_v35, %v427_v37 }
 0x66e   :  { %v756_v61 = vmul.f32 0.6931472, %v3634_v1  ;;  %v663_v38 = vadd.f32 %v662_v13, %v655_v60  ;;  %v749_v45 = vmax.f32 %v4432_v52, 0.0  ;;  %3645 = vpow2.f32 %v1525_v53 }
 0x66f   :  { %v1738_v2 = vmul.f32 1.442695, %v1737_v17  ;;  %3647 = vlog2.f32 %v862_v21  ;;  %v3636_v3 = vpop.eup %3635  ;;  %v4523_v49 = vsub.f32 0.0, %v4480_v41  ;;  %v538_v6 = vsub.f32 0.0, %v537_v50 }
 0x670   :  { %1216 = vrot.lane.b32.xlu1 %v1210_v8, %s3738_s11  ;;  %1212 = vrot.lane.b32.xlu0 %v1199_v57, %s3739_s24  ;;  %v757_v29 = vadd.f32 %v756_v61, %v749_v45  ;;  %3649 = vpow2.f32 %v1727_v19  ;;  %v4526_v31 = vsub.f32 %v4498_v54, %v663_v38  ;;  %v978_v12 = vand.u32 2147483647, %v4516_v11 }
 0x671   :  { %3651 = vlog2.f32 %v873_v63  ;;  %v436_v10 = vsub.f32 %v4523_v49, %v435_v55  ;;  %v1403_v32 = vmax.f32 %v4448_v25, 0.0  ;;  %v1303_v60 = vadd.f32 1.0, %v4436_v62 }
 0x672   :  { %3653 = vpow2.f32 %v1738_v2  ;;  %v987_v53 = vsub.f32 0.0, %v4516_v11  ;;  %v1414_v36 = vmax.f32 %v1413_v34, 0.0  ;;  %v445_v1 = vmul.f32 0.6931472, %v3636_v3 }
 0x673   :  { %v3638_v40 = vpop.eup %3637  ;;  %v758_v35 = vsub.f32 %v436_v10, %v757_v29  ;;  %v539_v37 = vmul.f32 1.442695, %v538_v6  ;;  %v1314_v19 = vadd.f32 1.0, %v4443_v20  ;;  %v979_v61 = vsub.f32 0.0, %v978_v12 }
 0x674   :  { %670 = vrot.lane.b32.xlu1 %v4526_v31, %s3738_s11  ;;  %666 = vrot.lane.b32.xlu0 %v653_v0, %s3739_s24  ;;  %v1410_v41 = vmul.f32 0.6931472, %v3638_v40  ;;  %v438_v0 = vmax.f32 %v437_v43, 0.0  ;;  %3655 = vlog2.f32 %v1303_v60  ;;  %v1621_v57 = vadd.f32 1.0, %v4493_v33 }
 0x675   :  { %v3640_v14 = vpop.eup %3639  ;;  %v989_v25 = vand.u32 2147483647, %v987_v53  ;;  %v1632_v20 = vadd.f32 1.0, %v4503_v44  ;;  %3657 = vlog2.f32 %v1314_v19  ;;  %v980_v43 = vmul.f32 1.442695, %v979_v61 }
 0x676   :  { %v3642_v58 = vpop.eup %3641  ;;  %v1411_v17 = vadd.f32 %v1410_v41, %v1403_v32  ;;  %v1421_v13 = vmul.f32 0.6931472, %v3640_v14  ;;  %v446_v50 = vadd.f32 %v445_v1, %v438_v0  ;;  %3659 = vpow2.f32 %v539_v37 }
 0x677   :  { %v3644_v21 = vpop.eup %3643  ;;  %v1516_v45 = vadd.f32 1.0, %v3642_v58  ;;  %v760_v33 = vmax.f32 %v759_v9, 0.0  ;;  %3661 = vlog2.f32 %v1621_v57  ;;  %v990_v3 = vsub.f32 0.0, %v989_v25 }
 0x678   :  { %v1412_v8 = vsub.f32 %v758_v35, %v1411_v17  ;;  %v1422_v62 = vadd.f32 %v1421_v13, %v1414_v36  ;;  %v3646_v34 = vpop.eup %3645  ;;  %v767_v63 = vmul.f32 0.6931472, %v3644_v21  ;;  %v447_v44 = vsub.f32 %v4523_v49, %v446_v50 }
 0x679   :  { %v3648_v55 = vpop.eup %3647  ;;  %v1527_v29 = vadd.f32 1.0, %v3646_v34  ;;  %3663 = vlog2.f32 %v1632_v20  ;;  %v857_v41 = vmax.f32 %v4393_v4, 0.0  ;;  %v868_v14 = vmax.f32 %v867_v27, 0.0 }
 0x67a   :  { %1425 = vrot.lane.b32.xlu0 %v1412_v8, %s3739_s24  ;;  %v1423_v38 = vsub.f32 %v758_v35, %v1422_v62  ;;  %v3650_v24 = vpop.eup %3649  ;;  %v768_v6 = vadd.f32 %v767_v63, %v760_v33  ;;  %v864_v12 = vmul.f32 0.6931472, %v3648_v55  ;;  %3665 = vlog2.f32 %v1516_v45 }
 0x67b   :  { %v3652_v2 = vpop.eup %3651  ;;  %v1729_v32 = vadd.f32 1.0, %v3650_v24  ;;  %3667 = vpow2.f32 %v980_v43  ;;  %v991_v60 = vmul.f32 1.442695, %v990_v3  ;;  %v4705_v57 = vsub.f32 0.0, %v4385_v47 }
 0x67c   :  { %1429 = vrot.lane.b32.xlu1 %v1423_v38, %s3738_s11  ;;  %v3654_v40 = vpop.eup %3653  ;;  %v875_v52 = vmul.f32 0.6931472, %v3652_v2  ;;  %3669 = vlog2.f32 %v1527_v29  ;;  %v4556_v36 = vsub.f32 %v436_v10, %v768_v6  ;;  %v865_v58 = vadd.f32 %v864_v12, %v857_v41 }
 0x67d   :  { %v1740_v9 = vadd.f32 1.0, %v3654_v40  ;;  %3671 = vlog2.f32 %v1729_v32  ;;  %v1309_v25 = vmax.f32 %v4705_v57, 0.0  ;;  %v1616_v20 = vmax.f32 %v4418_v18, 0.0 }
 0x67e   :  { %449 = vrot.lane.b32.xlu0 %v436_v10, %s3739_s24  ;;  %v3656_v17 = vpop.eup %3655  ;;  %v866_v13 = vsub.f32 %v447_v44, %v865_v58  ;;  %v876_v1 = vadd.f32 %v875_v52, %v868_v14  ;;  %v1298_v10 = vmax.f32 %v4385_v47, 0.0  ;;  %v4706_v47 = vsub.f32 0.0, %v4418_v18 }
 0x67f   :  { %v3658_v21 = vpop.eup %3657  ;;  %3673 = vlog2.f32 %v1740_v9  ;;  %v1305_v27 = vmul.f32 0.6931472, %v3656_v17  ;;  %v1511_v2 = vmax.f32 %v4465_v30, 0.0  ;;  %v4707_v12 = vsub.f32 0.0, %v4465_v30 }
 0x680   :  { %453 = vrot.lane.b32.xlu1 %v447_v44, %s3738_s11  ;;  %v3660_v37 = vpop.eup %3659  ;;  %3675 = vpow2.f32 %v991_v60  ;;  %v877_v4 = vsub.f32 %v447_v44, %v876_v1  ;;  %v1316_v61 = vmul.f32 0.6931472, %v3658_v21  ;;  %v1627_v33 = vmax.f32 %v4706_v47, 0.0 }
 0x681   :  { %v3662_v19 = vpop.eup %3661  ;;  %v541_v8 = vadd.f32 1.0, %v3660_v37  ;;  %v1306_v34 = vadd.f32 %v1305_v27, %v1298_v10  ;;  %v1522_v32 = vmax.f32 %v4707_v12, 0.0  ;;  %v1724_v9 = vmax.f32 %v4473_v23, 0.0 }
 0x682   :  { %771 = vrot.lane.b32.xlu0 %v758_v35, %s3739_s24  ;;  %v1623_v38 = vmul.f32 0.6931472, %v3662_v19  ;;  %v1317_v45 = vadd.f32 %v1316_v61, %v1309_v25  ;;  %v4708_v17 = vsub.f32 0.0, %v4473_v23  ;;  %v536_v61 = vmax.f32 %v4356_v5, 0.0 }
 0x683   :  { %v3664_v35 = vpop.eup %3663  ;;  %v1307_v55 = vsub.f32 %v4526_v31, %v1306_v34  ;;  %3677 = vlog2.f32 %v541_v8  ;;  %v977_v25 = vmax.f32 %v4516_v11, 0.0 }
 0x684   :  { %775 = vrot.lane.b32.xlu1 %v4556_v36, %s3738_s11  ;;  %v3666_v0 = vpop.eup %3665  ;;  %v1634_v63 = vmul.f32 0.6931472, %v3664_v35  ;;  %v1318_v3 = vsub.f32 %v4526_v31, %v1317_v45  ;;  %v1624_v29 = vadd.f32 %v1623_v38, %v1616_v20  ;;  %v1735_v1 = vmax.f32 %v4708_v17, 0.0 }
 0x685   :  { %v3668_v62 = vpop.eup %3667  ;;  %v1518_v24 = vmul.f32 0.6931472, %v3666_v0 }
 0x686   :  { %879 = vrot.lane.b32.xlu0 %v866_v13, %s3739_s24  ;;  %v3670_v50 = vpop.eup %3669  ;;  %v1625_v41 = vsub.f32 %v866_v13, %v1624_v29 }
 0x687   :  { %v3672_v43 = vpop.eup %3671  ;;  %v1529_v40 = vmul.f32 0.6931472, %v3670_v50  ;;  %v1519_v18 = vadd.f32 %v1518_v24, %v1511_v2 }
 0x688   :  { %883 = vrot.lane.b32.xlu1 %v877_v4, %s3738_s11  ;;  %v1731_v52 = vmul.f32 0.6931472, %v3672_v43 }
 0x689   :  { %v3674_v44 = vpop.eup %3673  ;;  %v1530_v31 = vadd.f32 %v1529_v40, %v1522_v32  ;;  %v1520_v30 = vsub.f32 %v4556_v36, %v1519_v18 }
 0x68a   :  { %2777 = vrot.lane.b32.xlu0 %v4297_v46, %s3734_s26  ;;  %v982_v46 = vadd.f32 1.0, %v3668_v62  ;;  %v3676_v6 = vpop.eup %3675  ;;  %v1742_v60 = vmul.f32 0.6931472, %v3674_v44  ;;  %v1732_v21 = vadd.f32 %v1731_v52, %v1724_v9  ;;  %s3741_s26 = smov 3  }
 0x68b   :  { %v993_v58 = vadd.f32 1.0, %v3676_v6  ;;  %v1531_v37 = vsub.f32 %v4556_v36, %v1530_v31 }
 0x68c   :  { %2781 = vrot.lane.b32.xlu1 %v4281_v22, %s3740_s25  ;;  %v1635_v22 = vadd.f32 %v1634_v63, %v1627_v33  ;;  %3679 = vlog2.f32 %v982_v46  ;;  %v1743_v27 = vadd.f32 %v1742_v60, %v1735_v1 }
 0x68d   :  { %v3678_v19 = vpop.eup %3677  ;;  %3681 = vlog2.f32 %v993_v58 }
 0x68e   :  { %1320 = vrot.lane.b32.xlu0 %v1307_v55, %s3739_s24  ;;  %v1636_v14 = vsub.f32 %v866_v13, %v1635_v22  ;;  %v1733_v13 = vsub.f32 %v877_v4, %v1732_v21  ;;  %v543_v35 = vmul.f32 0.6931472, %v3678_v19  ;;  %v1744_v23 = vsub.f32 %v877_v4, %v1743_v27 }
 0x690   :  { %1324 = vrot.lane.b32.xlu1 %v1318_v3, %s3738_s11  ;;  %v544_v0 = vadd.f32 %v543_v35, %v536_v61 }
 0x692   :  { %1638 = vrot.lane.b32.xlu0 %v1625_v41, %s3739_s24  ;;  %v545_v34 = vsub.f32 %v4490_v56, %v544_v0 }
 0x694   :  { %1642 = vrot.lane.b32.xlu1 %v1636_v14, %s3738_s11 }
 0x696   :  { %1533 = vrot.lane.b32.xlu0 %v1520_v30, %s3739_s24  ;;  %v3680_v10 = vpop.eup %3679 }
 0x697   :  { %v984_v8 = vmul.f32 0.6931472, %v3680_v10  ;;  %v3682_v38 = vpop.eup %3681 }
 0x698   :  { %1537 = vrot.lane.b32.xlu1 %v1531_v37, %s3738_s11  ;;  %v995_v45 = vmul.f32 0.6931472, %v3682_v38 }
 0x699   :  { %v985_v20 = vadd.f32 %v984_v8, %v977_v25 }
 0x69a   :  { %1746 = vrot.lane.b32.xlu0 %v1733_v13, %s3739_s24 }
 0x69b   :  { %v986_v55 = vsub.f32 %v545_v34, %v985_v20 }
 0x69c   :  { %1750 = vrot.lane.b32.xlu1 %v1744_v23, %s3738_s11 }
 0x69e   :  { %2785 = vrot.lane.b32.xlu0 %v4368_v15, %s3741_s26  ;;  %v4592_v36 = vpop.f32.mrb[44].mxu1 }
 0x69f   :  { %v4594_v62 = vpop.f32.mrb[60].mxu0  ;;  %v3409_v57 = vpop.f32.mrb[45].mxu1 }
 0x6a0   :  { %2789 = vrot.lane.b32.xlu1 %v4283_v26, %s3742_s3  ;;  %v3465_v4 = vpop.f32.mrb[61].mxu0  ;;  %v2281_v5 = vpop.f32.mrb[46].mxu1  ;;  %v988_v26 = vmax.f32 %v987_v53, 0.0 }
 0x6a1   :  { %v2710_v50 = vpop.f32.mrb[62].mxu0  ;;  %v3410_v63 = vpop.f32.mrb[47].mxu1 }
 0x6a2   :  { %2793 = vrot.lane.b32.xlu0 %v4377_v39, %s3743_s27  ;;  %v3466_v15 = vpop.f32.mrb[63].mxu0  ;;  %v996_v47 = vadd.f32 %v995_v45, %v988_v26 }
 0x6a4   :  { %2797 = vrot.lane.b32.xlu1 %v4370_v16, %s3744_s29  ;;  %v997_v16 = vsub.f32 %v545_v34, %v996_v47 }
 0x6a6   :  { %999 = vrot.lane.b32.xlu0 %v986_v55, %s3739_s24  ;;  %v4606_v24 = vpop.f32.mrb[48].mxu1 }
 0x6a7   :  { %v3425_v43 = vpop.f32.mrb[49].mxu1 }
 0x6a8   :  { %2805 = vrot.lane.b32.xlu1 %v4379_v42, %s3745_s30  ;;  %v2404_v39 = vpop.f32.mrb[50].mxu1 }
 0x6a9   :  { %v3426_v33 = vpop.f32.mrb[51].mxu1 }
 0x6aa   :  { %2813 = vrot.lane.b32.xlu0 %v4395_v7, %s3746_s14 }
 0x6ac   :  { %1003 = vrot.lane.b32.xlu1 %v997_v16, %s3738_s11 }
 0x6ae   :  { %562 = vrot.lane.b32.xlu0 %v4501_v48, %s3738_s11  ;;  %v4615_v11 = vpop.f32.mrb[52].mxu1 }
 0x6af   :  { %v3441_v53 = vpop.f32.mrb[53].mxu1 }
 0x6b0   :  { %v2527_v46 = vpop.f32.mrb[54].mxu1 }
 0x6b1   :  { %v3442_v2 = vpop.f32.mrb[55].mxu1 }
 0x6b2   :  { %2821 = vrot.lane.b32.xlu0 %v4409_v51, %s3747_s9 }
 0x6b6   :  { %345 = vrot.lane.b32.xlu0 %v4498_v54, %s3738_s11  ;;  %v2647_v42 = vpop.f32.mrb[56].mxu1 }
 0x6b7   :  { %v3457_v7 = vpop.f32.mrb[57].mxu1 }
 0x6b8   :  { %v2650_v3 = vpop.f32.mrb[58].mxu1 }
 0x6b9   :  { %v3458_v29 = vpop.f32.mrb[59].mxu1 }
 0x6de   :  { %v1108_v40 = vpop.permute.xlu0 %1107  ;;  %v1112_v44 = vpop.permute.xlu1 %1111 }
 0x6df   :  { %v1114_v48 = vsel %vm244_vm2, %v1108_v40, %v1112_v44 }
 0x6e0   :  { %1755 = vrot.lane.b32.xlu1 %v1114_v48, %s3740_s25 }
 0x6e2   :  { %v1213_v22 = vpop.permute.xlu0 %1212  ;;  %v1217_v6 = vpop.permute.xlu1 %1216 }
 0x6e3   :  { %v1219_v12 = vsel %vm244_vm2, %v1213_v22, %v1217_v6 }
 0x6e4   :  { %1759 = vrot.lane.b32.xlu1 %v1219_v12, %s3742_s3 }
 0x6e6   :  { %v667_v51 = vpop.permute.xlu0 %666  ;;  %v671_v54 = vpop.permute.xlu1 %670 }
 0x6e7   :  { %v673_v52 = vsel %vm244_vm2, %v667_v51, %v671_v54 }
 0x6e8   :  { %558 = vrot.lane.b32.xlu1 %v545_v34, %s3739_s24 }
 0x6ec   :  { %v1426_v32 = vpop.permute.xlu0 %1425  ;;  %341 = vrot.lane.b32.xlu1 %v4490_v56, %s3739_s24 }
 0x6ee   :  { %v1430_v41 = vpop.permute.xlu1 %1429 }
 0x6ef   :  { %v1432_v18 = vsel %vm244_vm2, %v1426_v32, %v1430_v41 }
 0x6f0   :  { %v450_v9 = vpop.permute.xlu0 %449  ;;  %1767 = vrot.lane.b32.xlu0 %v1432_v18, %s3745_s30  ;;  %888 = vrot.lane.b32.xlu1 %v673_v52, %s3740_s25 }
 0x6f2   :  { %v454_v14 = vpop.permute.xlu1 %453 }
 0x6f3   :  { %v456_v31 = vsel %vm244_vm2, %v450_v9, %v454_v14 }
 0x6f4   :  { %v772_v60 = vpop.permute.xlu0 %771  ;;  %458 = vrot.lane.b32.xlu0 %v456_v31, %s3740_s25 }
 0x6f6   :  { %v776_v58 = vpop.permute.xlu1 %775 }
 0x6f7   :  { %v778_v17 = vsel %vm244_vm2, %v772_v60, %v776_v58 }
 0x6f8   :  { %v880_v56 = vpop.permute.xlu0 %879  ;;  %892 = vrot.lane.b32.xlu1 %v778_v17, %s3742_s3 }
 0x6fa   :  { %v884_v1 = vpop.permute.xlu1 %883 }
 0x6fb   :  { %v886_v30 = vsel %vm244_vm2, %v880_v56, %v884_v1 }
 0x6fc   :  { %v2778_v21 = vpop.permute.xlu0 %2777  ;;  %896 = vrot.lane.b32.xlu0 %v886_v30, %s3744_s29 }
 0x6fd   :  { %v2836_v37 = vsel %vm244_vm2, %v4203_v59, %v2778_v21 }
 0x6fe   :  { %v2782_v27 = vpop.permute.xlu1 %2781 }
 0x6ff   :  { %v4641_v19 = vsel %vm461_vm3, %v2836_v37, %v2782_v27 }
 0x700   :  { %v1321_v13 = vpop.permute.xlu0 %1320 }
 0x702   :  { %v1325_v35 = vpop.permute.xlu1 %1324 }
 0x703   :  { %v1327_v23 = vsel %vm244_vm2, %v1321_v13, %v1325_v35 }
 0x704   :  { %v1639_v10 = vpop.permute.xlu0 %1638  ;;  %1763 = vrot.lane.b32.xlu1 %v1327_v23, %s3744_s29 }
 0x706   :  { %v1643_v61 = vpop.permute.xlu1 %1642 }
 0x707   :  { %v1645_v0 = vsel %vm244_vm2, %v1639_v10, %v1643_v61 }
 0x708   :  { %1775 = vrot.lane.b32.xlu1 %v1645_v0, %s3747_s9  ;;  %v1534_v8 = vpop.permute.xlu0 %1533  ;;  %v3122_v0 = vld [vmem:[%s4699_s12] ss:$0 sm:$0xff] }
 0x70a   :  { %v1538_v57 = vpop.permute.xlu1 %1537 }
 0x70b   :  { %v1540_v59 = vsel %vm244_vm2, %v1534_v8, %v1538_v57 }
 0x70c   :  { %1771 = vrot.lane.b32.xlu0 %v1540_v59, %s3746_s14  ;;  %2829 = vrot.lane.b32.xlu1 %v4594_v62, %s3748_s15  ;;  %v1747_v5 = vpop.permute.xlu0 %1746 }
 0x70e   :  { %v1751_v25 = vpop.permute.xlu1 %1750 }
 0x70f   :  { %v1753_v38 = vsel %vm244_vm2, %v1747_v5, %v1751_v25 }
 0x710   :  { %2801 = vrot.lane.b32.xlu0 %v4592_v36, %s3749_s7  ;;  %2825 = vrot.lane.b32.xlu1 %v2647_v42, %s3750_s2  ;;  %v2786_v36 = vpop.permute.xlu0 %2785 }
 0x711   :  { %v2770_v4 = vpop.f32.mrb[60].mxu1  ;;  %v2839_v6 = vsel %vm2838_vm6, %v4641_v19, %v2786_v36 }
 0x712   :  { %v3473_v34 = vpop.f32.mrb[61].mxu1  ;;  %v2790_v62 = vpop.permute.xlu1 %2789 }
 0x713   :  { %v2773_v50 = vpop.f32.mrb[62].mxu1  ;;  %v2840_v51 = vsel %vm900_vm4, %v2839_v6, %v2790_v62 }
 0x714   :  { %2809 = vrot.lane.b32.xlu0 %v4606_v24, %s3751_s16  ;;  %1779 = vrot.lane.b32.xlu1 %v1753_v38, %s3748_s15  ;;  %v3474_v63 = vpop.f32.mrb[63].mxu1  ;;  %v2794_v15 = vpop.permute.xlu0 %2793 }
 0x715   :  { %v2842_v9 = vsel %vm2841_vm7, %v2840_v51, %v2794_v15 }
 0x716   :  { %v2798_v20 = vpop.permute.xlu1 %2797 }
 0x717   :  { %v2843_v31 = vsel %vm902_vm5, %v2842_v9, %v2798_v20 }
 0x718   :  { %2817 = vrot.lane.b32.xlu0 %v4615_v11, %s3752_s5  ;;  %241 = vrot.lane.b32.xlu1 %v4523_v49, %s3738_s11  ;;  %v1000_v55 = vpop.permute.xlu0 %999 }
 0x71a   :  { %v2806_v45 = vpop.permute.xlu1 %2805 }
 0x71c   :  { %2833 = vrot.lane.b32.xlu0 %v2770_v4, %s3753_s10  ;;  %v2814_v26 = vpop.permute.xlu0 %2813 }
 0x71e   :  { %v1004_v24 = vpop.permute.xlu1 %1003 }
 0x71f   :  { %v1006_v54 = vsel %vm244_vm2, %v1000_v55, %v1004_v24 }
 0x720   :  { %237 = vrot.lane.b32.xlu0 %v4475_v28, %s3739_s24  ;;  %v563_v43 = vpop.permute.xlu0 %562 }
 0x724   :  { %v2822_v33 = vpop.permute.xlu0 %2821 }
 0x728   :  { %v346_v11 = vpop.permute.xlu0 %345 }
 0x752   :  { %v1756_v39 = vpop.permute.xlu1 %1755 }
 0x753   :  { %v1782_v32 = vsel %vm461_vm3, %v1006_v54, %v1756_v39 }
 0x756   :  { %v1760_v47 = vpop.permute.xlu1 %1759 }
 0x757   :  { %v1783_v41 = vsel %vm900_vm4, %v1782_v32, %v1760_v47 }
 0x75a   :  { %v559_v16 = vpop.permute.xlu1 %558 }
 0x75b   :  { %v565_v3 = vsel %vm244_vm2, %v559_v16, %v563_v43 }
 0x75e   :  { %v342_v49 = vpop.permute.xlu1 %341 }
 0x75f   :  { %v348_v46 = vsel %vm244_vm2, %v342_v49, %v346_v11 }
 0x762   :  { %v1768_v53 = vpop.permute.xlu0 %1767  ;;  %v889_v28 = vpop.permute.xlu1 %888 }
 0x763   :  { %v899_v29 = vsel %vm461_vm3, %v565_v3, %v889_v28 }
 0x766   :  { %v459_v2 = vpop.permute.xlu0 %458 }
 0x767   :  { %v462_v42 = vsel %vm461_vm3, %v348_v46, %v459_v2 }
 0x768   :  { %2867 = vrot.lane.b32.xlu0 %v462_v42, %s3740_s25 }
 0x76a   :  { %v893_v7 = vpop.permute.xlu1 %892 }
 0x76b   :  { %v901_v40 = vsel %vm900_vm4, %v899_v29, %v893_v7  ;;  %vm2887_vm4 = vcmask 375808  }
 0x76e   :  { %v897_v44 = vpop.permute.xlu0 %896 }
 0x76f   :  { %v903_v48 = vsel %vm902_vm5, %v901_v40, %v897_v44 }
 0x770   :  { %2871 = vrot.lane.b32.xlu1 %v903_v48, %s3744_s29 }
 0x776   :  { %v1764_v22 = vpop.permute.xlu1 %1763 }
 0x777   :  { %v1784_v14 = vsel %vm902_vm5, %v1783_v41, %v1764_v22 }
 0x778   :  { %v1786_v60 = vsel %vm1785_vm8, %v1784_v14, %v1768_v53 }
 0x77a   :  { %v1776_v12 = vpop.permute.xlu1 %1775 }
 0x77e   :  { %v1772_v18 = vpop.permute.xlu0 %1771  ;;  %v2830_v52 = vpop.permute.xlu1 %2829 }
 0x77f   :  { %v1788_v56 = vsel %vm1787_vm9, %v1786_v60, %v1772_v18 }
 0x780   :  { %v1790_v27 = vsel %vm1789_vm11, %v1788_v56, %v1776_v12 }
 0x782   :  { %v2802_v58 = vpop.permute.xlu0 %2801  ;;  %v2826_v17 = vpop.permute.xlu1 %2825 }
 0x783   :  { %v2845_v1 = vsel %vm2844_vm10, %v2843_v31, %v2802_v58 }
 0x784   :  { %v2846_v30 = vsel %vm1785_vm8, %v2845_v1, %v2806_v45 }
 0x786   :  { %v2810_v21 = vpop.permute.xlu0 %2809  ;;  %v1780_v37 = vpop.permute.xlu1 %1779 }
 0x787   :  { %v2848_v19 = vsel %vm2847_vm12, %v2846_v30, %v2810_v21  ;;  %v1792_v13 = vsel %vm1791_vm13, %v1790_v27, %v1780_v37 }
 0x788   :  { %2875 = vrot.lane.b32.xlu0 %v1792_v13, %s3748_s15  ;;  %v2849_v35 = vsel %vm1787_vm9, %v2848_v19, %v2814_v26 }
 0x78a   :  { %v2818_v23 = vpop.permute.xlu0 %2817  ;;  %v242_v34 = vpop.permute.xlu1 %241 }
 0x78b   :  { %v2851_v10 = vsel %vm2850_vm14, %v2849_v35, %v2818_v23 }
 0x78c   :  { %v2852_v61 = vsel %vm1789_vm11, %v2851_v10, %v2822_v33 }
 0x78d   :  { %v2854_v8 = vsel %vm2853_vm15, %v2852_v61, %v2826_v17 }
 0x78e   :  { %v2834_v57 = vpop.permute.xlu0 %2833  ;;  %v2855_v59 = vsel %vm1791_vm13, %v2854_v8, %v2830_v52 }
 0x78f   :  { %v2857_v25 = vsel %vm2856_vm0, %v2855_v59, %v2834_v57 }
 0x790   :  { %v2865_v4 = vadd.f32 %v3122_v0, %v2857_v25 }
 0x792   :  { %2879 = vrot.lane.b32.xlu1 %v2865_v4, %s3754_s4  ;;  %v238_v5 = vpop.permute.xlu0 %237 }
 0x793   :  { %v245_v63 = vsel %vm244_vm2, %v238_v5, %v242_v34 }
 0x7da   :  { %v2868_v38 = vpop.permute.xlu0 %2867 }
 0x7db   :  { %v2882_v62 = vsel %vm461_vm3, %v245_v63, %v2868_v38 }
 0x7e2   :  { %v2872_v50 = vpop.permute.xlu1 %2871 }
 0x7e3   :  { %v2883_v15 = vsel %vm902_vm5, %v2882_v62, %v2872_v50 }
 0x7fa   :  { %v2876_v36 = vpop.permute.xlu0 %2875 }
 0x7fb   :  { %v2884_v20 = vsel %vm1791_vm13, %v2883_v15, %v2876_v36 }
 0x804   :  { %v2880_v55 = vpop.permute.xlu1 %2879 }
 0x805   :  { %v2886_v45 = vsel %vm2885_vm1, %v2884_v20, %v2880_v55 }
 0x806   :  { %v2888_v26 = vsel %vm2887_vm4, %v2886_v45, 0.0 }
 0x807   :  { %2889 = vst [vmem:[%s4700_s13] sm:$0x3] %v2888_v26 }
 0x808   :  { %2894 = vsyncpa [#allocation3], 1 }
 0x809   :  { %2895 = vsyncpa [#allocation5], 1 }

</bundles_post_ra>
